<compile_context>
chip_gen: v7x
topology: tpu7x:2x2x1
jax: 0.10.0
libtpu: 0.0.40
codegen_flags: <defaults>
</compile_context>

<pallas_src>
from functools import partial

import numpy as np
import jax
import jax.numpy as jnp
from jax import lax
from jax.experimental import pallas as pl
from jax.experimental.pallas import tpu as pltpu


# --------------------------- host-side constants -----------------------------
def _stage_constants(B, L_in, last_stage):
    """Shift and pool-selector matrices for one conv stage (row layout)."""
    Lh = L_in // 2
    eyeB = np.eye(B, dtype=np.float32)
    # prev/next-row selectors, block-diagonal so batches never mix (padding=1).
    sm1 = np.kron(eyeB, np.eye(L_in, k=-1, dtype=np.float32))   # row l -> l-1
    sp1 = np.kron(eyeB, np.eye(L_in, k=1, dtype=np.float32))    # row l -> l+1
    sele = np.zeros((B * Lh, B * L_in), np.float32)
    selo = np.zeros((B * Lh, B * L_in), np.float32)
    for b in range(B):
        for t in range(Lh):
            # Last stage emits rows in (t*B + b) order so the LSTM reads a
            # contiguous (B, F) block per timestep; earlier stages keep the
            # (b*Lh + t) order expected by the next stage's shift matrices.
            r = t * B + b if last_stage else b * Lh + t
            sele[r, b * L_in + 2 * t] = 1.0
            selo[r, b * L_in + 2 * t + 1] = 1.0
    return sm1, sp1, sele, selo


# ------------------------------- forward -------------------------------------
@partial(jax.jit, static_argnums=(2, 3, 4, 5))
def emd_cnn_lstm_forward(x, params, batch_size, conv_archs, hidden_layer_sizes,
                         output_dim):
    B = batch_size
    f32 = jnp.float32

    # input_seq.view(batch_size, -1, 128)
    x3 = jnp.asarray(x, f32).reshape(B, -1, 128)            # (B, C_in, L)
    C_in, L = x3.shape[1], x3.shape[2]
    # Row layout: row index = b*L + l, columns = channels.
    x_rows = jnp.transpose(x3, (0, 2, 1)).reshape(B * L, C_in)

    # ---- pack kernel inputs (order must match the kernel's consumption) ----
    inputs = [x_rows]
    L_cur = L
    n_stages = len(conv_archs)
    for si, ((num_convs, _c_out), stage_p) in enumerate(
            zip(conv_archs, params["conv_stages"])):
        sm1, sp1, sele, selo = _stage_constants(B, L_cur, si == n_stages - 1)
        inputs += [jnp.asarray(sm1), jnp.asarray(sp1)]
        for (w, b) in stage_p:
            # torch Conv1d weight (C_out, C_in, 3) -> per-tap (3, C_in, C_out)
            inputs += [jnp.transpose(w, (2, 1, 0)).astype(f32),
                       b.reshape(1, -1).astype(f32)]
        inputs += [jnp.asarray(sele), jnp.asarray(selo)]
        L_cur //= 2
    T = L_cur                                                # LSTM sequence length
    for (w_ih, w_hh, b_ih, b_hh) in params["lstm"]:
        inputs += [w_ih.T.astype(f32), w_hh.T.astype(f32),
                   (b_ih + b_hh).reshape(1, -1).astype(f32)]
    w1, b1, w2, b2 = params["cls"]
    inputs += [w1.T.astype(f32), b1.reshape(1, -1).astype(f32),
               w2.T.astype(f32), b2.reshape(1, -1).astype(f32)]
    num_inputs = len(inputs)
    H0 = hidden_layer_sizes[0]

    # ------------------------------ kernel ----------------------------------
    def kernel(*refs):
        out_ref = refs[num_inputs]
        gx_ref = refs[num_inputs + 1]
        it = iter(refs[:num_inputs])

        cur = next(it)[...]                                  # (B*L, C_in)

        # ---- CNN feature extractor (all matmuls, VMEM resident) ----
        for (num_convs, _co) in conv_archs:
            sm1_ref = next(it)
            sp1_ref = next(it)
            for _ in range(num_convs):
                wtap_ref = next(it)
                brow = next(it)[...]
                prev_rows = jnp.dot(sm1_ref[...], cur, preferred_element_type=f32)
                next_rows = jnp.dot(sp1_ref[...], cur, preferred_element_type=f32)
                acc = (jnp.dot(prev_rows, wtap_ref[0], preferred_element_type=f32)
                       + jnp.dot(cur, wtap_ref[1], preferred_element_type=f32)
                       + jnp.dot(next_rows, wtap_ref[2], preferred_element_type=f32)
                       + brow)
                cur = jnp.maximum(acc, 0.0)                  # Conv1d + ReLU
            sele_ref = next(it)
            selo_ref = next(it)
            # MaxPool1d(kernel=2, stride=2) as two selector matmuls + max.
            cur = jnp.maximum(
                jnp.dot(sele_ref[...], cur, preferred_element_type=f32),
                jnp.dot(selo_ref[...], cur, preferred_element_type=f32))

        lstm_refs = [(next(it), next(it), next(it)) for _ in hidden_layer_sizes]
        wc1 = next(it)[...]
        bc1 = next(it)[...]
        wc2 = next(it)[...]
        bc2 = next(it)[...]

        # ---- hoisted input projection for LSTM layer 0 (one big matmul) ----
        wih0_ref, _whh0, bias0_ref = lstm_refs[0]
        gx_ref[...] = (jnp.dot(cur, wih0_ref[...], preferred_element_type=f32)
                       + bias0_ref[...])

        def lstm_cell(gates, c, H):
            sg = jax.nn.sigmoid(gates)                       # full-vreg EUP
            tg = jnp.tanh(gates)
            i_g = sg[:, 0:H]
            f_g = sg[:, H:2 * H]
            g_g = tg[:, 2 * H:3 * H]
            o_g = sg[:, 3 * H:4 * H]
            c_new = f_g * c + i_g * g_g
            h_new = o_g * jnp.tanh(c_new)
            return h_new, c_new

        def step(t, carry):
            row = pl.multiple_of(t * B, B)
            x_gates = gx_ref[pl.ds(row, B), :]               # (B, 4*H0)
            new_carry = []
            inp_h = None
            for li, (wih_ref, whh_ref, bias_ref) in enumerate(lstm_refs):
                h, c = carry[li]
                H = whh_ref.shape[0]
                if li == 0:
                    gates = x_gates
                else:
                    gates = (jnp.dot(inp_h, wih_ref[...],
                                     preferred_element_type=f32) + bias_ref[...])
                gates = gates + jnp.dot(h, whh_ref[...],
                                        preferred_element_type=f32)
                h_new, c_new = lstm_cell(gates, c, H)
                new_carry.append((h_new, c_new))
                inp_h = h_new
            return tuple(new_carry)

        init = tuple((jnp.zeros((B, h), f32), jnp.zeros((B, h), f32))
                     for h in hidden_layer_sizes)
        final = lax.fori_loop(0, T, step, init)
        h_last = final[-1][0]                                # lstm_out[:, -1, :]

        # ---- classifier (Dropout(0.5) == identity at inference) ----
        hc = jnp.maximum(
            jnp.dot(h_last, wc1, preferred_element_type=f32) + bc1, 0.0)
        out_ref[...] = jnp.dot(hc, wc2, preferred_element_type=f32) + bc2

    return pl.pallas_call(
        kernel,
        out_shape=jax.ShapeDtypeStruct((B, output_dim), f32),
        in_specs=[pl.BlockSpec(memory_space=pltpu.MemorySpace.VMEM)] * num_inputs,
        out_specs=pl.BlockSpec(memory_space=pltpu.MemorySpace.VMEM),
        scratch_shapes=[pltpu.VMEM((T * B, 4 * H0), f32)],
    )(*inputs)


# --------------------------- parameter init ----------------------------------
def init_params(key, input_dim, conv_archs, hidden_layer_sizes, output_dim):
    params = {"conv_stages": [], "lstm": [], "cls": None}
    c_in = input_dim
    for num_convs, c_out in conv_archs:
        stage = []
        for _ in range(num_convs):
            key, k1, k2 = jax.random.split(key, 3)
            w = jax.random.normal(k1, (c_out, c_in, 3), jnp.float32) * 0.1
            b = jax.random.normal(k2, (c_out,), jnp.float32) * 0.1
            stage.append((w, b))
            c_in = c_out
        params["conv_stages"].append(stage)
    in_f = conv_archs[-1][-1]
    for h in hidden_layer_sizes:
        key, k1, k2, k3, k4 = jax.random.split(key, 5)
        w_ih = jax.random.normal(k1, (4 * h, in_f), jnp.float32) * 0.1
        w_hh = jax.random.normal(k2, (4 * h, h), jnp.float32) * 0.1
        b_ih = jax.random.normal(k3, (4 * h,), jnp.float32) * 0.1
        b_hh = jax.random.normal(k4, (4 * h,), jnp.float32) * 0.1
        params["lstm"].append((w_ih, w_hh, b_ih, b_hh))
        in_f = h
    key, k1, k2, k3, k4 = jax.random.split(key, 5)
    w1 = jax.random.normal(k1, (64, hidden_layer_sizes[-1]), jnp.float32) * 0.1
    b1 = jax.random.normal(k2, (64,), jnp.float32) * 0.1
    w2 = jax.random.normal(k3, (output_dim, 64), jnp.float32) * 0.1
    b2 = jax.random.normal(k4, (64,)[0:1] and (output_dim,), jnp.float32) * 0.1
    params["cls"] = (w1, b1, w2, b2)
    return params


# --------------------------- numpy reference ----------------------------------
def _sigmoid(z):
    return 1.0 / (1.0 + np.exp(-z))


def numpy_reference(x, params, batch_size, conv_archs, hidden_layer_sizes):
    """Float64 numpy reference with PyTorch semantics (eval-mode dropout)."""
    x = np.asarray(x, np.float64).reshape(batch_size, -1, 128)
    for stage_p in params["conv_stages"]:
        for (w, b) in stage_p:
            w = np.asarray(w, np.float64)
            b = np.asarray(b, np.float64)
            B_, C, L = x.shape
            xp = np.zeros((B_, C, L + 2))
            xp[:, :, 1:L + 1] = x
            out = np.zeros((B_, w.shape[0], L))
            for k in range(3):
                out += np.einsum("oc,bcl->bol", w[:, :, k], xp[:, :, k:k + L])
            x = np.maximum(out + b[None, :, None], 0.0)
        B_, C, L = x.shape
        x = x.reshape(B_, C, L // 2, 2).max(axis=-1)
    seq = np.transpose(x, (0, 2, 1))                         # (B, T, F)
    for (w_ih, w_hh, b_ih, b_hh) in params["lstm"]:
        w_ih = np.asarray(w_ih, np.float64)
        w_hh = np.asarray(w_hh, np.float64)
        bias = np.asarray(b_ih, np.float64) + np.asarray(b_hh, np.float64)
        B_, T, _F = seq.shape
        H = w_hh.shape[1]
        h = np.zeros((B_, H))
        c = np.zeros((B_, H))
        outs = np.zeros((B_, T, H))
        for t in range(T):
            g = seq[:, t, :] @ w_ih.T + h @ w_hh.T + bias
            i = _sigmoid(g[:, 0:H])
            f = _sigmoid(g[:, H:2 * H])
            gg = np.tanh(g[:, 2 * H:3 * H])
            o = _sigmoid(g[:, 3 * H:4 * H])
            c = f * c + i * gg
            h = o * np.tanh(c)
            outs[:, t, :] = h
        seq = outs
    h_last = seq[:, -1, :]
    w1, b1, w2, b2 = [np.asarray(a, np.float64) for a in params["cls"]]
    hc = np.maximum(h_last @ w1.T + b1, 0.0)
    return hc @ w2.T + b2


# --------------------------------- main ---------------------------------------
if __name__ == "__main__":
    batch_size = 2
    input_dim = 4                      # number of EMD IMF channels
    conv_archs = ((2, 32),)            # one stage: 2 convs -> 32 ch, then maxpool
    hidden_layer_sizes = (32, 32)      # stacked LSTMs
    output_dim = 5

    key = jax.random.PRNGKey(0)
    kx, kp = jax.random.split(key)
    x = jax.random.normal(kx, (batch_size, input_dim, 128), jnp.float32)
    params = init_params(kp, input_dim, conv_archs, hidden_layer_sizes, output_dim)

    out = emd_cnn_lstm_forward(x, params, batch_size, conv_archs,
                               hidden_layer_sizes, output_dim)
    out = jax.block_until_ready(out)
    assert out.shape == (batch_size, output_dim)
    assert bool(jnp.all(jnp.isfinite(out)))

    ref = numpy_reference(np.asarray(x), params, batch_size, conv_archs,
                          hidden_layer_sizes)
    np.testing.assert_allclose(np.asarray(out), ref, rtol=2e-2, atol=2e-2)
    print("KERNEL_OK")
</pallas_src>

<mosaic_0001>
module attributes {stable_mosaic.version = 11 : i64} {
  func.func @kernel(%arg0: memref<256x4xf32, #tpu.memory_space<vmem>>, %arg1: memref<256x256xf32, #tpu.memory_space<vmem>>, %arg2: memref<256x256xf32, #tpu.memory_space<vmem>>, %arg3: memref<3x4x32xf32, #tpu.memory_space<vmem>>, %arg4: memref<1x32xf32, #tpu.memory_space<vmem>>, %arg5: memref<3x32x32xf32, #tpu.memory_space<vmem>>, %arg6: memref<1x32xf32, #tpu.memory_space<vmem>>, %arg7: memref<128x256xf32, #tpu.memory_space<vmem>>, %arg8: memref<128x256xf32, #tpu.memory_space<vmem>>, %arg9: memref<32x128xf32, #tpu.memory_space<vmem>>, %arg10: memref<32x128xf32, #tpu.memory_space<vmem>>, %arg11: memref<1x128xf32, #tpu.memory_space<vmem>>, %arg12: memref<32x128xf32, #tpu.memory_space<vmem>>, %arg13: memref<32x128xf32, #tpu.memory_space<vmem>>, %arg14: memref<1x128xf32, #tpu.memory_space<vmem>>, %arg15: memref<32x64xf32, #tpu.memory_space<vmem>>, %arg16: memref<1x64xf32, #tpu.memory_space<vmem>>, %arg17: memref<64x5xf32, #tpu.memory_space<vmem>>, %arg18: memref<1x5xf32, #tpu.memory_space<vmem>>, %arg19: memref<2x5xf32, #tpu.memory_space<vmem>>, %arg20: memref<128x128xf32, #tpu.memory_space<vmem>>) attributes {dimension_semantics = [], scalar_prefetch = 0 : i64, scratch_operands = 1 : i64, tpu.core_type = #tpu.core_type<tc>} {
    %c0 = arith.constant 0 : index
    %c0_0 = arith.constant 0 : index
    %0 = vector.load %arg0[%c0, %c0_0] : memref<256x4xf32, #tpu.memory_space<vmem>>, vector<256x4xf32>
    %c0_1 = arith.constant 0 : index
    %c0_2 = arith.constant 0 : index
    %1 = vector.load %arg4[%c0_1, %c0_2] : memref<1x32xf32, #tpu.memory_space<vmem>>, vector<1x32xf32>
    %c0_3 = arith.constant 0 : index
    %c0_4 = arith.constant 0 : index
    %2 = vector.load %arg1[%c0_3, %c0_4] : memref<256x256xf32, #tpu.memory_space<vmem>>, vector<256x256xf32>
    %cst = arith.constant dense<0.000000e+00> : vector<256x4xf32>
    %3 = tpu.matmul %2, %0, %cst {dimension_numbers = #tpu.dot_dimension_numbers<[1], [0], [0], [1], [0, 0, 1, 1], [], []>} : vector<256x256xf32>, vector<256x4xf32>, vector<256x4xf32> -> vector<256x4xf32>
    %c0_5 = arith.constant 0 : index
    %c0_6 = arith.constant 0 : index
    %4 = vector.load %arg2[%c0_5, %c0_6] : memref<256x256xf32, #tpu.memory_space<vmem>>, vector<256x256xf32>
    %cst_7 = arith.constant dense<0.000000e+00> : vector<256x4xf32>
    %5 = tpu.matmul %4, %0, %cst_7 {dimension_numbers = #tpu.dot_dimension_numbers<[1], [0], [0], [1], [0, 0, 1, 1], [], []>} : vector<256x256xf32>, vector<256x4xf32>, vector<256x4xf32> -> vector<256x4xf32>
    %c0_8 = arith.constant 0 : index
    %c0_9 = arith.constant 0 : index
    %c0_10 = arith.constant 0 : index
    %6 = vector.load %arg3[%c0_8, %c0_9, %c0_10] : memref<3x4x32xf32, #tpu.memory_space<vmem>>, vector<1x4x32xf32>
    %7 = vector.shape_cast %6 : vector<1x4x32xf32> to vector<4x32xf32>
    %cst_11 = arith.constant dense<0.000000e+00> : vector<256x32xf32>
    %8 = tpu.matmul %3, %7, %cst_11 {dimension_numbers = #tpu.dot_dimension_numbers<[1], [0], [0], [1], [0, 0, 1, 1], [], []>} : vector<256x4xf32>, vector<4x32xf32>, vector<256x32xf32> -> vector<256x32xf32>
    %c1 = arith.constant 1 : index
    %c0_12 = arith.constant 0 : index
    %c0_13 = arith.constant 0 : index
    %9 = vector.load %arg3[%c1, %c0_12, %c0_13] : memref<3x4x32xf32, #tpu.memory_space<vmem>>, vector<1x4x32xf32>
    %10 = vector.shape_cast %9 : vector<1x4x32xf32> to vector<4x32xf32>
    %cst_14 = arith.constant dense<0.000000e+00> : vector<256x32xf32>
    %11 = tpu.matmul %0, %10, %cst_14 {dimension_numbers = #tpu.dot_dimension_numbers<[1], [0], [0], [1], [0, 0, 1, 1], [], []>} : vector<256x4xf32>, vector<4x32xf32>, vector<256x32xf32> -> vector<256x32xf32>
    %12 = arith.addf %8, %11 : vector<256x32xf32>
    %c2 = arith.constant 2 : index
    %c0_15 = arith.constant 0 : index
    %c0_16 = arith.constant 0 : index
    %13 = vector.load %arg3[%c2, %c0_15, %c0_16] : memref<3x4x32xf32, #tpu.memory_space<vmem>>, vector<1x4x32xf32>
    %14 = vector.shape_cast %13 : vector<1x4x32xf32> to vector<4x32xf32>
    %cst_17 = arith.constant dense<0.000000e+00> : vector<256x32xf32>
    %15 = tpu.matmul %5, %14, %cst_17 {dimension_numbers = #tpu.dot_dimension_numbers<[1], [0], [0], [1], [0, 0, 1, 1], [], []>} : vector<256x4xf32>, vector<4x32xf32>, vector<256x32xf32> -> vector<256x32xf32>
    %16 = arith.addf %12, %15 : vector<256x32xf32>
    %17 = vector.broadcast %1 : vector<1x32xf32> to vector<256x32xf32>
    %18 = arith.addf %16, %17 : vector<256x32xf32>
    %cst_18 = arith.constant 0.000000e+00 : f32
    %19 = vector.broadcast %cst_18 : f32 to vector<256x32xf32>
    %20 = arith.maximumf %18, %19 : vector<256x32xf32>
    %c0_19 = arith.constant 0 : index
    %c0_20 = arith.constant 0 : index
    %21 = vector.load %arg6[%c0_19, %c0_20] : memref<1x32xf32, #tpu.memory_space<vmem>>, vector<1x32xf32>
    %c0_21 = arith.constant 0 : index
    %c0_22 = arith.constant 0 : index
    %22 = vector.load %arg1[%c0_21, %c0_22] : memref<256x256xf32, #tpu.memory_space<vmem>>, vector<256x256xf32>
    %cst_23 = arith.constant dense<0.000000e+00> : vector<256x32xf32>
    %23 = tpu.matmul %22, %20, %cst_23 {dimension_numbers = #tpu.dot_dimension_numbers<[1], [0], [0], [1], [0, 0, 1, 1], [], []>} : vector<256x256xf32>, vector<256x32xf32>, vector<256x32xf32> -> vector<256x32xf32>
    %c0_24 = arith.constant 0 : index
    %c0_25 = arith.constant 0 : index
    %24 = vector.load %arg2[%c0_24, %c0_25] : memref<256x256xf32, #tpu.memory_space<vmem>>, vector<256x256xf32>
    %cst_26 = arith.constant dense<0.000000e+00> : vector<256x32xf32>
    %25 = tpu.matmul %24, %20, %cst_26 {dimension_numbers = #tpu.dot_dimension_numbers<[1], [0], [0], [1], [0, 0, 1, 1], [], []>} : vector<256x256xf32>, vector<256x32xf32>, vector<256x32xf32> -> vector<256x32xf32>
    %c0_27 = arith.constant 0 : index
    %c0_28 = arith.constant 0 : index
    %c0_29 = arith.constant 0 : index
    %26 = vector.load %arg5[%c0_27, %c0_28, %c0_29] : memref<3x32x32xf32, #tpu.memory_space<vmem>>, vector<1x32x32xf32>
    %27 = vector.shape_cast %26 : vector<1x32x32xf32> to vector<32x32xf32>
    %cst_30 = arith.constant dense<0.000000e+00> : vector<256x32xf32>
    %28 = tpu.matmul %23, %27, %cst_30 {dimension_numbers = #tpu.dot_dimension_numbers<[1], [0], [0], [1], [0, 0, 1, 1], [], []>} : vector<256x32xf32>, vector<32x32xf32>, vector<256x32xf32> -> vector<256x32xf32>
    %c1_31 = arith.constant 1 : index
    %c0_32 = arith.constant 0 : index
    %c0_33 = arith.constant 0 : index
    %29 = vector.load %arg5[%c1_31, %c0_32, %c0_33] : memref<3x32x32xf32, #tpu.memory_space<vmem>>, vector<1x32x32xf32>
    %30 = vector.shape_cast %29 : vector<1x32x32xf32> to vector<32x32xf32>
    %cst_34 = arith.constant dense<0.000000e+00> : vector<256x32xf32>
    %31 = tpu.matmul %20, %30, %cst_34 {dimension_numbers = #tpu.dot_dimension_numbers<[1], [0], [0], [1], [0, 0, 1, 1], [], []>} : vector<256x32xf32>, vector<32x32xf32>, vector<256x32xf32> -> vector<256x32xf32>
    %32 = arith.addf %28, %31 : vector<256x32xf32>
    %c2_35 = arith.constant 2 : index
    %c0_36 = arith.constant 0 : index
    %c0_37 = arith.constant 0 : index
    %33 = vector.load %arg5[%c2_35, %c0_36, %c0_37] : memref<3x32x32xf32, #tpu.memory_space<vmem>>, vector<1x32x32xf32>
    %34 = vector.shape_cast %33 : vector<1x32x32xf32> to vector<32x32xf32>
    %cst_38 = arith.constant dense<0.000000e+00> : vector<256x32xf32>
    %35 = tpu.matmul %25, %34, %cst_38 {dimension_numbers = #tpu.dot_dimension_numbers<[1], [0], [0], [1], [0, 0, 1, 1], [], []>} : vector<256x32xf32>, vector<32x32xf32>, vector<256x32xf32> -> vector<256x32xf32>
    %36 = arith.addf %32, %35 : vector<256x32xf32>
    %37 = vector.broadcast %21 : vector<1x32xf32> to vector<256x32xf32>
    %38 = arith.addf %36, %37 : vector<256x32xf32>
    %cst_39 = arith.constant 0.000000e+00 : f32
    %39 = vector.broadcast %cst_39 : f32 to vector<256x32xf32>
    %40 = arith.maximumf %38, %39 : vector<256x32xf32>
    %c0_40 = arith.constant 0 : index
    %c0_41 = arith.constant 0 : index
    %41 = vector.load %arg7[%c0_40, %c0_41] : memref<128x256xf32, #tpu.memory_space<vmem>>, vector<128x256xf32>
    %cst_42 = arith.constant dense<0.000000e+00> : vector<128x32xf32>
    %42 = tpu.matmul %41, %40, %cst_42 {dimension_numbers = #tpu.dot_dimension_numbers<[1], [0], [0], [1], [0, 0, 1, 1], [], []>} : vector<128x256xf32>, vector<256x32xf32>, vector<128x32xf32> -> vector<128x32xf32>
    %c0_43 = arith.constant 0 : index
    %c0_44 = arith.constant 0 : index
    %43 = vector.load %arg8[%c0_43, %c0_44] : memref<128x256xf32, #tpu.memory_space<vmem>>, vector<128x256xf32>
    %cst_45 = arith.constant dense<0.000000e+00> : vector<128x32xf32>
    %44 = tpu.matmul %43, %40, %cst_45 {dimension_numbers = #tpu.dot_dimension_numbers<[1], [0], [0], [1], [0, 0, 1, 1], [], []>} : vector<128x256xf32>, vector<256x32xf32>, vector<128x32xf32> -> vector<128x32xf32>
    %45 = arith.maximumf %42, %44 : vector<128x32xf32>
    %c0_46 = arith.constant 0 : index
    %c0_47 = arith.constant 0 : index
    %46 = vector.load %arg15[%c0_46, %c0_47] : memref<32x64xf32, #tpu.memory_space<vmem>>, vector<32x64xf32>
    %c0_48 = arith.constant 0 : index
    %c0_49 = arith.constant 0 : index
    %47 = vector.load %arg16[%c0_48, %c0_49] : memref<1x64xf32, #tpu.memory_space<vmem>>, vector<1x64xf32>
    %c0_50 = arith.constant 0 : index
    %c0_51 = arith.constant 0 : index
    %48 = vector.load %arg17[%c0_50, %c0_51] : memref<64x5xf32, #tpu.memory_space<vmem>>, vector<64x5xf32>
    %c0_52 = arith.constant 0 : index
    %c0_53 = arith.constant 0 : index
    %49 = vector.load %arg18[%c0_52, %c0_53] : memref<1x5xf32, #tpu.memory_space<vmem>>, vector<1x5xf32>
    %c0_54 = arith.constant 0 : index
    %c0_55 = arith.constant 0 : index
    %50 = vector.load %arg9[%c0_54, %c0_55] : memref<32x128xf32, #tpu.memory_space<vmem>>, vector<32x128xf32>
    %cst_56 = arith.constant dense<0.000000e+00> : vector<128x128xf32>
    %51 = tpu.matmul %45, %50, %cst_56 {dimension_numbers = #tpu.dot_dimension_numbers<[1], [0], [0], [1], [0, 0, 1, 1], [], []>} : vector<128x32xf32>, vector<32x128xf32>, vector<128x128xf32> -> vector<128x128xf32>
    %c0_57 = arith.constant 0 : index
    %c0_58 = arith.constant 0 : index
    %52 = vector.load %arg11[%c0_57, %c0_58] : memref<1x128xf32, #tpu.memory_space<vmem>>, vector<1x128xf32>
    %53 = vector.broadcast %52 : vector<1x128xf32> to vector<128x128xf32>
    %54 = arith.addf %51, %53 : vector<128x128xf32>
    %c0_59 = arith.constant 0 : index
    %c0_60 = arith.constant 0 : index
    %55 = vector.load %arg20[%c0_59, %c0_60] : memref<128x128xf32, #tpu.memory_space<vmem>>, vector<128x128xf32>
    tpu.vector_store %arg20[%c0_59, %c0_60], %54 {strides = array<i32>} : memref<128x128xf32, #tpu.memory_space<vmem>>, vector<128x128xf32>,
    %cst_61 = arith.constant 0.000000e+00 : f32
    %56 = vector.broadcast %cst_61 : f32 to vector<2x32xf32>
    %cst_62 = arith.constant 0.000000e+00 : f32
    %57 = vector.broadcast %cst_62 : f32 to vector<2x32xf32>
    %cst_63 = arith.constant 0.000000e+00 : f32
    %58 = vector.broadcast %cst_63 : f32 to vector<2x32xf32>
    %cst_64 = arith.constant 0.000000e+00 : f32
    %59 = vector.broadcast %cst_64 : f32 to vector<2x32xf32>
    %c0_i32 = arith.constant 0 : i32
    %c64_i32 = arith.constant 64 : i32
    %60 = arith.addi %c0_i32, %c64_i32 : i32
    %c1_i32 = arith.constant 1 : i32
    %61:4 = scf.for %arg21 = %c0_i32 to %60 step %c1_i32 iter_args(%arg22 = %56, %arg23 = %57, %arg24 = %58, %arg25 = %59) -> (vector<2x32xf32>, vector<2x32xf32>, vector<2x32xf32>, vector<2x32xf32>)  : i32 {
      %c2_i32 = arith.constant 2 : i32
      %71 = arith.muli %arg21, %c2_i32 : i32
      %72 = tpu.assume_multiple %71, 2 : i32
      %73 = arith.index_cast %72 : i32 to index
      %c0_71 = arith.constant 0 : index
      %74 = vector.load %arg20[%73, %c0_71] : memref<128x128xf32, #tpu.memory_space<vmem>>, vector<2x128xf32>
      %c0_72 = arith.constant 0 : index
      %c0_73 = arith.constant 0 : index
      %75 = vector.load %arg10[%c0_72, %c0_73] : memref<32x128xf32, #tpu.memory_space<vmem>>, vector<32x128xf32>
      %cst_74 = arith.constant dense<0.000000e+00> : vector<2x128xf32>
      %76 = tpu.matmul %arg22, %75, %cst_74 {dimension_numbers = #tpu.dot_dimension_numbers<[1], [0], [0], [1], [0, 0, 1, 1], [], []>} : vector<2x32xf32>, vector<32x128xf32>, vector<2x128xf32> -> vector<2x128xf32>
      %77 = arith.addf %74, %76 : vector<2x128xf32>
      %78 = arith.negf %77 : vector<2x128xf32>
      %79 = math.exp %78 : vector<2x128xf32>
      %cst_75 = arith.constant 1.000000e+00 : f32
      %80 = vector.broadcast %cst_75 : f32 to vector<2x128xf32>
      %81 = arith.addf %80, %79 : vector<2x128xf32>
      %82 = arith.divf %80, %81 : vector<2x128xf32>
      %83 = math.tanh %77 : vector<2x128xf32>
      %84 = vector.extract_strided_slice %82 {offsets = [0, 0], sizes = [2, 32], strides = [1, 1]} : vector<2x128xf32> to vector<2x32xf32>
      %85 = vector.extract_strided_slice %82 {offsets = [0, 32], sizes = [2, 32], strides = [1, 1]} : vector<2x128xf32> to vector<2x32xf32>
      %86 = vector.extract_strided_slice %83 {offsets = [0, 64], sizes = [2, 32], strides = [1, 1]} : vector<2x128xf32> to vector<2x32xf32>
      %87 = vector.extract_strided_slice %82 {offsets = [0, 96], sizes = [2, 32], strides = [1, 1]} : vector<2x128xf32> to vector<2x32xf32>
      %88 = arith.mulf %85, %arg23 : vector<2x32xf32>
      %89 = arith.mulf %84, %86 : vector<2x32xf32>
      %90 = arith.addf %88, %89 : vector<2x32xf32>
      %91 = math.tanh %90 : vector<2x32xf32>
      %92 = arith.mulf %87, %91 : vector<2x32xf32>
      %c0_76 = arith.constant 0 : index
      %c0_77 = arith.constant 0 : index
      %93 = vector.load %arg12[%c0_76, %c0_77] : memref<32x128xf32, #tpu.memory_space<vmem>>, vector<32x128xf32>
      %cst_78 = arith.constant dense<0.000000e+00> : vector<2x128xf32>
      %94 = tpu.matmul %92, %93, %cst_78 {dimension_numbers = #tpu.dot_dimension_numbers<[1], [0], [0], [1], [0, 0, 1, 1], [], []>} : vector<2x32xf32>, vector<32x128xf32>, vector<2x128xf32> -> vector<2x128xf32>
      %c0_79 = arith.constant 0 : index
      %c0_80 = arith.constant 0 : index
      %95 = vector.load %arg14[%c0_79, %c0_80] : memref<1x128xf32, #tpu.memory_space<vmem>>, vector<1x128xf32>
      %96 = vector.broadcast %95 : vector<1x128xf32> to vector<2x128xf32>
      %97 = arith.addf %94, %96 : vector<2x128xf32>
      %c0_81 = arith.constant 0 : index
      %c0_82 = arith.constant 0 : index
      %98 = vector.load %arg13[%c0_81, %c0_82] : memref<32x128xf32, #tpu.memory_space<vmem>>, vector<32x128xf32>
      %cst_83 = arith.constant dense<0.000000e+00> : vector<2x128xf32>
      %99 = tpu.matmul %arg24, %98, %cst_83 {dimension_numbers = #tpu.dot_dimension_numbers<[1], [0], [0], [1], [0, 0, 1, 1], [], []>} : vector<2x32xf32>, vector<32x128xf32>, vector<2x128xf32> -> vector<2x128xf32>
      %100 = arith.addf %97, %99 : vector<2x128xf32>
      %101 = arith.negf %100 : vector<2x128xf32>
      %102 = math.exp %101 : vector<2x128xf32>
      %cst_84 = arith.constant 1.000000e+00 : f32
      %103 = vector.broadcast %cst_84 : f32 to vector<2x128xf32>
      %104 = arith.addf %103, %102 : vector<2x128xf32>
      %105 = arith.divf %103, %104 : vector<2x128xf32>
      %106 = math.tanh %100 : vector<2x128xf32>
      %107 = vector.extract_strided_slice %105 {offsets = [0, 0], sizes = [2, 32], strides = [1, 1]} : vector<2x128xf32> to vector<2x32xf32>
      %108 = vector.extract_strided_slice %105 {offsets = [0, 32], sizes = [2, 32], strides = [1, 1]} : vector<2x128xf32> to vector<2x32xf32>
      %109 = vector.extract_strided_slice %106 {offsets = [0, 64], sizes = [2, 32], strides = [1, 1]} : vector<2x128xf32> to vector<2x32xf32>
      %110 = vector.extract_strided_slice %105 {offsets = [0, 96], sizes = [2, 32], strides = [1, 1]} : vector<2x128xf32> to vector<2x32xf32>
      %111 = arith.mulf %108, %arg25 : vector<2x32xf32>
      %112 = arith.mulf %107, %109 : vector<2x32xf32>
      %113 = arith.addf %111, %112 : vector<2x32xf32>
      %114 = math.tanh %113 : vector<2x32xf32>
      %115 = arith.mulf %110, %114 : vector<2x32xf32>
      scf.yield %92, %90, %115, %113 : vector<2x32xf32>, vector<2x32xf32>, vector<2x32xf32>, vector<2x32xf32>
    }
    %c64_i32_65 = arith.constant 64 : i32
    %cst_66 = arith.constant dense<0.000000e+00> : vector<2x64xf32>
    %62 = tpu.matmul %61#2, %46, %cst_66 {dimension_numbers = #tpu.dot_dimension_numbers<[1], [0], [0], [1], [0, 0, 1, 1], [], []>} : vector<2x32xf32>, vector<32x64xf32>, vector<2x64xf32> -> vector<2x64xf32>
    %63 = vector.broadcast %47 : vector<1x64xf32> to vector<2x64xf32>
    %64 = arith.addf %62, %63 : vector<2x64xf32>
    %cst_67 = arith.constant 0.000000e+00 : f32
    %65 = vector.broadcast %cst_67 : f32 to vector<2x64xf32>
    %66 = arith.maximumf %64, %65 : vector<2x64xf32>
    %cst_68 = arith.constant dense<0.000000e+00> : vector<2x5xf32>
    %67 = tpu.matmul %66, %48, %cst_68 {dimension_numbers = #tpu.dot_dimension_numbers<[1], [0], [0], [1], [0, 0, 1, 1], [], []>} : vector<2x64xf32>, vector<64x5xf32>, vector<2x5xf32> -> vector<2x5xf32>
    %68 = vector.broadcast %49 : vector<1x5xf32> to vector<2x5xf32>
    %69 = arith.addf %67, %68 : vector<2x5xf32>
    %c0_69 = arith.constant 0 : index
    %c0_70 = arith.constant 0 : index
    %70 = vector.load %arg19[%c0_69, %c0_70] : memref<2x5xf32, #tpu.memory_space<vmem>>, vector<2x5xf32>
    tpu.vector_store %arg19[%c0_69, %c0_70], %69 {strides = array<i32>} : memref<2x5xf32, #tpu.memory_space<vmem>>, vector<2x5xf32>,
    return
  }
}

</mosaic_0001>

<bundles_post_ra>
// kernel: emd_cnn_lstm_forward.1
= control target key start
LH: loop header
LB: loop body
LE: loop exit
PB: predicated region body
PF: predicated region fallthrough
CT: control target
= control target key end

     0   :  { %s7947_s0 = inlined_call_operand.vmem [shape: f32[256,4], index: 0, kind: input, shape index: {}]   ;;  %s7948_s1 = inlined_call_operand.hbm [shape: f32[256,256], index: 1, kind: input, shape index: {}]   ;;  %s7949_s2 = inlined_call_operand.vmem [shape: f32[256,256], index: 2, kind: input, shape index: {}]   ;;  %s7950_s3 = inlined_call_operand.vmem [shape: f32[3,4,32], index: 3, kind: input, shape index: {}]   ;;  %s7951_s4 = inlined_call_operand.vmem [shape: f32[1,32], index: 4, kind: input, shape index: {}]   ;;  %s7952_s5 = inlined_call_operand.vmem [shape: f32[3,32,32], index: 5, kind: input, shape index: {}]   ;;  %s7953_s6 = inlined_call_operand.vmem [shape: f32[1,32], index: 6, kind: input, shape index: {}]   ;;  %s7954_s7 = inlined_call_operand.hbm [shape: f32[128,256], index: 7, kind: input, shape index: {}]   ;;  %s7955_s8 = inlined_call_operand.hbm [shape: f32[128,256], index: 8, kind: input, shape index: {}]   ;;  %s7956_s9 = inlined_call_operand.vmem [shape: f32[32,128], index: 9, kind: input, shape index: {}]   ;;  %s7957_s10 = inlined_call_operand.vmem [shape: f32[32,128], index: 10, kind: input, shape index: {}]   ;;  %s7958_s11 = inlined_call_operand.vmem [shape: f32[1,128], index: 11, kind: input, shape index: {}]   ;;  %s7959_s12 = inlined_call_operand.vmem [shape: f32[32,128], index: 12, kind: input, shape index: {}]   ;;  %s7960_s13 = inlined_call_operand.vmem [shape: f32[32,128], index: 13, kind: input, shape index: {}]   ;;  %s7961_s14 = inlined_call_operand.vmem [shape: f32[1,128], index: 14, kind: input, shape index: {}]   ;;  %s7962_s15 = inlined_call_operand.hbm [shape: f32[32,64], index: 15, kind: input, shape index: {}]   ;;  %s7963_s16 = inlined_call_operand.vmem [shape: f32[1,64], index: 16, kind: input, shape index: {}]   ;;  %s7964_s17 = inlined_call_operand.vmem [shape: f32[64,5], index: 17, kind: input, shape index: {}]   ;;  %s7965_s18 = inlined_call_operand.vmem [shape: f32[1,5], index: 18, kind: input, shape index: {}]   ;;  %s7966_s19 = inlined_call_operand.hbm [shape: f32[2,5], index: 19, kind: output, shape index: {}]  }
   0x1   :  { %7972 = sst [smem:[#allocation16_spill]] %s7947_s0 }
   0x2   :  { %7973 = sst [smem:[#allocation17_spill]] %s7948_s1 }
   0x3   :  { %7974 = sst [smem:[#allocation18_spill]] %s7949_s2 }
   0x4   :  { %7975 = sst [smem:[#allocation19_spill]] %s7950_s3 }
   0x5   :  { %7976 = sst [smem:[#allocation20_spill]] %s7966_s19 }
   0x6   :  { %24 = vsyncpa [#allocation4], 0 }
   0x7   :  { %25 = vsyncpa [#allocation7], 0 }
   0x8   :  { %26 = vsyncpa [#allocation10], 0 }
   0x9   :  { %27 = vsyncpa [#allocation5], 0  ;;  %s6334_s0 = smov [#allocation6]   ;;  %s6335_s20 = smov [#allocation3]  }
   0xa   :  { %s57_s30 = sshll.u32 %s6334_s0, 4  ;;  %s35_s21 = sshll.u32 %s6335_s20, 4  ;;  %s58_s30 = int_to_ptr.vmem [resolvable:$true] %s57_s30  ;;  %s6452_s21 = int_to_ptr.vmem [resolvable:$true] %s35_s21 }
   0xb   :  { %s6176_s2 = scalar_lea.hbm %s7954_s7, 4096 }
   0xc   :  { %p6177_p0 = scmp.ne.s32.totalorder %s7954_s7, %s6176_s2  ;;  %p6180_p1 = scmp.lt.u32.totalorder %s6176_s2, %s7954_s7 }
   0xe   :  { %p6182_p2 = pnand %p6180_p1, %p6177_p0 }
  0x10   :  { %6185 = shalt.err (!%p6182_p2)
}
  0x11   :  { %s6186_s26 = scalar_lea.vmem %s58_s30, 4096  ;;  %p6191_p4 = scmp.lt.s32.totalorder %s58_s30, %s58_s30 }
  0x12   :  { %p6187_p3 = scmp.ne.s32.totalorder %s58_s30, %s6186_s26  ;;  %p6192_p5 = scmp.lt.s32.totalorder %s6186_s26, %s6186_s26 }
  0x14   :  { %p6193_p6 = por %p6192_p5, %p6191_p4 }
  0x16   :  { %p6194_p7 = pnand %p6193_p6, %p6187_p3 }
  0x18   :  { %6197 = shalt.err (!%p6194_p7)
}
  0x19   :  { %s6336_s27 = smov 256   ;;  %s6337_s28 = smov 16  }
  0x1a   :  { %63 = dma.hbm_to_vmem [thread:$0]  %s7954_s7, 4096, %s58_s30, [#allocation7], %s6336_s27, %s6336_s27, %s6337_s28  }
  0x1b   :  { %s7977_s22 = sld [smem:[#allocation17_spill]] }
  0x21   :  { %s6198_s2 = scalar_lea.hbm %s7977_s22, 8192 }
  0x22   :  { %p6199_p8 = scmp.ne.s32.totalorder %s7977_s22, %s6198_s2  ;;  %p6202_p9 = scmp.lt.u32.totalorder %s6198_s2, %s7977_s22 }
  0x24   :  { %p6204_p10 = pnand %p6202_p9, %p6199_p8 }
  0x26   :  { %6207 = shalt.err (!%p6204_p10)
}
  0x27   :  { %s6208_s26 = scalar_lea.vmem %s6452_s21, 8192  ;;  %p6213_p12 = scmp.lt.s32.totalorder %s6452_s21, %s6452_s21 }
  0x28   :  { %p6209_p11 = scmp.ne.s32.totalorder %s6452_s21, %s6208_s26  ;;  %p6214_p13 = scmp.lt.s32.totalorder %s6208_s26, %s6208_s26 }
  0x2a   :  { %p6215_p0 = por %p6214_p13, %p6213_p12 }
  0x2c   :  { %p6216_p1 = pnand %p6215_p0, %p6209_p11 }
  0x2e   :  { %6219 = shalt.err (!%p6216_p1)
}
  0x2f   :  { %41 = dma.hbm_to_vmem [thread:$0]  %s7977_s22, 8192, %s6452_s21, [#allocation4], %s6336_s27, %s6336_s27, %s6337_s28  }
  0x30   :  { %s6338_s29 = smov [#allocation8]   ;;  %s6339_s20 = smov [#allocation9]  }
  0x31   :  { %s69_s0 = sshll.u32 %s6338_s29, 4  ;;  %s93_s1 = sshll.u32 %s6339_s20, 4  ;;  %s70_s0 = int_to_ptr.vmem [resolvable:$true] %s69_s0  ;;  %s6489_s1 = int_to_ptr.vmem [resolvable:$true] %s93_s1 }
  0x32   :  { %s6220_s24 = scalar_lea.hbm %s7955_s8, 4096 }
  0x33   :  { %p6221_p2 = scmp.ne.s32.totalorder %s7955_s8, %s6220_s24  ;;  %p6224_p3 = scmp.lt.u32.totalorder %s6220_s24, %s7955_s8 }
  0x35   :  { %p6226_p4 = pnand %p6224_p3, %p6221_p2 }
  0x37   :  { %6229 = shalt.err (!%p6226_p4)
}
  0x38   :  { %s6230_s21 = scalar_lea.vmem %s70_s0, 4096  ;;  %p6235_p6 = scmp.lt.s32.totalorder %s70_s0, %s70_s0 }
  0x39   :  { %p6231_p5 = scmp.ne.s32.totalorder %s70_s0, %s6230_s21  ;;  %p6236_p7 = scmp.lt.s32.totalorder %s6230_s21, %s6230_s21 }
  0x3b   :  { %p6237_p8 = por %p6236_p7, %p6235_p6 }
  0x3d   :  { %p6238_p9 = pnand %p6237_p8, %p6231_p5 }
  0x3f   :  { %6241 = shalt.err (!%p6238_p9)
}
  0x40   :  { %75 = dma.hbm_to_vmem [thread:$0]  %s7955_s8, 4096, %s70_s0, [#allocation7], %s6336_s27, %s6336_s27, %s6337_s28  }
  0x41   :  { %s6242_s19 = scalar_lea.hbm %s7962_s15, 512 }
  0x42   :  { %p6243_p10 = scmp.ne.s32.totalorder %s7962_s15, %s6242_s19  ;;  %p6246_p11 = scmp.lt.u32.totalorder %s6242_s19, %s7962_s15 }
  0x44   :  { %p6248_p12 = pnand %p6246_p11, %p6243_p10 }
  0x46   :  { %6251 = shalt.err (!%p6248_p12)
}
  0x47   :  { %s6252_s25 = scalar_lea.vmem %s6489_s1, 512  ;;  %p6257_p0 = scmp.lt.s32.totalorder %s6489_s1, %s6489_s1 }
  0x48   :  { %p6253_p13 = scmp.ne.s32.totalorder %s6489_s1, %s6252_s25  ;;  %p6258_p1 = scmp.lt.s32.totalorder %s6252_s25, %s6252_s25 }
  0x4a   :  { %p6259_p2 = por %p6258_p1, %p6257_p0 }
  0x4c   :  { %p6260_p3 = pnand %p6259_p2, %p6253_p13 }
  0x4e   :  { %6263 = shalt.err (!%p6260_p3)
}
  0x4f   :  { %s6340_s8 = smov 128   ;;  %s6341_s27 = smov 8  }
  0x50   :  { %99 = dma.hbm_to_vmem [thread:$0]  %s7962_s15, 512, %s6489_s1, [#allocation10], %s6340_s8, %s6340_s8, %s6341_s27  }
  0x51   :  { %6306 = dma.done.wait [#allocation4], 8192  }
  0x52   :  { %6307 = vsyncadd [#allocation4], 4294959104 }
  0x53   :  { %6308 = dma.done.wait [#allocation7], 8192  }
  0x54   :  { %6309 = vsyncadd [#allocation7], 4294959104 }
  0x55   :  { %6310 = dma.done.wait [#allocation10], 512  }
  0x56   :  { %6311 = vsyncadd [#allocation10], 4294966784  ;;  %v6342_v0 = vmov 0.0|0.0   ;;  %v6525_v1 = vld [vmem:[#allocation9] sm:$0xff]  ;;  %v6527_v2 = vld [vmem:[#allocation9 + $0x8] sm:$0xff]  ;;  %s7978_s3 = sld [smem:[#allocation16_spill]] }
  0x57   :  { %5516 = vmatprep.subr.bf16.mxu0 %v6342_v0  ;;  %5564 = vmatprep.subr.bf16.mxu1 %v6342_v0  ;;  %v6529_v3 = vld [vmem:[#allocation9 + $0x10] sm:$0xff]  ;;  %v6531_v4 = vld [vmem:[#allocation9 + $0x18] sm:$0xff]  ;;  %v6536_v5 = vld [vmem:[%s7963_s16] ss:$0 sm:$0xff]  ;;  %s7979_s29 = sld [smem:[#allocation18_spill]]  ;;  %vm829_vm0 = vcmask 1043456  }
  0x58   :  { %v6541_v6 = vld [vmem:[%s7964_s17] sm:$0xff]  ;;  %v6546_v7 = vld [vmem:[%s7964_s17 + $0x8] sm:$0xff]  ;;  %v6551_v8 = vld [vmem:[%s7964_s17 + $0x10] sm:$0xff]  ;;  %s7980_s16 = sld [smem:[#allocation19_spill]]  ;;  %vm732_vm1 = vcmask 31744   ;;  %vm2270_vm2 = vcmask 261120  }
  0x59   :  { %v6556_v9 = vld [vmem:[%s7964_s17 + $0x18] sm:$0xff]  ;;  %v6561_v10 = vld [vmem:[%s7964_s17 + $0x20] sm:$0xff]  ;;  %v6566_v11 = vld [vmem:[%s7964_s17 + $0x28] sm:$0xff] }
  0x5a   :  { %v6571_v12 = vld [vmem:[%s7964_s17 + $0x30] sm:$0xff]  ;;  %v6576_v13 = vld [vmem:[%s7964_s17 + $0x38] sm:$0xff]  ;;  %v6581_v14 = vld [vmem:[%s7965_s18] ss:$0 sm:$0xff] }
  0x5b   :  { %v6633_v26 = vld [vmem:[#allocation3 + $0x8] sm:$0xff] }
  0x5c   :  { %v6586_v15 = vld [vmem:[%s7978_s3] sm:$0xff]  ;;  %v6591_v16 = vld [vmem:[%s7978_s3 + $0x8] sm:$0xff]  ;;  %v6596_v17 = vld [vmem:[%s7978_s3 + $0x10] sm:$0xff]  ;;  %279 = vmatprep.mubr.f32.mxu0 %v6633_v26 }
  0x5d   :  { %v6601_v18 = vld [vmem:[%s7978_s3 + $0x18] sm:$0xff]  ;;  %v5517_v19 = vpack.c.bf16 %v6591_v16, %v6586_v15  ;;  %v6611_v21 = vld [vmem:[%s7978_s3 + $0x20] sm:$0xff]  ;;  %v6616_v22 = vld [vmem:[%s7978_s3 + $0x28] sm:$0xff] }
  0x5e   :  { %v5520_v20 = vpack.c.bf16 %v6601_v18, %v6596_v17  ;;  %v5523_v23 = vpack.c.bf16 %v6616_v22, %v6611_v21  ;;  %v6625_v24 = vld [vmem:[%s7978_s3 + $0x30] sm:$0xff]  ;;  %v6630_v25 = vld [vmem:[%s7978_s3 + $0x38] sm:$0xff]  ;;  %v6642_v28 = vld [vmem:[%s7978_s3 + $0x40] sm:$0xff] }
  0x5f   :  { %5518 = vmatpush1.bf16.msra.mxu0 %v5517_v19  ;;  %5566 = vmatpush1.bf16.msra.mxu1 %v5517_v19  ;;  %v5526_v27 = vpack.c.bf16 %v6630_v25, %v6625_v24  ;;  %v6647_v29 = vld [vmem:[%s7978_s3 + $0x48] sm:$0xff]  ;;  %v6656_v31 = vld [vmem:[%s7978_s3 + $0x50] sm:$0xff]  ;;  %v6661_v32 = vld [vmem:[%s7978_s3 + $0x58] sm:$0xff] }
  0x60   :  { %5519 = vmatprep.subr.bf16.mxu0 %v6342_v0  ;;  %5567 = vmatprep.subr.bf16.mxu1 %v6342_v0  ;;  %v5529_v30 = vpack.c.bf16 %v6647_v29, %v6642_v28  ;;  %v5532_v33 = vpack.c.bf16 %v6661_v32, %v6656_v31  ;;  %v6670_v34 = vld [vmem:[%s7978_s3 + $0x60] sm:$0xff]  ;;  %v6675_v35 = vld [vmem:[%s7978_s3 + $0x68] sm:$0xff]  ;;  %v6687_v38 = vld [vmem:[%s7978_s3 + $0x70] sm:$0xff] }
  0x61   :  { %v441_v36 = vld [vmem:[%s7979_s29 + $0x8] sm:$0xff]  ;;  %v5535_v37 = vpack.c.bf16 %v6675_v35, %v6670_v34  ;;  %v6692_v39 = vld [vmem:[%s7978_s3 + $0x78] sm:$0xff]  ;;  %v6701_v41 = vld [vmem:[%s7978_s3 + $0x80] sm:$0xff] }
  0x62   :  { %568 = vmatprep.mubr.f32.mxu1 %v441_v36  ;;  %v5538_v40 = vpack.c.bf16 %v6692_v39, %v6687_v38  ;;  %v6706_v42 = vld [vmem:[%s7978_s3 + $0x88] sm:$0xff]  ;;  %v6715_v44 = vld [vmem:[%s7978_s3 + $0x90] sm:$0xff]  ;;  %v6720_v45 = vld [vmem:[%s7978_s3 + $0x98] sm:$0xff] }
  0x63   :  { %5521 = vmatpush1.bf16.msra.mxu0 %v5520_v20  ;;  %5569 = vmatpush1.bf16.msra.mxu1 %v5520_v20  ;;  %v5541_v43 = vpack.c.bf16 %v6706_v42, %v6701_v41  ;;  %v5544_v46 = vpack.c.bf16 %v6720_v45, %v6715_v44  ;;  %v6729_v47 = vld [vmem:[%s7978_s3 + $0xa0] sm:$0xff]  ;;  %v6734_v48 = vld [vmem:[%s7978_s3 + $0xa8] sm:$0xff]  ;;  %v6743_v50 = vld [vmem:[%s7978_s3 + $0xb0] sm:$0xff] }
  0x64   :  { %5522 = vmatprep.subr.bf16.mxu0 %v6342_v0  ;;  %5570 = vmatprep.subr.bf16.mxu1 %v6342_v0  ;;  %v5547_v49 = vpack.c.bf16 %v6734_v48, %v6729_v47  ;;  %v6748_v51 = vld [vmem:[%s7978_s3 + $0xb8] sm:$0xff]  ;;  %v6757_v53 = vld [vmem:[%s7978_s3 + $0xc0] sm:$0xff]  ;;  %v6762_v54 = vld [vmem:[%s7978_s3 + $0xc8] sm:$0xff] }
  0x65   :  { %v5550_v52 = vpack.c.bf16 %v6748_v51, %v6743_v50  ;;  %v5553_v55 = vpack.c.bf16 %v6762_v54, %v6757_v53  ;;  %v6771_v56 = vld [vmem:[%s7978_s3 + $0xd0] sm:$0xff]  ;;  %v6776_v57 = vld [vmem:[%s7978_s3 + $0xd8] sm:$0xff]  ;;  %v6785_v59 = vld [vmem:[%s7978_s3 + $0xe0] sm:$0xff] }
  0x66   :  { %v5556_v58 = vpack.c.bf16 %v6776_v57, %v6771_v56  ;;  %v6790_v60 = vld [vmem:[%s7978_s3 + $0xe8] sm:$0xff]  ;;  %v6799_v62 = vld [vmem:[%s7978_s3 + $0xf0] sm:$0xff]  ;;  %v6804_v63 = vld [vmem:[%s7978_s3 + $0xf8] sm:$0xff] }
  0x67   :  { %5524 = vmatpush1.bf16.msra.mxu0 %v5523_v23  ;;  %5572 = vmatpush1.bf16.msra.mxu1 %v5523_v23  ;;  %v5559_v61 = vpack.c.bf16 %v6790_v60, %v6785_v59  ;;  %v5562_v19 = vpack.c.bf16 %v6804_v63, %v6799_v62  ;;  %v151_v20 = vld [vmem:[#allocation3] sm:$0xff]  ;;  %v154_v23 = vld [vmem:[#allocation3 + $0x18] sm:$0xff]  ;;  %v153_v36 = vld [vmem:[#allocation3 + $0x10] sm:$0xff] }
  0x68   :  { %5525 = vmatprep.subr.bf16.mxu0 %v6342_v0  ;;  %5573 = vmatprep.subr.bf16.mxu1 %v6342_v0 }
  0x6b   :  { %5527 = vmatpush1.bf16.msra.mxu0 %v5526_v27  ;;  %5575 = vmatpush1.bf16.msra.mxu1 %v5526_v27  ;;  %v440_v27 = vld [vmem:[%s7979_s29] sm:$0xff] }
  0x6c   :  { %5528 = vmatprep.subr.bf16.mxu0 %v6342_v0  ;;  %5576 = vmatprep.subr.bf16.mxu1 %v6342_v0 }
  0x6f   :  { %5530 = vmatpush1.bf16.msra.mxu0 %v5529_v30  ;;  %5578 = vmatpush1.bf16.msra.mxu1 %v5529_v30  ;;  %v443_v30 = vld [vmem:[%s7979_s29 + $0x18] sm:$0xff] }
  0x70   :  { %5531 = vmatprep.subr.bf16.mxu0 %v6342_v0  ;;  %5579 = vmatprep.subr.bf16.mxu1 %v6342_v0 }
  0x73   :  { %5533 = vmatpush1.bf16.msra.mxu0 %v5532_v33  ;;  %5581 = vmatpush1.bf16.msra.mxu1 %v5532_v33  ;;  %v4452_v33 = vld [vmem:[%s7980_s16 + $0x4] sm:$0xf] }
  0x74   :  { %5534 = vmatprep.subr.bf16.mxu0 %v6342_v0  ;;  %5582 = vmatprep.subr.bf16.mxu1 %v6342_v0 }
  0x77   :  { %5536 = vmatpush1.bf16.msra.mxu0 %v5535_v37  ;;  %5584 = vmatpush1.bf16.msra.mxu1 %v5535_v37  ;;  %v156_v37 = vld [vmem:[#allocation3 + $0x28] sm:$0xff] }
  0x78   :  { %5537 = vmatprep.subr.bf16.mxu0 %v6342_v0  ;;  %5585 = vmatprep.subr.bf16.mxu1 %v6342_v0 }
  0x7b   :  { %5539 = vmatpush1.bf16.msra.mxu0 %v5538_v40  ;;  %5587 = vmatpush1.bf16.msra.mxu1 %v5538_v40  ;;  %v442_v40 = vld [vmem:[%s7979_s29 + $0x10] sm:$0xff] }
  0x7c   :  { %5540 = vmatprep.subr.bf16.mxu0 %v6342_v0  ;;  %5588 = vmatprep.subr.bf16.mxu1 %v6342_v0 }
  0x7f   :  { %5542 = vmatpush1.bf16.msra.mxu0 %v5541_v43  ;;  %5590 = vmatpush1.bf16.msra.mxu1 %v5541_v43  ;;  %v445_v43 = vld [vmem:[%s7979_s29 + $0x28] sm:$0xff] }
  0x80   :  { %5543 = vmatprep.subr.bf16.mxu0 %v6342_v0  ;;  %5591 = vmatprep.subr.bf16.mxu1 %v6342_v0 }
  0x83   :  { %5545 = vmatpush1.bf16.msra.mxu0 %v5544_v46  ;;  %5593 = vmatpush1.bf16.msra.mxu1 %v5544_v46  ;;  %v155_v46 = vld [vmem:[#allocation3 + $0x20] sm:$0xff] }
  0x84   :  { %5546 = vmatprep.subr.bf16.mxu0 %v6342_v0  ;;  %5594 = vmatprep.subr.bf16.mxu1 %v6342_v0 }
  0x87   :  { %5548 = vmatpush1.bf16.msra.mxu0 %v5547_v49  ;;  %5596 = vmatpush1.bf16.msra.mxu1 %v5547_v49  ;;  %v158_v49 = vld [vmem:[#allocation3 + $0x38] sm:$0xff] }
  0x88   :  { %5549 = vmatprep.subr.bf16.mxu0 %v6342_v0  ;;  %5597 = vmatprep.subr.bf16.mxu1 %v6342_v0 }
  0x8b   :  { %5551 = vmatpush1.bf16.msra.mxu0 %v5550_v52  ;;  %5599 = vmatpush1.bf16.msra.mxu1 %v5550_v52  ;;  %v444_v52 = vld [vmem:[%s7979_s29 + $0x20] sm:$0xff] }
  0x8c   :  { %5552 = vmatprep.subr.bf16.mxu0 %v6342_v0  ;;  %5600 = vmatprep.subr.bf16.mxu1 %v6342_v0 }
  0x8f   :  { %5554 = vmatpush1.bf16.msra.mxu0 %v5553_v55  ;;  %5602 = vmatpush1.bf16.msra.mxu1 %v5553_v55  ;;  %v447_v55 = vld [vmem:[%s7979_s29 + $0x38] sm:$0xff] }
  0x90   :  { %5555 = vmatprep.subr.bf16.mxu0 %v6342_v0  ;;  %5603 = vmatprep.subr.bf16.mxu1 %v6342_v0 }
  0x93   :  { %5557 = vmatpush1.bf16.msra.mxu0 %v5556_v58  ;;  %5605 = vmatpush1.bf16.msra.mxu1 %v5556_v58  ;;  %v157_v58 = vld [vmem:[#allocation3 + $0x30] sm:$0xff] }
  0x94   :  { %5558 = vmatprep.subr.bf16.mxu0 %v6342_v0  ;;  %5606 = vmatprep.subr.bf16.mxu1 %v6342_v0 }
  0x97   :  { %5560 = vmatpush1.bf16.msra.mxu0 %v5559_v61  ;;  %5608 = vmatpush1.bf16.msra.mxu1 %v5559_v61  ;;  %v160_v61 = vld [vmem:[#allocation3 + $0x48] sm:$0xff] }
  0x98   :  { %5561 = vmatprep.subr.bf16.mxu0 %v6342_v0  ;;  %5609 = vmatprep.subr.bf16.mxu1 %v6342_v0 }
  0x9b   :  { %5563 = vmatpush1.bf16.msra.mxu0 %v5562_v19  ;;  %5611 = vmatpush1.bf16.msra.mxu1 %v5562_v19  ;;  %v446_v19 = vld [vmem:[%s7979_s29 + $0x30] sm:$0xff] }
  0x9c   :  { %5612 = vmatprep.subr.bf16.mxu1 %v6342_v0  ;;  %5103 = vmatprep.subr.msk.mxu0 %vm829_vm0, %v4452_v33 }
  0x9e   :  { %280 = vmatmul.mubr.f32.vlgmr.msra.gmra.mrb[0].mxu0 %v151_v20  ;;  %569 = vmatmul.mubr.f32.vlgmr.msra.gmra.mrb[0].mxu1 %v440_v27  ;;  %v449_v20 = vld [vmem:[%s7979_s29 + $0x48] sm:$0xff]  ;;  %v162_v27 = vld [vmem:[#allocation3 + $0x58] sm:$0xff] }
  0x9f   :  { %284 = vmatprep.mubr.f32.mxu0 %v154_v23  ;;  %573 = vmatprep.mubr.f32.mxu1 %v443_v30  ;;  %v159_v23 = vld [vmem:[#allocation3 + $0x40] sm:$0xff] }
  0xa0   :  { %5104 = vmatpush3.msk.msra.mxu0 %vm829_vm0, %v4452_v33  ;;  %v448_v30 = vld [vmem:[%s7979_s29 + $0x40] sm:$0xff]  ;;  %v451_v33 = vld [vmem:[%s7979_s29 + $0x58] sm:$0xff] }
  0xa2   :  { %285 = vmatmul.mubr.f32.gmra.mrb[2].mxu0 %v153_v36  ;;  %574 = vmatmul.mubr.f32.gmra.mrb[2].mxu1 %v442_v40  ;;  %v161_v36 = vld [vmem:[#allocation3 + $0x50] sm:$0xff] }
  0xa3   :  { %289 = vmatprep.mubr.f32.mxu0 %v156_v37  ;;  %578 = vmatprep.mubr.f32.mxu1 %v445_v43  ;;  %v164_v37 = vld [vmem:[#allocation3 + $0x68] sm:$0xff]  ;;  %v450_v40 = vld [vmem:[%s7979_s29 + $0x50] sm:$0xff] }
  0xa4   :  { %v453_v43 = vld [vmem:[%s7979_s29 + $0x68] sm:$0xff] }
  0xa6   :  { %290 = vmatmul.mubr.f32.gmra.mrb[4].mxu0 %v155_v46  ;;  %579 = vmatmul.mubr.f32.gmra.mrb[4].mxu1 %v444_v52  ;;  %v163_v46 = vld [vmem:[#allocation3 + $0x60] sm:$0xff] }
  0xa7   :  { %294 = vmatprep.mubr.f32.mxu0 %v158_v49  ;;  %583 = vmatprep.mubr.f32.mxu1 %v447_v55  ;;  %v166_v49 = vld [vmem:[#allocation3 + $0x78] sm:$0xff]  ;;  %v452_v52 = vld [vmem:[%s7979_s29 + $0x60] sm:$0xff] }
  0xa8   :  { %v455_v55 = vld [vmem:[%s7979_s29 + $0x78] sm:$0xff] }
  0xaa   :  { %295 = vmatmul.mubr.f32.gmra.mrb[6].mxu0 %v157_v58  ;;  %584 = vmatmul.mubr.f32.gmra.mrb[6].mxu1 %v446_v19  ;;  %v165_v58 = vld [vmem:[#allocation3 + $0x70] sm:$0xff] }
  0xab   :  { %299 = vmatprep.mubr.f32.mxu0 %v160_v61  ;;  %588 = vmatprep.mubr.f32.mxu1 %v449_v20  ;;  %v168_v61 = vld [vmem:[#allocation3 + $0x88] sm:$0xff]  ;;  %v454_v19 = vld [vmem:[%s7979_s29 + $0x70] sm:$0xff] }
  0xac   :  { %v457_v20 = vld [vmem:[%s7979_s29 + $0x88] sm:$0xff] }
  0xae   :  { %300 = vmatmul.mubr.f32.gmra.mrb[8].mxu0 %v159_v23  ;;  %589 = vmatmul.mubr.f32.gmra.mrb[8].mxu1 %v448_v30  ;;  %v167_v23 = vld [vmem:[#allocation3 + $0x80] sm:$0xff] }
  0xaf   :  { %304 = vmatprep.mubr.f32.mxu0 %v162_v27  ;;  %593 = vmatprep.mubr.f32.mxu1 %v451_v33  ;;  %v170_v27 = vld [vmem:[#allocation3 + $0x98] sm:$0xff]  ;;  %v456_v30 = vld [vmem:[%s7979_s29 + $0x80] sm:$0xff] }
  0xb0   :  { %v459_v33 = vld [vmem:[%s7979_s29 + $0x98] sm:$0xff] }
  0xb2   :  { %305 = vmatmul.mubr.f32.gmra.mrb[10].mxu0 %v161_v36  ;;  %594 = vmatmul.mubr.f32.gmra.mrb[10].mxu1 %v450_v40  ;;  %v169_v36 = vld [vmem:[#allocation3 + $0x90] sm:$0xff] }
  0xb3   :  { %309 = vmatprep.mubr.f32.mxu0 %v164_v37  ;;  %598 = vmatprep.mubr.f32.mxu1 %v453_v43  ;;  %v172_v37 = vld [vmem:[#allocation3 + $0xa8] sm:$0xff]  ;;  %v458_v40 = vld [vmem:[%s7979_s29 + $0x90] sm:$0xff] }
  0xb4   :  { %v461_v43 = vld [vmem:[%s7979_s29 + $0xa8] sm:$0xff] }
  0xb6   :  { %310 = vmatmul.mubr.f32.gmra.mrb[12].mxu0 %v163_v46  ;;  %599 = vmatmul.mubr.f32.gmra.mrb[12].mxu1 %v452_v52  ;;  %v171_v46 = vld [vmem:[#allocation3 + $0xa0] sm:$0xff] }
  0xb7   :  { %314 = vmatprep.mubr.f32.mxu0 %v166_v49  ;;  %603 = vmatprep.mubr.f32.mxu1 %v455_v55  ;;  %v174_v49 = vld [vmem:[#allocation3 + $0xb8] sm:$0xff]  ;;  %v460_v52 = vld [vmem:[%s7979_s29 + $0xa0] sm:$0xff] }
  0xb8   :  { %v463_v55 = vld [vmem:[%s7979_s29 + $0xb8] sm:$0xff] }
  0xba   :  { %315 = vmatmul.mubr.f32.gmra.mrb[14].mxu0 %v165_v58  ;;  %604 = vmatmul.mubr.f32.gmra.mrb[14].mxu1 %v454_v19  ;;  %v173_v58 = vld [vmem:[#allocation3 + $0xb0] sm:$0xff] }
  0xbb   :  { %319 = vmatprep.mubr.f32.mxu0 %v168_v61  ;;  %608 = vmatprep.mubr.f32.mxu1 %v457_v20  ;;  %v176_v61 = vld [vmem:[#allocation3 + $0xc8] sm:$0xff]  ;;  %v462_v19 = vld [vmem:[%s7979_s29 + $0xb0] sm:$0xff] }
  0xbc   :  { %v465_v20 = vld [vmem:[%s7979_s29 + $0xc8] sm:$0xff] }
  0xbe   :  { %320 = vmatmul.mubr.f32.gmra.mrb[16].mxu0 %v167_v23  ;;  %609 = vmatmul.mubr.f32.gmra.mrb[16].mxu1 %v456_v30  ;;  %v175_v23 = vld [vmem:[#allocation3 + $0xc0] sm:$0xff] }
  0xbf   :  { %324 = vmatprep.mubr.f32.mxu0 %v170_v27  ;;  %613 = vmatprep.mubr.f32.mxu1 %v459_v33  ;;  %v178_v27 = vld [vmem:[#allocation3 + $0xd8] sm:$0xff]  ;;  %v464_v30 = vld [vmem:[%s7979_s29 + $0xc0] sm:$0xff] }
  0xc0   :  { %v467_v33 = vld [vmem:[%s7979_s29 + $0xd8] sm:$0xff] }
  0xc2   :  { %325 = vmatmul.mubr.f32.gmra.mrb[18].mxu0 %v169_v36  ;;  %614 = vmatmul.mubr.f32.gmra.mrb[18].mxu1 %v458_v40  ;;  %v177_v36 = vld [vmem:[#allocation3 + $0xd0] sm:$0xff] }
  0xc3   :  { %329 = vmatprep.mubr.f32.mxu0 %v172_v37  ;;  %618 = vmatprep.mubr.f32.mxu1 %v461_v43  ;;  %v180_v37 = vld [vmem:[#allocation3 + $0xe8] sm:$0xff]  ;;  %v466_v40 = vld [vmem:[%s7979_s29 + $0xd0] sm:$0xff] }
  0xc4   :  { %v469_v43 = vld [vmem:[%s7979_s29 + $0xe8] sm:$0xff] }
  0xc6   :  { %330 = vmatmul.mubr.f32.gmra.mrb[20].mxu0 %v171_v46  ;;  %619 = vmatmul.mubr.f32.gmra.mrb[20].mxu1 %v460_v52  ;;  %v179_v46 = vld [vmem:[#allocation3 + $0xe0] sm:$0xff] }
  0xc7   :  { %334 = vmatprep.mubr.f32.mxu0 %v174_v49  ;;  %623 = vmatprep.mubr.f32.mxu1 %v463_v55  ;;  %v182_v49 = vld [vmem:[#allocation3 + $0xf8] sm:$0xff]  ;;  %v468_v52 = vld [vmem:[%s7979_s29 + $0xe0] sm:$0xff] }
  0xc8   :  { %v471_v55 = vld [vmem:[%s7979_s29 + $0xf8] sm:$0xff] }
  0xca   :  { %335 = vmatmul.mubr.f32.gmra.mrb[22].mxu0 %v173_v58  ;;  %624 = vmatmul.mubr.f32.gmra.mrb[22].mxu1 %v462_v19  ;;  %v181_v58 = vld [vmem:[#allocation3 + $0xf0] sm:$0xff] }
  0xcb   :  { %339 = vmatprep.mubr.f32.mxu0 %v176_v61  ;;  %628 = vmatprep.mubr.f32.mxu1 %v465_v20  ;;  %v184_v61 = vld [vmem:[#allocation3 + $0x108] sm:$0xff]  ;;  %v470_v19 = vld [vmem:[%s7979_s29 + $0xf0] sm:$0xff] }
  0xcc   :  { %v473_v20 = vld [vmem:[%s7979_s29 + $0x108] sm:$0xff] }
  0xce   :  { %340 = vmatmul.mubr.f32.gmra.mrb[24].mxu0 %v175_v23  ;;  %629 = vmatmul.mubr.f32.gmra.mrb[24].mxu1 %v464_v30  ;;  %v183_v23 = vld [vmem:[#allocation3 + $0x100] sm:$0xff] }
  0xcf   :  { %344 = vmatprep.mubr.f32.mxu0 %v178_v27  ;;  %633 = vmatprep.mubr.f32.mxu1 %v467_v33  ;;  %v186_v27 = vld [vmem:[#allocation3 + $0x118] sm:$0xff]  ;;  %v472_v30 = vld [vmem:[%s7979_s29 + $0x100] sm:$0xff] }
  0xd0   :  { %v475_v33 = vld [vmem:[%s7979_s29 + $0x118] sm:$0xff] }
  0xd2   :  { %345 = vmatmul.mubr.f32.gmra.mrb[26].mxu0 %v177_v36  ;;  %634 = vmatmul.mubr.f32.gmra.mrb[26].mxu1 %v466_v40  ;;  %v185_v36 = vld [vmem:[#allocation3 + $0x110] sm:$0xff] }
  0xd3   :  { %349 = vmatprep.mubr.f32.mxu0 %v180_v37  ;;  %638 = vmatprep.mubr.f32.mxu1 %v469_v43  ;;  %v188_v37 = vld [vmem:[#allocation3 + $0x128] sm:$0xff]  ;;  %v474_v40 = vld [vmem:[%s7979_s29 + $0x110] sm:$0xff] }
  0xd4   :  { %v477_v43 = vld [vmem:[%s7979_s29 + $0x128] sm:$0xff] }
  0xd6   :  { %350 = vmatmul.mubr.f32.gmra.mrb[28].mxu0 %v179_v46  ;;  %639 = vmatmul.mubr.f32.gmra.mrb[28].mxu1 %v468_v52  ;;  %v187_v46 = vld [vmem:[#allocation3 + $0x120] sm:$0xff] }
  0xd7   :  { %354 = vmatprep.mubr.f32.mxu0 %v182_v49  ;;  %643 = vmatprep.mubr.f32.mxu1 %v471_v55  ;;  %v190_v49 = vld [vmem:[#allocation3 + $0x138] sm:$0xff]  ;;  %v476_v52 = vld [vmem:[%s7979_s29 + $0x120] sm:$0xff] }
  0xd8   :  { %v479_v55 = vld [vmem:[%s7979_s29 + $0x138] sm:$0xff] }
  0xda   :  { %355 = vmatmul.mubr.f32.gmra.mrb[30].mxu0 %v181_v58  ;;  %644 = vmatmul.mubr.f32.gmra.mrb[30].mxu1 %v470_v19  ;;  %v189_v58 = vld [vmem:[#allocation3 + $0x130] sm:$0xff] }
  0xdb   :  { %359 = vmatprep.mubr.f32.mxu0 %v184_v61  ;;  %648 = vmatprep.mubr.f32.mxu1 %v473_v20  ;;  %v192_v61 = vld [vmem:[#allocation3 + $0x148] sm:$0xff]  ;;  %v478_v19 = vld [vmem:[%s7979_s29 + $0x130] sm:$0xff] }
  0xdc   :  { %v481_v20 = vld [vmem:[%s7979_s29 + $0x148] sm:$0xff] }
  0xde   :  { %360 = vmatmul.mubr.f32.gmra.mrb[32].mxu0 %v183_v23  ;;  %649 = vmatmul.mubr.f32.gmra.mrb[32].mxu1 %v472_v30  ;;  %v191_v23 = vld [vmem:[#allocation3 + $0x140] sm:$0xff] }
  0xdf   :  { %364 = vmatprep.mubr.f32.mxu0 %v186_v27  ;;  %653 = vmatprep.mubr.f32.mxu1 %v475_v33  ;;  %v194_v27 = vld [vmem:[#allocation3 + $0x158] sm:$0xff]  ;;  %v480_v30 = vld [vmem:[%s7979_s29 + $0x140] sm:$0xff] }
  0xe0   :  { %v483_v33 = vld [vmem:[%s7979_s29 + $0x158] sm:$0xff] }
  0xe2   :  { %365 = vmatmul.mubr.f32.gmra.mrb[34].mxu0 %v185_v36  ;;  %654 = vmatmul.mubr.f32.gmra.mrb[34].mxu1 %v474_v40  ;;  %v193_v36 = vld [vmem:[#allocation3 + $0x150] sm:$0xff] }
  0xe3   :  { %369 = vmatprep.mubr.f32.mxu0 %v188_v37  ;;  %658 = vmatprep.mubr.f32.mxu1 %v477_v43  ;;  %v196_v37 = vld [vmem:[#allocation3 + $0x168] sm:$0xff]  ;;  %v482_v40 = vld [vmem:[%s7979_s29 + $0x150] sm:$0xff] }
  0xe4   :  { %v485_v43 = vld [vmem:[%s7979_s29 + $0x168] sm:$0xff] }
  0xe6   :  { %370 = vmatmul.mubr.f32.gmra.mrb[36].mxu0 %v187_v46  ;;  %659 = vmatmul.mubr.f32.gmra.mrb[36].mxu1 %v476_v52  ;;  %v6952_v46 = vld [vmem:[%s7980_s16] sm:$0xf]  ;;  %v198_v52 = vld [vmem:[#allocation3 + $0x178] sm:$0xff] }
  0xe7   :  { %374 = vmatprep.mubr.f32.mxu0 %v190_v49  ;;  %663 = vmatprep.mubr.f32.mxu1 %v479_v55  ;;  %v195_v49 = vld [vmem:[#allocation3 + $0x160] sm:$0xff] }
  0xe8   :  { %v484_v55 = vld [vmem:[%s7979_s29 + $0x160] sm:$0xff]  ;;  %5153 = vmatprep.subr.msk.mxu0 %vm829_vm0, %v6952_v46 }
  0xea   :  { %375 = vmatmul.mubr.f32.gmra.mrb[38].mxu0 %v189_v58  ;;  %664 = vmatmul.mubr.f32.gmra.mrb[38].mxu1 %v478_v19  ;;  %v487_v58 = vld [vmem:[%s7979_s29 + $0x178] sm:$0xff]  ;;  %v200_v19 = vld [vmem:[#allocation3 + $0x188] sm:$0xff] }
  0xeb   :  { %379 = vmatprep.mubr.f32.mxu0 %v192_v61  ;;  %668 = vmatprep.mubr.f32.mxu1 %v481_v20  ;;  %v197_v61 = vld [vmem:[#allocation3 + $0x170] sm:$0xff] }
  0xec   :  { %v486_v20 = vld [vmem:[%s7979_s29 + $0x170] sm:$0xff] }
  0xee   :  { %380 = vmatmul.mubr.f32.gmra.mrb[40].mxu0 %v191_v23  ;;  %669 = vmatmul.mubr.f32.gmra.mrb[40].mxu1 %v480_v30  ;;  %v489_v23 = vld [vmem:[%s7979_s29 + $0x188] sm:$0xff]  ;;  %v202_v30 = vld [vmem:[#allocation3 + $0x198] sm:$0xff] }
  0xef   :  { %384 = vmatprep.mubr.f32.mxu0 %v194_v27  ;;  %673 = vmatprep.mubr.f32.mxu1 %v483_v33  ;;  %v199_v27 = vld [vmem:[#allocation3 + $0x180] sm:$0xff] }
  0xf0   :  { %v488_v33 = vld [vmem:[%s7979_s29 + $0x180] sm:$0xff] }
  0xf2   :  { %385 = vmatmul.mubr.f32.gmra.mrb[42].mxu0 %v193_v36  ;;  %674 = vmatmul.mubr.f32.gmra.mrb[42].mxu1 %v482_v40  ;;  %v491_v36 = vld [vmem:[%s7979_s29 + $0x198] sm:$0xff]  ;;  %v204_v40 = vld [vmem:[#allocation3 + $0x1a8] sm:$0xff] }
  0xf3   :  { %389 = vmatprep.mubr.f32.mxu0 %v196_v37  ;;  %678 = vmatprep.mubr.f32.mxu1 %v485_v43  ;;  %v201_v37 = vld [vmem:[#allocation3 + $0x190] sm:$0xff] }
  0xf4   :  { %v490_v43 = vld [vmem:[%s7979_s29 + $0x190] sm:$0xff] }
  0xf6   :  { %390 = vmatmul.mubr.f32.gmra.mrb[44].mxu0 %v195_v49  ;;  %679 = vmatmul.mubr.f32.gmra.mrb[44].mxu1 %v484_v55  ;;  %v493_v49 = vld [vmem:[%s7979_s29 + $0x1a8] sm:$0xff]  ;;  %v206_v55 = vld [vmem:[#allocation3 + $0x1b8] sm:$0xff] }
  0xf7   :  { %394 = vmatprep.mubr.f32.mxu0 %v198_v52  ;;  %683 = vmatprep.mubr.f32.mxu1 %v487_v58  ;;  %v203_v52 = vld [vmem:[#allocation3 + $0x1a0] sm:$0xff] }
  0xf8   :  { %v492_v58 = vld [vmem:[%s7979_s29 + $0x1a0] sm:$0xff] }
  0xfa   :  { %395 = vmatmul.mubr.f32.gmra.mrb[46].mxu0 %v197_v61  ;;  %684 = vmatmul.mubr.f32.gmra.mrb[46].mxu1 %v486_v20  ;;  %v495_v61 = vld [vmem:[%s7979_s29 + $0x1b8] sm:$0xff]  ;;  %v208_v20 = vld [vmem:[#allocation3 + $0x1c8] sm:$0xff] }
  0xfb   :  { %399 = vmatprep.mubr.f32.mxu0 %v200_v19  ;;  %688 = vmatprep.mubr.f32.mxu1 %v489_v23  ;;  %v205_v19 = vld [vmem:[#allocation3 + $0x1b0] sm:$0xff] }
  0xfc   :  { %v494_v23 = vld [vmem:[%s7979_s29 + $0x1b0] sm:$0xff] }
  0xfe   :  { %400 = vmatmul.mubr.f32.gmra.mrb[48].mxu0 %v199_v27  ;;  %689 = vmatmul.mubr.f32.gmra.mrb[48].mxu1 %v488_v33  ;;  %v497_v27 = vld [vmem:[%s7979_s29 + $0x1c8] sm:$0xff]  ;;  %v210_v33 = vld [vmem:[#allocation3 + $0x1d8] sm:$0xff] }
  0xff   :  { %404 = vmatprep.mubr.f32.mxu0 %v202_v30  ;;  %693 = vmatprep.mubr.f32.mxu1 %v491_v36  ;;  %v207_v30 = vld [vmem:[#allocation3 + $0x1c0] sm:$0xff] }
 0x100   :  { %v496_v36 = vld [vmem:[%s7979_s29 + $0x1c0] sm:$0xff] }
 0x102   :  { %405 = vmatmul.mubr.f32.gmra.mrb[50].mxu0 %v201_v37  ;;  %694 = vmatmul.mubr.f32.gmra.mrb[50].mxu1 %v490_v43  ;;  %v499_v37 = vld [vmem:[%s7979_s29 + $0x1d8] sm:$0xff]  ;;  %v212_v43 = vld [vmem:[#allocation3 + $0x1e8] sm:$0xff] }
 0x103   :  { %409 = vmatprep.mubr.f32.mxu0 %v204_v40  ;;  %698 = vmatprep.mubr.f32.mxu1 %v493_v49  ;;  %v209_v40 = vld [vmem:[#allocation3 + $0x1d0] sm:$0xff] }
 0x104   :  { %v498_v49 = vld [vmem:[%s7979_s29 + $0x1d0] sm:$0xff] }
 0x106   :  { %410 = vmatmul.mubr.f32.gmra.mrb[52].mxu0 %v203_v52  ;;  %699 = vmatmul.mubr.f32.gmra.mrb[52].mxu1 %v492_v58  ;;  %v501_v52 = vld [vmem:[%s7979_s29 + $0x1e8] sm:$0xff]  ;;  %v214_v58 = vld [vmem:[#allocation3 + $0x1f8] sm:$0xff] }
 0x107   :  { %414 = vmatprep.mubr.f32.mxu0 %v206_v55  ;;  %703 = vmatprep.mubr.f32.mxu1 %v495_v61  ;;  %v211_v55 = vld [vmem:[#allocation3 + $0x1e0] sm:$0xff] }
 0x108   :  { %v500_v61 = vld [vmem:[%s7979_s29 + $0x1e0] sm:$0xff] }
 0x10a   :  { %415 = vmatmul.mubr.f32.gmra.mrb[54].mxu0 %v205_v19  ;;  %704 = vmatmul.mubr.f32.gmra.mrb[54].mxu1 %v494_v23  ;;  %v503_v19 = vld [vmem:[%s7979_s29 + $0x1f8] sm:$0xff]  ;;  %v502_v23 = vld [vmem:[%s7979_s29 + $0x1f0] sm:$0xff] }
 0x10b   :  { %419 = vmatprep.mubr.f32.mxu0 %v208_v20  ;;  %708 = vmatprep.mubr.f32.mxu1 %v497_v27  ;;  %v213_v20 = vld [vmem:[#allocation3 + $0x1f0] sm:$0xff] }
 0x10e   :  { %420 = vmatmul.mubr.f32.gmra.mrb[56].mxu0 %v207_v30  ;;  %709 = vmatmul.mubr.f32.gmra.mrb[56].mxu1 %v496_v36 }
 0x10f   :  { %424 = vmatprep.mubr.f32.mxu0 %v210_v33  ;;  %713 = vmatprep.mubr.f32.mxu1 %v499_v37 }
 0x112   :  { %425 = vmatmul.mubr.f32.gmra.mrb[58].mxu0 %v209_v40  ;;  %714 = vmatmul.mubr.f32.gmra.mrb[58].mxu1 %v498_v49 }
 0x113   :  { %429 = vmatprep.mubr.f32.mxu0 %v212_v43  ;;  %718 = vmatprep.mubr.f32.mxu1 %v501_v52 }
 0x116   :  { %430 = vmatmul.mubr.f32.gmra.mrb[60].mxu0 %v211_v55  ;;  %719 = vmatmul.mubr.f32.gmra.mrb[60].mxu1 %v500_v61 }
 0x117   :  { %434 = vmatprep.mubr.f32.mxu0 %v214_v58  ;;  %723 = vmatprep.mubr.f32.mxu1 %v503_v19 }
 0x11a   :  { %435 = vmatmul.mubr.f32.gmra.mrb[62].mxu0 %v213_v20  ;;  %724 = vmatmul.mubr.f32.gmra.mrb[62].mxu1 %v502_v23 }
 0x11b   :  { %5105 = vmatprep.mubr.msk.f32.mxu0 %vm732_vm1, %v6586_v15  ;;  %1875 = vmatprep.mubr.f32.mxu1 %v6633_v26  ;;  %v4519_v15 = vld [vmem:[%s7980_s16 + $0x8] sm:$0xf] }
 0x11e   :  { %5106 = vmatmul.mubr.msk.f32.vlgmr.msra.gmra.mrb[64].mxu0 %vm732_vm1, %v6591_v16 }
 0x11f   :  { %5108 = vmatprep.mubr.msk.f32.mxu0 %vm732_vm1, %v6596_v17  ;;  %5154 = vmatpush3.msk.msra.mxu0 %vm829_vm0, %v6952_v46 }
 0x120   :  { %5203 = vmatprep.subr.msk.mxu0 %vm829_vm0, %v4519_v15 }
 0x122   :  { %5109 = vmatmul.mubr.msk.f32.gmra.mrb[66].mxu0 %vm732_vm1, %v6601_v18 }
 0x123   :  { %5111 = vmatprep.mubr.msk.f32.mxu0 %vm732_vm1, %v6611_v21 }
 0x126   :  { %5112 = vmatmul.mubr.msk.f32.gmra.mrb[68].mxu0 %vm732_vm1, %v6616_v22 }
 0x127   :  { %5114 = vmatprep.mubr.msk.f32.mxu0 %vm732_vm1, %v6625_v24 }
 0x12a   :  { %5115 = vmatmul.mubr.msk.f32.gmra.mrb[70].mxu0 %vm732_vm1, %v6630_v25 }
 0x12b   :  { %5117 = vmatprep.mubr.msk.f32.mxu0 %vm732_vm1, %v6642_v28 }
 0x12e   :  { %5118 = vmatmul.mubr.msk.f32.gmra.mrb[72].mxu0 %vm732_vm1, %v6647_v29 }
 0x12f   :  { %5120 = vmatprep.mubr.msk.f32.mxu0 %vm732_vm1, %v6656_v31 }
 0x132   :  { %5121 = vmatmul.mubr.msk.f32.gmra.mrb[74].mxu0 %vm732_vm1, %v6661_v32 }
 0x133   :  { %5123 = vmatprep.mubr.msk.f32.mxu0 %vm732_vm1, %v6670_v34 }
 0x136   :  { %5124 = vmatmul.mubr.msk.f32.gmra.mrb[76].mxu0 %vm732_vm1, %v6675_v35 }
 0x137   :  { %5126 = vmatprep.mubr.msk.f32.mxu0 %vm732_vm1, %v6687_v38 }
 0x13a   :  { %5127 = vmatmul.mubr.msk.f32.gmra.mrb[78].mxu0 %vm732_vm1, %v6692_v39 }
 0x13b   :  { %5129 = vmatprep.mubr.msk.f32.mxu0 %vm732_vm1, %v6701_v41 }
 0x13e   :  { %5130 = vmatmul.mubr.msk.f32.gmra.mrb[80].mxu0 %vm732_vm1, %v6706_v42 }
 0x13f   :  { %5132 = vmatprep.mubr.msk.f32.mxu0 %vm732_vm1, %v6715_v44 }
 0x142   :  { %5133 = vmatmul.mubr.msk.f32.gmra.mrb[82].mxu0 %vm732_vm1, %v6720_v45 }
 0x143   :  { %5135 = vmatprep.mubr.msk.f32.mxu0 %vm732_vm1, %v6729_v47 }
 0x146   :  { %5136 = vmatmul.mubr.msk.f32.gmra.mrb[84].mxu0 %vm732_vm1, %v6734_v48 }
 0x147   :  { %5138 = vmatprep.mubr.msk.f32.mxu0 %vm732_vm1, %v6743_v50 }
 0x14a   :  { %5139 = vmatmul.mubr.msk.f32.gmra.mrb[86].mxu0 %vm732_vm1, %v6748_v51 }
 0x14b   :  { %5141 = vmatprep.mubr.msk.f32.mxu0 %vm732_vm1, %v6757_v53 }
 0x14e   :  { %5142 = vmatmul.mubr.msk.f32.gmra.mrb[88].mxu0 %vm732_vm1, %v6762_v54 }
 0x14f   :  { %5144 = vmatprep.mubr.msk.f32.mxu0 %vm732_vm1, %v6771_v56 }
 0x152   :  { %5145 = vmatmul.mubr.msk.f32.gmra.mrb[90].mxu0 %vm732_vm1, %v6776_v57 }
 0x153   :  { %5147 = vmatprep.mubr.msk.f32.mxu0 %vm732_vm1, %v6785_v59 }
 0x156   :  { %5148 = vmatmul.mubr.msk.f32.gmra.mrb[92].mxu0 %vm732_vm1, %v6790_v60 }
 0x157   :  { %5150 = vmatprep.mubr.msk.f32.mxu0 %vm732_vm1, %v6799_v62 }
 0x15a   :  { %5151 = vmatmul.mubr.msk.f32.gmra.mrb[94].mxu0 %vm732_vm1, %v6804_v63 }
 0x171   :  { %v281_v16 = vpop.f32.mrb[0].mxu0  ;;  %v7085_v18 = vpop.f32.mrb[0].mxu1 }
 0x172   :  { %v283_v17 = vpop.f32.mrb[1].mxu0  ;;  %5155 = vmatprep.mubr.msk.f32.mxu0 %vm732_vm1, %v281_v16  ;;  %v572_v21 = vpop.f32.mrb[1].mxu1 }
 0x175   :  { %v286_v22 = vpop.f32.mrb[2].mxu0  ;;  %v7088_v25 = vpop.f32.mrb[2].mxu1 }
 0x176   :  { %v288_v24 = vpop.f32.mrb[3].mxu0  ;;  %5156 = vmatmul.mubr.msk.f32.vlgmr.msra.gmra.mrb[64].mxu0 %vm732_vm1, %v286_v22  ;;  %v577_v26 = vpop.f32.mrb[3].mxu1 }
 0x177   :  { %5204 = vmatpush3.msk.msra.mxu0 %vm829_vm0, %v4519_v15 }
 0x179   :  { %v291_v28 = vpop.f32.mrb[4].mxu0  ;;  %v7092_v31 = vpop.f32.mrb[4].mxu1 }
 0x17a   :  { %v293_v29 = vpop.f32.mrb[5].mxu0  ;;  %5158 = vmatprep.mubr.msk.f32.mxu0 %vm732_vm1, %v291_v28  ;;  %v582_v32 = vpop.f32.mrb[5].mxu1 }
 0x17d   :  { %v296_v34 = vpop.f32.mrb[6].mxu0  ;;  %v7095_v38 = vpop.f32.mrb[6].mxu1 }
 0x17e   :  { %v298_v35 = vpop.f32.mrb[7].mxu0  ;;  %5159 = vmatmul.mubr.msk.f32.gmra.mrb[66].mxu0 %vm732_vm1, %v296_v34  ;;  %v587_v39 = vpop.f32.mrb[7].mxu1 }
 0x181   :  { %v301_v41 = vpop.f32.mrb[8].mxu0  ;;  %v7098_v44 = vpop.f32.mrb[8].mxu1 }
 0x182   :  { %v303_v42 = vpop.f32.mrb[9].mxu0  ;;  %5161 = vmatprep.mubr.msk.f32.mxu0 %vm732_vm1, %v301_v41  ;;  %v592_v45 = vpop.f32.mrb[9].mxu1 }
 0x183   :  { %v4554_v45 = vld [vmem:[%s7952_s5 + $0x20] sm:$0xff] }
 0x185   :  { %v306_v47 = vpop.f32.mrb[10].mxu0  ;;  %v7101_v50 = vpop.f32.mrb[10].mxu1 }
 0x186   :  { %v308_v48 = vpop.f32.mrb[11].mxu0  ;;  %5162 = vmatmul.mubr.msk.f32.gmra.mrb[68].mxu0 %vm732_vm1, %v306_v47  ;;  %v597_v51 = vpop.f32.mrb[11].mxu1  ;;  %v4555_v47 = vld [vmem:[%s7952_s5 + $0x28] sm:$0xff] }
 0x187   :  { %v7139_v51 = vpack.c.bf16 %v4555_v47, %v4554_v45 }
 0x189   :  { %v311_v53 = vpop.f32.mrb[12].mxu0  ;;  %v7104_v56 = vpop.f32.mrb[12].mxu1  ;;  %5709 = vmatprep.subr.bf16.mxu0 %v7139_v51 }
 0x18a   :  { %v313_v54 = vpop.f32.mrb[13].mxu0  ;;  %5164 = vmatprep.mubr.msk.f32.mxu0 %vm732_vm1, %v311_v53  ;;  %v602_v57 = vpop.f32.mrb[13].mxu1 }
 0x18d   :  { %v316_v59 = vpop.f32.mrb[14].mxu0  ;;  %v7107_v62 = vpop.f32.mrb[14].mxu1 }
 0x18e   :  { %v318_v60 = vpop.f32.mrb[15].mxu0  ;;  %5165 = vmatmul.mubr.msk.f32.gmra.mrb[70].mxu0 %vm732_vm1, %v316_v59  ;;  %v607_v63 = vpop.f32.mrb[15].mxu1 }
 0x191   :  { %v321_v46 = vpop.f32.mrb[16].mxu0  ;;  %v7110_v30 = vpop.f32.mrb[16].mxu1 }
 0x192   :  { %v323_v27 = vpop.f32.mrb[17].mxu0  ;;  %5167 = vmatprep.mubr.msk.f32.mxu0 %vm732_vm1, %v321_v46  ;;  %v612_v33 = vpop.f32.mrb[17].mxu1 }
 0x195   :  { %v326_v36 = vpop.f32.mrb[18].mxu0  ;;  %v7113_v40 = vpop.f32.mrb[18].mxu1 }
 0x196   :  { %v328_v37 = vpop.f32.mrb[19].mxu0  ;;  %5168 = vmatmul.mubr.msk.f32.gmra.mrb[72].mxu0 %vm732_vm1, %v326_v36  ;;  %v617_v43 = vpop.f32.mrb[19].mxu1 }
 0x199   :  { %v331_v49 = vpop.f32.mrb[20].mxu0  ;;  %v7116_v55 = vpop.f32.mrb[20].mxu1 }
 0x19a   :  { %v333_v52 = vpop.f32.mrb[21].mxu0  ;;  %5170 = vmatprep.mubr.msk.f32.mxu0 %vm732_vm1, %v331_v49  ;;  %v622_v58 = vpop.f32.mrb[21].mxu1 }
 0x19d   :  { %v336_v61 = vpop.f32.mrb[22].mxu0  ;;  %v7119_v20 = vpop.f32.mrb[22].mxu1 }
 0x19e   :  { %v338_v19 = vpop.f32.mrb[23].mxu0  ;;  %5171 = vmatmul.mubr.msk.f32.gmra.mrb[74].mxu0 %vm732_vm1, %v336_v61  ;;  %v627_v23 = vpop.f32.mrb[23].mxu1 }
 0x1a1   :  { %v341_v15 = vpop.f32.mrb[24].mxu0  ;;  %v7122_v17 = vpop.f32.mrb[24].mxu1 }
 0x1a2   :  { %v343_v16 = vpop.f32.mrb[25].mxu0  ;;  %5173 = vmatprep.mubr.msk.f32.mxu0 %vm732_vm1, %v341_v15  ;;  %v632_v21 = vpop.f32.mrb[25].mxu1 }
 0x1a5   :  { %v346_v22 = vpop.f32.mrb[26].mxu0  ;;  %v7125_v26 = vpop.f32.mrb[26].mxu1 }
 0x1a6   :  { %v348_v24 = vpop.f32.mrb[27].mxu0  ;;  %5174 = vmatmul.mubr.msk.f32.gmra.mrb[76].mxu0 %vm732_vm1, %v346_v22  ;;  %v637_v28 = vpop.f32.mrb[27].mxu1 }
 0x1a9   :  { %v351_v29 = vpop.f32.mrb[28].mxu0  ;;  %v7128_v34 = vpop.f32.mrb[28].mxu1 }
 0x1aa   :  { %v353_v32 = vpop.f32.mrb[29].mxu0  ;;  %5176 = vmatprep.mubr.msk.f32.mxu0 %vm732_vm1, %v351_v29  ;;  %v642_v35 = vpop.f32.mrb[29].mxu1 }
 0x1ad   :  { %v356_v39 = vpop.f32.mrb[30].mxu0  ;;  %v7131_v42 = vpop.f32.mrb[30].mxu1 }
 0x1ae   :  { %v358_v41 = vpop.f32.mrb[31].mxu0  ;;  %5177 = vmatmul.mubr.msk.f32.gmra.mrb[78].mxu0 %vm732_vm1, %v356_v39  ;;  %v647_v48 = vpop.f32.mrb[31].mxu1 }
 0x1b1   :  { %v361_v53 = vpop.f32.mrb[32].mxu0  ;;  %v7143_v57 = vpop.f32.mrb[32].mxu1 }
 0x1b2   :  { %v363_v54 = vpop.f32.mrb[33].mxu0  ;;  %5179 = vmatprep.mubr.msk.f32.mxu0 %vm732_vm1, %v361_v53  ;;  %v652_v59 = vpop.f32.mrb[33].mxu1 }
 0x1b5   :  { %v366_v60 = vpop.f32.mrb[34].mxu0  ;;  %v7146_v46 = vpop.f32.mrb[34].mxu1 }
 0x1b6   :  { %v368_v63 = vpop.f32.mrb[35].mxu0  ;;  %5180 = vmatmul.mubr.msk.f32.gmra.mrb[80].mxu0 %vm732_vm1, %v366_v60  ;;  %v657_v27 = vpop.f32.mrb[35].mxu1 }
 0x1b9   :  { %v371_v33 = vpop.f32.mrb[36].mxu0  ;;  %v7149_v37 = vpop.f32.mrb[36].mxu1 }
 0x1ba   :  { %v373_v36 = vpop.f32.mrb[37].mxu0  ;;  %5182 = vmatprep.mubr.msk.f32.mxu0 %vm732_vm1, %v371_v33  ;;  %v662_v43 = vpop.f32.mrb[37].mxu1 }
 0x1bd   :  { %v376_v49 = vpop.f32.mrb[38].mxu0  ;;  %v7152_v58 = vpop.f32.mrb[38].mxu1 }
 0x1be   :  { %v378_v52 = vpop.f32.mrb[39].mxu0  ;;  %5183 = vmatmul.mubr.msk.f32.gmra.mrb[82].mxu0 %vm732_vm1, %v376_v49  ;;  %v667_v61 = vpop.f32.mrb[39].mxu1 }
 0x1c1   :  { %v381_v19 = vpop.f32.mrb[40].mxu0  ;;  %v7155_v15 = vpop.f32.mrb[40].mxu1 }
 0x1c2   :  { %v383_v23 = vpop.f32.mrb[41].mxu0  ;;  %5185 = vmatprep.mubr.msk.f32.mxu0 %vm732_vm1, %v381_v19  ;;  %v672_v16 = vpop.f32.mrb[41].mxu1 }
 0x1c5   :  { %v386_v21 = vpop.f32.mrb[42].mxu0  ;;  %v7158_v24 = vpop.f32.mrb[42].mxu1 }
 0x1c6   :  { %v388_v22 = vpop.f32.mrb[43].mxu0  ;;  %5186 = vmatmul.mubr.msk.f32.gmra.mrb[84].mxu0 %vm732_vm1, %v386_v21  ;;  %v677_v28 = vpop.f32.mrb[43].mxu1 }
 0x1c9   :  { %v391_v29 = vpop.f32.mrb[44].mxu0  ;;  %v7161_v35 = vpop.f32.mrb[44].mxu1 }
 0x1ca   :  { %v393_v32 = vpop.f32.mrb[45].mxu0  ;;  %5188 = vmatprep.mubr.msk.f32.mxu0 %vm732_vm1, %v391_v29  ;;  %v682_v39 = vpop.f32.mrb[45].mxu1 }
 0x1cd   :  { %v396_v41 = vpop.f32.mrb[46].mxu0  ;;  %v7164_v47 = vpop.f32.mrb[46].mxu1 }
 0x1ce   :  { %v398_v45 = vpop.f32.mrb[47].mxu0  ;;  %5189 = vmatmul.mubr.msk.f32.gmra.mrb[86].mxu0 %vm732_vm1, %v396_v41  ;;  %v687_v48 = vpop.f32.mrb[47].mxu1 }
 0x1d1   :  { %v401_v53 = vpop.f32.mrb[48].mxu0  ;;  %v690_v59 = vpop.f32.mrb[48].mxu1 }
 0x1d2   :  { %v403_v54 = vpop.f32.mrb[49].mxu0  ;;  %5191 = vmatprep.mubr.msk.f32.mxu0 %vm732_vm1, %v401_v53  ;;  %v692_v60 = vpop.f32.mrb[49].mxu1 }
 0x1d5   :  { %v406_v63 = vpop.f32.mrb[50].mxu0  ;;  %v695_v33 = vpop.f32.mrb[50].mxu1 }
 0x1d6   :  { %v408_v27 = vpop.f32.mrb[51].mxu0  ;;  %5192 = vmatmul.mubr.msk.f32.gmra.mrb[88].mxu0 %vm732_vm1, %v406_v63  ;;  %v697_v36 = vpop.f32.mrb[51].mxu1 }
 0x1d9   :  { %v411_v43 = vpop.f32.mrb[52].mxu0  ;;  %v700_v52 = vpop.f32.mrb[52].mxu1 }
 0x1da   :  { %v413_v49 = vpop.f32.mrb[53].mxu0  ;;  %5194 = vmatprep.mubr.msk.f32.mxu0 %vm732_vm1, %v411_v43  ;;  %v702_v61 = vpop.f32.mrb[53].mxu1 }
 0x1dd   :  { %v416_v19 = vpop.f32.mrb[54].mxu0  ;;  %v705_v16 = vpop.f32.mrb[54].mxu1 }
 0x1de   :  { %v418_v23 = vpop.f32.mrb[55].mxu0  ;;  %5195 = vmatmul.mubr.msk.f32.gmra.mrb[90].mxu0 %vm732_vm1, %v416_v19  ;;  %v707_v21 = vpop.f32.mrb[55].mxu1 }
 0x1e1   :  { %v421_v22 = vpop.f32.mrb[56].mxu0  ;;  %v710_v29 = vpop.f32.mrb[56].mxu1 }
 0x1e2   :  { %v423_v28 = vpop.f32.mrb[57].mxu0  ;;  %5197 = vmatprep.mubr.msk.f32.mxu0 %vm732_vm1, %v421_v22  ;;  %v712_v32 = vpop.f32.mrb[57].mxu1 }
 0x1e5   :  { %v426_v39 = vpop.f32.mrb[58].mxu0  ;;  %v715_v45 = vpop.f32.mrb[58].mxu1 }
 0x1e6   :  { %v428_v41 = vpop.f32.mrb[59].mxu0  ;;  %5198 = vmatmul.mubr.msk.f32.gmra.mrb[92].mxu0 %vm732_vm1, %v426_v39  ;;  %v717_v48 = vpop.f32.mrb[59].mxu1 }
 0x1e9   :  { %v431_v53 = vpop.f32.mrb[60].mxu0  ;;  %v720_v60 = vpop.f32.mrb[60].mxu1 }
 0x1ea   :  { %v433_v54 = vpop.f32.mrb[61].mxu0  ;;  %5200 = vmatprep.mubr.msk.f32.mxu0 %vm732_vm1, %v431_v53  ;;  %v722_v63 = vpop.f32.mrb[61].mxu1 }
 0x1ed   :  { %v436_v27 = vpop.f32.mrb[62].mxu0  ;;  %v725_v43 = vpop.f32.mrb[62].mxu1 }
 0x1ee   :  { %v438_v36 = vpop.f32.mrb[63].mxu0  ;;  %5201 = vmatmul.mubr.msk.f32.gmra.mrb[94].mxu0 %vm732_vm1, %v436_v27  ;;  %v727_v49 = vpop.f32.mrb[63].mxu1 }
 0x1ef   :  { %5205 = vmatprep.mubr.msk.f32.mxu0 %vm732_vm1, %v7085_v18  ;;  %v4556_v18 = vld [vmem:[%s7952_s5 + $0x30] sm:$0xff] }
 0x1f2   :  { %5206 = vmatmul.mubr.msk.f32.vlgmr.msra.gmra.mrb[64].mxu0 %vm732_vm1, %v7088_v25  ;;  %v4557_v25 = vld [vmem:[%s7952_s5 + $0x38] sm:$0xff] }
 0x1f3   :  { %5208 = vmatprep.mubr.msk.f32.mxu0 %vm732_vm1, %v7092_v31  ;;  %5711 = vmatpush3.bf16.msra.mxu0 %v7139_v51  ;;  %v5712_v31 = vpack.c.bf16 %v4557_v25, %v4556_v18 }
 0x1f5   :  { %5713 = vmatprep.subr.bf16.mxu0 %v5712_v31 }
 0x1f6   :  { %5209 = vmatmul.mubr.msk.f32.gmra.mrb[66].mxu0 %vm732_vm1, %v7095_v38  ;;  %v7240_v38 = vld [vmem:[%s7951_s4] ss:$0 sm:$0xff] }
 0x1f7   :  { %5211 = vmatprep.mubr.msk.f32.mxu0 %vm732_vm1, %v7098_v44  ;;  %5715 = vmatpush3.bf16.msra.mxu0 %v5712_v31 }
 0x1fa   :  { %5212 = vmatmul.mubr.msk.f32.gmra.mrb[68].mxu0 %vm732_vm1, %v7101_v50 }
 0x1fb   :  { %5214 = vmatprep.mubr.msk.f32.mxu0 %vm732_vm1, %v7104_v56 }
 0x1fe   :  { %5215 = vmatmul.mubr.msk.f32.gmra.mrb[70].mxu0 %vm732_vm1, %v7107_v62 }
 0x1ff   :  { %5217 = vmatprep.mubr.msk.f32.mxu0 %vm732_vm1, %v7110_v30 }
 0x202   :  { %5218 = vmatmul.mubr.msk.f32.gmra.mrb[72].mxu0 %vm732_vm1, %v7113_v40 }
 0x203   :  { %5220 = vmatprep.mubr.msk.f32.mxu0 %vm732_vm1, %v7116_v55 }
 0x206   :  { %5221 = vmatmul.mubr.msk.f32.gmra.mrb[74].mxu0 %vm732_vm1, %v7119_v20 }
 0x207   :  { %5223 = vmatprep.mubr.msk.f32.mxu0 %vm732_vm1, %v7122_v17 }
 0x20a   :  { %5224 = vmatmul.mubr.msk.f32.gmra.mrb[76].mxu0 %vm732_vm1, %v7125_v26 }
 0x20b   :  { %5226 = vmatprep.mubr.msk.f32.mxu0 %vm732_vm1, %v7128_v34 }
 0x20e   :  { %5227 = vmatmul.mubr.msk.f32.gmra.mrb[78].mxu0 %vm732_vm1, %v7131_v42 }
 0x20f   :  { %5229 = vmatprep.mubr.msk.f32.mxu0 %vm732_vm1, %v7143_v57 }
 0x212   :  { %5230 = vmatmul.mubr.msk.f32.gmra.mrb[80].mxu0 %vm732_vm1, %v7146_v46 }
 0x213   :  { %5232 = vmatprep.mubr.msk.f32.mxu0 %vm732_vm1, %v7149_v37 }
 0x216   :  { %5233 = vmatmul.mubr.msk.f32.gmra.mrb[82].mxu0 %vm732_vm1, %v7152_v58 }
 0x217   :  { %5235 = vmatprep.mubr.msk.f32.mxu0 %vm732_vm1, %v7155_v15 }
 0x21a   :  { %5236 = vmatmul.mubr.msk.f32.gmra.mrb[84].mxu0 %vm732_vm1, %v7158_v24 }
 0x21b   :  { %5238 = vmatprep.mubr.msk.f32.mxu0 %vm732_vm1, %v7161_v35 }
 0x21e   :  { %5239 = vmatmul.mubr.msk.f32.gmra.mrb[86].mxu0 %vm732_vm1, %v7164_v47 }
 0x21f   :  { %5241 = vmatprep.mubr.msk.f32.mxu0 %vm732_vm1, %v690_v59 }
 0x222   :  { %5242 = vmatmul.mubr.msk.f32.gmra.mrb[88].mxu0 %vm732_vm1, %v695_v33 }
 0x223   :  { %5244 = vmatprep.mubr.msk.f32.mxu0 %vm732_vm1, %v700_v52 }
 0x226   :  { %5245 = vmatmul.mubr.msk.f32.gmra.mrb[90].mxu0 %vm732_vm1, %v705_v16 }
 0x227   :  { %5247 = vmatprep.mubr.msk.f32.mxu0 %vm732_vm1, %v710_v29 }
 0x22a   :  { %5248 = vmatmul.mubr.msk.f32.gmra.mrb[92].mxu0 %vm732_vm1, %v715_v45 }
 0x22b   :  { %5250 = vmatprep.mubr.msk.f32.mxu0 %vm732_vm1, %v720_v60 }
 0x22e   :  { %5251 = vmatmul.mubr.msk.f32.gmra.mrb[94].mxu0 %vm732_vm1, %v725_v43 }
 0x2c5   :  { %v5207_v44 = vpop.f32.mrb[64].mxu0 }
 0x2c6   :  { %v1747_v50 = vadd.f32 %v5207_v44, %v7240_v38  ;;  %v1549_v56 = vpop.f32.mrb[65].mxu0 }
 0x2c7   :  { %v1746_v62 = vadd.f32 %v7240_v38, %v1549_v56 }
 0x2c8   :  { %v1779_v30 = vmax.f32 %v1747_v50, 0.0 }
 0x2c9   :  { %v1778_v40 = vmax.f32 %v1746_v62, 0.0  ;;  %v5210_v55 = vpop.f32.mrb[66].mxu0 }
 0x2ca   :  { %v1749_v20 = vadd.f32 %v5210_v55, %v7240_v38  ;;  %v1559_v17 = vpop.f32.mrb[67].mxu0 }
 0x2cb   :  { %v7245_v26 = vpack.c.bf16 %v1779_v30, %v1778_v40  ;;  %v1748_v34 = vadd.f32 %v7240_v38, %v1559_v17  ;;  %5261 = vmatprep.mubr.msk.f32.mxu0 %vm2270_vm2, %v1778_v40 }
 0x2cc   :  { %v1781_v42 = vmax.f32 %v1749_v20, 0.0  ;;  %5262 = vmatmul.mubr.msk.f32.vlgmr.msra.gmra.mrb[96].mxu0 %vm2270_vm2, %v1779_v30 }
 0x2cd   :  { %v1780_v51 = vmax.f32 %v1748_v34, 0.0  ;;  %v5213_v57 = vpop.f32.mrb[68].mxu0  ;;  %5614 = vmatpush1.bf16.msra.mxu1 %v7245_v26 }
 0x2ce   :  { %v1751_v46 = vadd.f32 %v5213_v57, %v7240_v38  ;;  %v1569_v37 = vpop.f32.mrb[69].mxu0  ;;  %5615 = vmatprep.subr.bf16.mxu1 %v6342_v0 }
 0x2cf   :  { %v7253_v58 = vpack.c.bf16 %v1781_v42, %v1780_v51  ;;  %v1750_v15 = vadd.f32 %v7240_v38, %v1569_v37  ;;  %5264 = vmatprep.mubr.msk.f32.mxu0 %vm2270_vm2, %v1780_v51 }
 0x2d0   :  { %v1783_v24 = vmax.f32 %v1751_v46, 0.0  ;;  %5265 = vmatmul.mubr.msk.f32.gmra.mrb[98].mxu0 %vm2270_vm2, %v1781_v42 }
 0x2d1   :  { %v1782_v35 = vmax.f32 %v1750_v15, 0.0  ;;  %v5216_v47 = vpop.f32.mrb[70].mxu0  ;;  %5617 = vmatpush1.bf16.msra.mxu1 %v7253_v58 }
 0x2d2   :  { %v1753_v59 = vadd.f32 %v5216_v47, %v7240_v38  ;;  %v1579_v33 = vpop.f32.mrb[71].mxu0  ;;  %5618 = vmatprep.subr.bf16.mxu1 %v6342_v0 }
 0x2d3   :  { %v7261_v52 = vpack.c.bf16 %v1783_v24, %v1782_v35  ;;  %v1752_v61 = vadd.f32 %v7240_v38, %v1579_v33  ;;  %5267 = vmatprep.mubr.msk.f32.mxu0 %vm2270_vm2, %v1782_v35 }
 0x2d4   :  { %v1785_v19 = vmax.f32 %v1753_v59, 0.0  ;;  %5268 = vmatmul.mubr.msk.f32.gmra.mrb[100].mxu0 %vm2270_vm2, %v1783_v24 }
 0x2d5   :  { %v1784_v23 = vmax.f32 %v1752_v61, 0.0  ;;  %v5219_v16 = vpop.f32.mrb[72].mxu0  ;;  %5620 = vmatpush1.bf16.msra.mxu1 %v7261_v52 }
 0x2d6   :  { %v1755_v21 = vadd.f32 %v5219_v16, %v7240_v38  ;;  %v1589_v22 = vpop.f32.mrb[73].mxu0  ;;  %5621 = vmatprep.subr.bf16.mxu1 %v6342_v0 }
 0x2d7   :  { %v7269_v28 = vpack.c.bf16 %v1785_v19, %v1784_v23  ;;  %v1754_v29 = vadd.f32 %v7240_v38, %v1589_v22  ;;  %5270 = vmatprep.mubr.msk.f32.mxu0 %vm2270_vm2, %v1784_v23 }
 0x2d8   :  { %v1787_v32 = vmax.f32 %v1755_v21, 0.0  ;;  %5271 = vmatmul.mubr.msk.f32.gmra.mrb[102].mxu0 %vm2270_vm2, %v1785_v19 }
 0x2d9   :  { %v1786_v39 = vmax.f32 %v1754_v29, 0.0  ;;  %v5222_v41 = vpop.f32.mrb[74].mxu0  ;;  %5623 = vmatpush1.bf16.msra.mxu1 %v7269_v28 }
 0x2da   :  { %v1757_v45 = vadd.f32 %v5222_v41, %v7240_v38  ;;  %v1599_v48 = vpop.f32.mrb[75].mxu0  ;;  %5624 = vmatprep.subr.bf16.mxu1 %v6342_v0 }
 0x2db   :  { %v7277_v53 = vpack.c.bf16 %v1787_v32, %v1786_v39  ;;  %v1756_v54 = vadd.f32 %v7240_v38, %v1599_v48  ;;  %5273 = vmatprep.mubr.msk.f32.mxu0 %vm2270_vm2, %v1786_v39 }
 0x2dc   :  { %v1789_v60 = vmax.f32 %v1757_v45, 0.0  ;;  %5274 = vmatmul.mubr.msk.f32.gmra.mrb[104].mxu0 %vm2270_vm2, %v1787_v32 }
 0x2dd   :  { %v1788_v63 = vmax.f32 %v1756_v54, 0.0  ;;  %v5225_v27 = vpop.f32.mrb[76].mxu0  ;;  %5626 = vmatpush1.bf16.msra.mxu1 %v7277_v53 }
 0x2de   :  { %v1759_v36 = vadd.f32 %v5225_v27, %v7240_v38  ;;  %v1609_v43 = vpop.f32.mrb[77].mxu0  ;;  %5627 = vmatprep.subr.bf16.mxu1 %v6342_v0 }
 0x2df   :  { %v7285_v49 = vpack.c.bf16 %v1789_v60, %v1788_v63  ;;  %v1758_v18 = vadd.f32 %v7240_v38, %v1609_v43  ;;  %5276 = vmatprep.mubr.msk.f32.mxu0 %vm2270_vm2, %v1788_v63 }
 0x2e0   :  { %v1791_v25 = vmax.f32 %v1759_v36, 0.0  ;;  %5277 = vmatmul.mubr.msk.f32.gmra.mrb[106].mxu0 %vm2270_vm2, %v1789_v60 }
 0x2e1   :  { %v1790_v31 = vmax.f32 %v1758_v18, 0.0  ;;  %v5228_v44 = vpop.f32.mrb[78].mxu0  ;;  %5629 = vmatpush1.bf16.msra.mxu1 %v7285_v49 }
 0x2e2   :  { %v1761_v50 = vadd.f32 %v5228_v44, %v7240_v38  ;;  %v1619_v56 = vpop.f32.mrb[79].mxu0  ;;  %5630 = vmatprep.subr.bf16.mxu1 %v6342_v0 }
 0x2e3   :  { %v7293_v62 = vpack.c.bf16 %v1791_v25, %v1790_v31  ;;  %v1760_v30 = vadd.f32 %v7240_v38, %v1619_v56  ;;  %5279 = vmatprep.mubr.msk.f32.mxu0 %vm2270_vm2, %v1790_v31 }
 0x2e4   :  { %v1793_v40 = vmax.f32 %v1761_v50, 0.0  ;;  %5280 = vmatmul.mubr.msk.f32.gmra.mrb[108].mxu0 %vm2270_vm2, %v1791_v25 }
 0x2e5   :  { %v1792_v55 = vmax.f32 %v1760_v30, 0.0  ;;  %v5231_v20 = vpop.f32.mrb[80].mxu0  ;;  %5632 = vmatpush1.bf16.msra.mxu1 %v7293_v62 }
 0x2e6   :  { %v1763_v17 = vadd.f32 %v5231_v20, %v7240_v38  ;;  %v1629_v34 = vpop.f32.mrb[81].mxu0  ;;  %5633 = vmatprep.subr.bf16.mxu1 %v6342_v0 }
 0x2e7   :  { %v7301_v42 = vpack.c.bf16 %v1793_v40, %v1792_v55  ;;  %v1762_v51 = vadd.f32 %v7240_v38, %v1629_v34  ;;  %5282 = vmatprep.mubr.msk.f32.mxu0 %vm2270_vm2, %v1792_v55 }
 0x2e8   :  { %v1795_v57 = vmax.f32 %v1763_v17, 0.0  ;;  %5283 = vmatmul.mubr.msk.f32.gmra.mrb[110].mxu0 %vm2270_vm2, %v1793_v40 }
 0x2e9   :  { %v1794_v46 = vmax.f32 %v1762_v51, 0.0  ;;  %v5234_v37 = vpop.f32.mrb[82].mxu0  ;;  %5635 = vmatpush1.bf16.msra.mxu1 %v7301_v42 }
 0x2ea   :  { %v1765_v15 = vadd.f32 %v5234_v37, %v7240_v38  ;;  %v1639_v24 = vpop.f32.mrb[83].mxu0  ;;  %5636 = vmatprep.subr.bf16.mxu1 %v6342_v0 }
 0x2eb   :  { %v7309_v35 = vpack.c.bf16 %v1795_v57, %v1794_v46  ;;  %v1764_v47 = vadd.f32 %v7240_v38, %v1639_v24  ;;  %5285 = vmatprep.mubr.msk.f32.mxu0 %vm2270_vm2, %v1794_v46 }
 0x2ec   :  { %v1797_v59 = vmax.f32 %v1765_v15, 0.0  ;;  %5286 = vmatmul.mubr.msk.f32.gmra.mrb[112].mxu0 %vm2270_vm2, %v1795_v57 }
 0x2ed   :  { %v1796_v33 = vmax.f32 %v1764_v47, 0.0  ;;  %v5237_v61 = vpop.f32.mrb[84].mxu0  ;;  %5638 = vmatpush1.bf16.msra.mxu1 %v7309_v35 }
 0x2ee   :  { %v1767_v19 = vadd.f32 %v5237_v61, %v7240_v38  ;;  %v1649_v23 = vpop.f32.mrb[85].mxu0  ;;  %5639 = vmatprep.subr.bf16.mxu1 %v6342_v0 }
 0x2ef   :  { %v7317_v16 = vpack.c.bf16 %v1797_v59, %v1796_v33  ;;  %v1766_v21 = vadd.f32 %v7240_v38, %v1649_v23  ;;  %5288 = vmatprep.mubr.msk.f32.mxu0 %vm2270_vm2, %v1796_v33 }
 0x2f0   :  { %v1799_v22 = vmax.f32 %v1767_v19, 0.0  ;;  %5289 = vmatmul.mubr.msk.f32.gmra.mrb[114].mxu0 %vm2270_vm2, %v1797_v59 }
 0x2f1   :  { %v1798_v29 = vmax.f32 %v1766_v21, 0.0  ;;  %v5240_v32 = vpop.f32.mrb[86].mxu0  ;;  %5641 = vmatpush1.bf16.msra.mxu1 %v7317_v16 }
 0x2f2   :  { %v1769_v39 = vadd.f32 %v5240_v32, %v7240_v38  ;;  %v1659_v41 = vpop.f32.mrb[87].mxu0  ;;  %5642 = vmatprep.subr.bf16.mxu1 %v6342_v0  ;;  %v6036_v32 = vld [vmem:[#allocation3 + $0x28] sm:$0xff] }
 0x2f3   :  { %v7325_v45 = vpack.c.bf16 %v1799_v22, %v1798_v29  ;;  %v1768_v48 = vadd.f32 %v7240_v38, %v1659_v41  ;;  %5291 = vmatprep.mubr.msk.f32.mxu0 %vm2270_vm2, %v1798_v29  ;;  %v6035_v29 = vld [vmem:[#allocation3 + $0x10] sm:$0xff]  ;;  %v6038_v41 = vld [vmem:[#allocation3 + $0x38] sm:$0xff] }
 0x2f4   :  { %v1801_v54 = vmax.f32 %v1769_v39, 0.0  ;;  %5292 = vmatmul.mubr.msk.f32.gmra.mrb[116].mxu0 %vm2270_vm2, %v1799_v22  ;;  %v6034_v22 = vld [vmem:[#allocation3 + $0x18] sm:$0xff]  ;;  %v6037_v39 = vld [vmem:[#allocation3 + $0x20] sm:$0xff] }
 0x2f5   :  { %v1800_v60 = vmax.f32 %v1768_v48, 0.0  ;;  %v5243_v63 = vpop.f32.mrb[88].mxu0  ;;  %5644 = vmatpush1.bf16.msra.mxu1 %v7325_v45  ;;  %v6040_v48 = vld [vmem:[#allocation3 + $0x48] sm:$0xff] }
 0x2f6   :  { %v1771_v27 = vadd.f32 %v5243_v63, %v7240_v38  ;;  %v1669_v36 = vpop.f32.mrb[89].mxu0  ;;  %5645 = vmatprep.subr.bf16.mxu1 %v6342_v0  ;;  %v6046_v63 = vld [vmem:[#allocation3 + $0x78] sm:$0xff] }
 0x2f7   :  { %v7333_v43 = vpack.c.bf16 %v1801_v54, %v1800_v60  ;;  %v1770_v18 = vadd.f32 %v7240_v38, %v1669_v36  ;;  %5294 = vmatprep.mubr.msk.f32.mxu0 %vm2270_vm2, %v1800_v60  ;;  %v6044_v60 = vld [vmem:[#allocation3 + $0x68] sm:$0xff]  ;;  %v6050_v36 = vld [vmem:[#allocation3 + $0x98] sm:$0xff] }
 0x2f8   :  { %v1803_v25 = vmax.f32 %v1771_v27, 0.0  ;;  %5295 = vmatmul.mubr.msk.f32.gmra.mrb[118].mxu0 %vm2270_vm2, %v1801_v54  ;;  %v6042_v54 = vld [vmem:[#allocation3 + $0x58] sm:$0xff]  ;;  %v6048_v27 = vld [vmem:[#allocation3 + $0x88] sm:$0xff] }
 0x2f9   :  { %v1802_v31 = vmax.f32 %v1770_v18, 0.0  ;;  %v5246_v44 = vpop.f32.mrb[90].mxu0  ;;  %5647 = vmatpush1.bf16.msra.mxu1 %v7333_v43  ;;  %v6052_v18 = vld [vmem:[#allocation3 + $0xa8] sm:$0xff] }
 0x2fa   :  { %v1773_v50 = vadd.f32 %v5246_v44, %v7240_v38  ;;  %v1679_v56 = vpop.f32.mrb[91].mxu0  ;;  %5648 = vmatprep.subr.bf16.mxu1 %v6342_v0  ;;  %v6058_v44 = vld [vmem:[#allocation3 + $0xd8] sm:$0xff] }
 0x2fb   :  { %v7341_v30 = vpack.c.bf16 %v1803_v25, %v1802_v31  ;;  %v1772_v40 = vadd.f32 %v7240_v38, %v1679_v56  ;;  %5297 = vmatprep.mubr.msk.f32.mxu0 %vm2270_vm2, %v1802_v31  ;;  %v6056_v31 = vld [vmem:[#allocation3 + $0xc8] sm:$0xff]  ;;  %v6062_v56 = vld [vmem:[#allocation3 + $0xf8] sm:$0xff] }
 0x2fc   :  { %v1805_v55 = vmax.f32 %v1773_v50, 0.0  ;;  %5298 = vmatmul.mubr.msk.f32.gmra.mrb[120].mxu0 %vm2270_vm2, %v1803_v25  ;;  %v6054_v25 = vld [vmem:[#allocation3 + $0xb8] sm:$0xff]  ;;  %v6060_v50 = vld [vmem:[#allocation3 + $0xe8] sm:$0xff] }
 0x2fd   :  { %v1804_v20 = vmax.f32 %v1772_v40, 0.0  ;;  %v5249_v17 = vpop.f32.mrb[92].mxu0  ;;  %5650 = vmatpush1.bf16.msra.mxu1 %v7341_v30  ;;  %v6064_v40 = vld [vmem:[#allocation3 + $0x108] sm:$0xff] }
 0x2fe   :  { %v1775_v34 = vadd.f32 %v5249_v17, %v7240_v38  ;;  %v1689_v51 = vpop.f32.mrb[93].mxu0  ;;  %5651 = vmatprep.subr.bf16.mxu1 %v6342_v0  ;;  %v6067_v17 = vld [vmem:[#allocation3 + $0x110] sm:$0xff] }
 0x2ff   :  { %v7349_v57 = vpack.c.bf16 %v1805_v55, %v1804_v20  ;;  %v1774_v46 = vadd.f32 %v7240_v38, %v1689_v51  ;;  %5300 = vmatprep.mubr.msk.f32.mxu0 %vm2270_vm2, %v1804_v20  ;;  %v6066_v20 = vld [vmem:[#allocation3 + $0x118] sm:$0xff]  ;;  %v6069_v51 = vld [vmem:[#allocation3 + $0x120] sm:$0xff] }
 0x300   :  { %v1807_v37 = vmax.f32 %v1775_v34, 0.0  ;;  %5301 = vmatmul.mubr.msk.f32.gmra.mrb[122].mxu0 %vm2270_vm2, %v1805_v55  ;;  %v6065_v55 = vld [vmem:[#allocation3 + $0x100] sm:$0xff]  ;;  %v6068_v34 = vld [vmem:[#allocation3 + $0x128] sm:$0xff] }
 0x301   :  { %v1806_v15 = vmax.f32 %v1774_v46, 0.0  ;;  %v5252_v24 = vpop.f32.mrb[94].mxu0  ;;  %5653 = vmatpush1.bf16.msra.mxu1 %v7349_v57  ;;  %v6071_v46 = vld [vmem:[#allocation3 + $0x130] sm:$0xff] }
 0x302   :  { %v1777_v47 = vadd.f32 %v5252_v24, %v7240_v38  ;;  %v1699_v59 = vpop.f32.mrb[95].mxu0  ;;  %5654 = vmatprep.subr.bf16.mxu1 %v6342_v0  ;;  %v2262_v24 = vld [vmem:[%s7952_s5 + $0x8] sm:$0xff] }
 0x303   :  { %v7357_v33 = vpack.c.bf16 %v1807_v37, %v1806_v15  ;;  %v1776_v61 = vadd.f32 %v7240_v38, %v1699_v59  ;;  %5303 = vmatprep.mubr.msk.f32.mxu0 %vm2270_vm2, %v1806_v15  ;;  %v6033_v38 = vld [vmem:[#allocation3] sm:$0xff] }
 0x304   :  { %v1809_v19 = vmax.f32 %v1777_v47, 0.0  ;;  %5304 = vmatmul.mubr.msk.f32.gmra.mrb[124].mxu0 %vm2270_vm2, %v1807_v37  ;;  %v6072_v37 = vld [vmem:[#allocation3 + $0x148] sm:$0xff]  ;;  %v2261_v15 = vld [vmem:[%s7952_s5] sm:$0xff] }
 0x305   :  { %v1808_v23 = vmax.f32 %v1776_v61, 0.0  ;;  %5656 = vmatpush1.bf16.msra.mxu1 %v7357_v33  ;;  %v5716_v47 = vpack.c.bf16 %v2262_v24, %v2261_v15  ;;  %v6073_v59 = vld [vmem:[#allocation3 + $0x140] sm:$0xff]  ;;  %v2263_v61 = vld [vmem:[%s7952_s5 + $0x10] sm:$0xff]  ;;  %v6116_v15 = vld [vmem:[%s7979_s29 + $0xa8] sm:$0xff] }
 0x306   :  { %5657 = vmatprep.subr.bf16.mxu1 %v6342_v0  ;;  %v6117_v24 = vld [vmem:[%s7979_s29 + $0xa0] sm:$0xff] }
 0x307   :  { %v7364_v21 = vpack.c.bf16 %v1809_v19, %v1808_v23  ;;  %5306 = vmatprep.mubr.msk.f32.mxu0 %vm2270_vm2, %v1808_v23  ;;  %5717 = vmatprep.subr.bf16.mxu0 %v5716_v47 }
 0x308   :  { %5307 = vmatmul.mubr.msk.f32.gmra.mrb[126].mxu0 %vm2270_vm2, %v1809_v19  ;;  %v2264_v19 = vld [vmem:[%s7952_s5 + $0x18] sm:$0xff] }
 0x309   :  { %5659 = vmatpush1.bf16.msra.mxu1 %v7364_v21  ;;  %5719 = vmatpush3.bf16.msra.mxu0 %v5716_v47  ;;  %v5720_v23 = vpack.c.bf16 %v2264_v19, %v2263_v61  ;;  %v6118_v47 = vld [vmem:[%s7979_s29 + $0xb8] sm:$0xff]  ;;  %v6121_v61 = vld [vmem:[%s7979_s29 + $0xc0] sm:$0xff] }
 0x30a   :  { %5660 = vmatprep.subr.bf16.mxu1 %v6342_v0  ;;  %v6122_v19 = vld [vmem:[%s7979_s29 + $0xd8] sm:$0xff] }
 0x30b   :  { %5721 = vmatprep.subr.bf16.mxu0 %v5720_v23 }
 0x30c   :  { %1876 = vmatmul.mubr.f32.vlgmr.msra.gmra.mrb[64].mxu1 %v6033_v38  ;;  %v6076_v38 = vld [vmem:[#allocation3 + $0x168] sm:$0xff] }
 0x30d   :  { %5662 = vmatpush1.bf16.msra.mxu1 %v7245_v26  ;;  %1880 = vmatprep.mubr.f32.mxu1 %v6034_v22  ;;  %v6039_v26 = vld [vmem:[#allocation3 + $0x30] sm:$0xff]  ;;  %v6077_v22 = vld [vmem:[#allocation3 + $0x160] sm:$0xff] }
 0x30e   :  { %5663 = vmatprep.subr.bf16.mxu1 %v6342_v0  ;;  %5723 = vmatpush3.bf16.msra.mxu0 %v5720_v23  ;;  %v6123_v23 = vld [vmem:[%s7979_s29 + $0xd0] sm:$0xff] }
 0x310   :  { %1881 = vmatmul.mubr.f32.gmra.mrb[66].mxu1 %v6035_v29  ;;  %v6078_v29 = vld [vmem:[#allocation3 + $0x178] sm:$0xff] }
 0x311   :  { %5665 = vmatpush1.bf16.msra.mxu1 %v7253_v58  ;;  %1885 = vmatprep.mubr.f32.mxu1 %v6036_v32  ;;  %v6041_v58 = vld [vmem:[#allocation3 + $0x40] sm:$0xff]  ;;  %v6079_v32 = vld [vmem:[#allocation3 + $0x170] sm:$0xff] }
 0x312   :  { %5666 = vmatprep.subr.bf16.mxu1 %v6342_v0 }
 0x314   :  { %1886 = vmatmul.mubr.f32.gmra.mrb[68].mxu1 %v6037_v39  ;;  %v6080_v39 = vld [vmem:[#allocation3 + $0x188] sm:$0xff] }
 0x315   :  { %5668 = vmatpush1.bf16.msra.mxu1 %v7261_v52  ;;  %1890 = vmatprep.mubr.f32.mxu1 %v6038_v41  ;;  %v6043_v52 = vld [vmem:[#allocation3 + $0x50] sm:$0xff]  ;;  %v6081_v41 = vld [vmem:[#allocation3 + $0x180] sm:$0xff] }
 0x316   :  { %5669 = vmatprep.subr.bf16.mxu1 %v6342_v0 }
 0x318   :  { %1891 = vmatmul.mubr.f32.gmra.mrb[70].mxu1 %v6039_v26  ;;  %v6082_v26 = vld [vmem:[#allocation3 + $0x198] sm:$0xff] }
 0x319   :  { %5671 = vmatpush1.bf16.msra.mxu1 %v7269_v28  ;;  %1895 = vmatprep.mubr.f32.mxu1 %v6040_v48  ;;  %v6045_v28 = vld [vmem:[#allocation3 + $0x60] sm:$0xff]  ;;  %v6083_v48 = vld [vmem:[#allocation3 + $0x190] sm:$0xff] }
 0x31a   :  { %5672 = vmatprep.subr.bf16.mxu1 %v6342_v0 }
 0x31c   :  { %1896 = vmatmul.mubr.f32.gmra.mrb[72].mxu1 %v6041_v58  ;;  %v6084_v58 = vld [vmem:[#allocation3 + $0x1a8] sm:$0xff] }
 0x31d   :  { %5674 = vmatpush1.bf16.msra.mxu1 %v7277_v53  ;;  %1900 = vmatprep.mubr.f32.mxu1 %v6042_v54  ;;  %v6047_v53 = vld [vmem:[#allocation3 + $0x70] sm:$0xff]  ;;  %v6085_v54 = vld [vmem:[#allocation3 + $0x1a0] sm:$0xff] }
 0x31e   :  { %5675 = vmatprep.subr.bf16.mxu1 %v6342_v0 }
 0x320   :  { %1901 = vmatmul.mubr.f32.gmra.mrb[74].mxu1 %v6043_v52  ;;  %v6086_v52 = vld [vmem:[#allocation3 + $0x1b8] sm:$0xff] }
 0x321   :  { %5677 = vmatpush1.bf16.msra.mxu1 %v7285_v49  ;;  %1905 = vmatprep.mubr.f32.mxu1 %v6044_v60  ;;  %v6049_v49 = vld [vmem:[#allocation3 + $0x80] sm:$0xff]  ;;  %v6087_v60 = vld [vmem:[#allocation3 + $0x1b0] sm:$0xff] }
 0x322   :  { %5678 = vmatprep.subr.bf16.mxu1 %v6342_v0 }
 0x324   :  { %1906 = vmatmul.mubr.f32.gmra.mrb[76].mxu1 %v6045_v28  ;;  %v6088_v28 = vld [vmem:[#allocation3 + $0x1c8] sm:$0xff] }
 0x325   :  { %5680 = vmatpush1.bf16.msra.mxu1 %v7293_v62  ;;  %1910 = vmatprep.mubr.f32.mxu1 %v6046_v63  ;;  %v6051_v62 = vld [vmem:[#allocation3 + $0x90] sm:$0xff]  ;;  %v6089_v63 = vld [vmem:[#allocation3 + $0x1c0] sm:$0xff] }
 0x326   :  { %5681 = vmatprep.subr.bf16.mxu1 %v6342_v0 }
 0x328   :  { %1911 = vmatmul.mubr.f32.gmra.mrb[78].mxu1 %v6047_v53  ;;  %v6090_v53 = vld [vmem:[#allocation3 + $0x1d8] sm:$0xff] }
 0x329   :  { %5683 = vmatpush1.bf16.msra.mxu1 %v7301_v42  ;;  %1915 = vmatprep.mubr.f32.mxu1 %v6048_v27  ;;  %v6053_v42 = vld [vmem:[#allocation3 + $0xa0] sm:$0xff]  ;;  %v6091_v27 = vld [vmem:[#allocation3 + $0x1d0] sm:$0xff] }
 0x32a   :  { %5684 = vmatprep.subr.bf16.mxu1 %v6342_v0 }
 0x32c   :  { %1916 = vmatmul.mubr.f32.gmra.mrb[80].mxu1 %v6049_v49  ;;  %v6092_v49 = vld [vmem:[#allocation3 + $0x1e8] sm:$0xff] }
 0x32d   :  { %5686 = vmatpush1.bf16.msra.mxu1 %v7309_v35  ;;  %1920 = vmatprep.mubr.f32.mxu1 %v6050_v36  ;;  %v6055_v35 = vld [vmem:[#allocation3 + $0xb0] sm:$0xff]  ;;  %v6093_v36 = vld [vmem:[#allocation3 + $0x1e0] sm:$0xff] }
 0x32e   :  { %5687 = vmatprep.subr.bf16.mxu1 %v6342_v0 }
 0x330   :  { %1921 = vmatmul.mubr.f32.gmra.mrb[82].mxu1 %v6051_v62  ;;  %v6094_v62 = vld [vmem:[#allocation3 + $0x1f8] sm:$0xff] }
 0x331   :  { %5689 = vmatpush1.bf16.msra.mxu1 %v7317_v16  ;;  %1925 = vmatprep.mubr.f32.mxu1 %v6052_v18  ;;  %v6057_v16 = vld [vmem:[#allocation3 + $0xc0] sm:$0xff]  ;;  %v6095_v18 = vld [vmem:[#allocation3 + $0x1f0] sm:$0xff] }
 0x332   :  { %5690 = vmatprep.subr.bf16.mxu1 %v6342_v0 }
 0x334   :  { %1926 = vmatmul.mubr.f32.gmra.mrb[84].mxu1 %v6053_v42  ;;  %v6096_v42 = vld [vmem:[%s7979_s29 + $0x8] sm:$0xff] }
 0x335   :  { %5692 = vmatpush1.bf16.msra.mxu1 %v7325_v45  ;;  %1930 = vmatprep.mubr.f32.mxu1 %v6054_v25  ;;  %v6059_v45 = vld [vmem:[#allocation3 + $0xd0] sm:$0xff]  ;;  %v6097_v25 = vld [vmem:[%s7979_s29] sm:$0xff] }
 0x336   :  { %5693 = vmatprep.subr.bf16.mxu1 %v6342_v0 }
 0x338   :  { %1931 = vmatmul.mubr.f32.gmra.mrb[86].mxu1 %v6055_v35  ;;  %v6098_v35 = vld [vmem:[%s7979_s29 + $0x18] sm:$0xff] }
 0x339   :  { %5695 = vmatpush1.bf16.msra.mxu1 %v7333_v43  ;;  %1935 = vmatprep.mubr.f32.mxu1 %v6056_v31  ;;  %v6061_v43 = vld [vmem:[#allocation3 + $0xe0] sm:$0xff]  ;;  %v6099_v31 = vld [vmem:[%s7979_s29 + $0x10] sm:$0xff] }
 0x33a   :  { %5696 = vmatprep.subr.bf16.mxu1 %v6342_v0 }
 0x33c   :  { %1936 = vmatmul.mubr.f32.gmra.mrb[88].mxu1 %v6057_v16  ;;  %v6100_v16 = vld [vmem:[%s7979_s29 + $0x28] sm:$0xff] }
 0x33d   :  { %5698 = vmatpush1.bf16.msra.mxu1 %v7341_v30  ;;  %1940 = vmatprep.mubr.f32.mxu1 %v6058_v44  ;;  %v6063_v30 = vld [vmem:[#allocation3 + $0xf0] sm:$0xff]  ;;  %v6101_v44 = vld [vmem:[%s7979_s29 + $0x20] sm:$0xff] }
 0x33e   :  { %5699 = vmatprep.subr.bf16.mxu1 %v6342_v0 }
 0x340   :  { %1941 = vmatmul.mubr.f32.gmra.mrb[90].mxu1 %v6059_v45  ;;  %v6102_v45 = vld [vmem:[%s7979_s29 + $0x38] sm:$0xff] }
 0x341   :  { %5701 = vmatpush1.bf16.msra.mxu1 %v7349_v57  ;;  %1945 = vmatprep.mubr.f32.mxu1 %v6060_v50  ;;  %v6070_v57 = vld [vmem:[#allocation3 + $0x138] sm:$0xff]  ;;  %v6103_v50 = vld [vmem:[%s7979_s29 + $0x30] sm:$0xff] }
 0x342   :  { %5702 = vmatprep.subr.bf16.mxu1 %v6342_v0 }
 0x344   :  { %1946 = vmatmul.mubr.f32.gmra.mrb[92].mxu1 %v6061_v43  ;;  %v6104_v43 = vld [vmem:[%s7979_s29 + $0x48] sm:$0xff] }
 0x345   :  { %5704 = vmatpush1.bf16.msra.mxu1 %v7357_v33  ;;  %1950 = vmatprep.mubr.f32.mxu1 %v6062_v56  ;;  %v6074_v33 = vld [vmem:[#allocation3 + $0x158] sm:$0xff]  ;;  %v6105_v56 = vld [vmem:[%s7979_s29 + $0x40] sm:$0xff] }
 0x346   :  { %5705 = vmatprep.subr.bf16.mxu1 %v6342_v0 }
 0x348   :  { %1951 = vmatmul.mubr.f32.gmra.mrb[94].mxu1 %v6063_v30  ;;  %v6106_v30 = vld [vmem:[%s7979_s29 + $0x58] sm:$0xff] }
 0x349   :  { %5707 = vmatpush1.bf16.msra.mxu1 %v7364_v21  ;;  %1955 = vmatprep.mubr.f32.mxu1 %v6064_v40  ;;  %v6075_v21 = vld [vmem:[#allocation3 + $0x150] sm:$0xff] }
 0x34a   :  { %v6107_v40 = vld [vmem:[%s7979_s29 + $0x50] sm:$0xff] }
 0x34c   :  { %1956 = vmatmul.mubr.f32.gmra.mrb[96].mxu1 %v6065_v55  ;;  %v6108_v55 = vld [vmem:[%s7979_s29 + $0x68] sm:$0xff] }
 0x34d   :  { %1960 = vmatprep.mubr.f32.mxu1 %v6066_v20  ;;  %v6109_v20 = vld [vmem:[%s7979_s29 + $0x60] sm:$0xff] }
 0x350   :  { %1961 = vmatmul.mubr.f32.gmra.mrb[98].mxu1 %v6067_v17  ;;  %v6110_v17 = vld [vmem:[%s7979_s29 + $0x78] sm:$0xff] }
 0x351   :  { %1965 = vmatprep.mubr.f32.mxu1 %v6068_v34  ;;  %v6111_v34 = vld [vmem:[%s7979_s29 + $0x70] sm:$0xff] }
 0x354   :  { %1966 = vmatmul.mubr.f32.gmra.mrb[100].mxu1 %v6069_v51  ;;  %v6112_v51 = vld [vmem:[%s7979_s29 + $0x88] sm:$0xff] }
 0x355   :  { %1970 = vmatprep.mubr.f32.mxu1 %v6070_v57  ;;  %v6113_v57 = vld [vmem:[%s7979_s29 + $0x80] sm:$0xff] }
 0x358   :  { %1971 = vmatmul.mubr.f32.gmra.mrb[102].mxu1 %v6071_v46  ;;  %v6114_v46 = vld [vmem:[%s7979_s29 + $0x98] sm:$0xff] }
 0x359   :  { %1975 = vmatprep.mubr.f32.mxu1 %v6072_v37  ;;  %v6115_v37 = vld [vmem:[%s7979_s29 + $0x90] sm:$0xff] }
 0x35c   :  { %1976 = vmatmul.mubr.f32.gmra.mrb[104].mxu1 %v6073_v59  ;;  %v6119_v59 = vld [vmem:[%s7979_s29 + $0xb0] sm:$0xff] }
 0x35d   :  { %1980 = vmatprep.mubr.f32.mxu1 %v6074_v33  ;;  %v6120_v33 = vld [vmem:[%s7979_s29 + $0xc8] sm:$0xff] }
 0x360   :  { %1981 = vmatmul.mubr.f32.gmra.mrb[106].mxu1 %v6075_v21  ;;  %v6124_v21 = vld [vmem:[%s7979_s29 + $0xe8] sm:$0xff] }
 0x361   :  { %1985 = vmatprep.mubr.f32.mxu1 %v6076_v38  ;;  %v6125_v38 = vld [vmem:[%s7979_s29 + $0xe0] sm:$0xff] }
 0x364   :  { %1986 = vmatmul.mubr.f32.gmra.mrb[108].mxu1 %v6077_v22  ;;  %v6126_v22 = vld [vmem:[%s7979_s29 + $0xf8] sm:$0xff] }
 0x365   :  { %1990 = vmatprep.mubr.f32.mxu1 %v6078_v29  ;;  %v6127_v29 = vld [vmem:[%s7979_s29 + $0xf0] sm:$0xff] }
 0x368   :  { %1991 = vmatmul.mubr.f32.gmra.mrb[110].mxu1 %v6079_v32  ;;  %v6128_v32 = vld [vmem:[%s7979_s29 + $0x108] sm:$0xff] }
 0x369   :  { %1995 = vmatprep.mubr.f32.mxu1 %v6080_v39  ;;  %v6129_v39 = vld [vmem:[%s7979_s29 + $0x100] sm:$0xff] }
 0x36c   :  { %1996 = vmatmul.mubr.f32.gmra.mrb[112].mxu1 %v6081_v41  ;;  %v6130_v41 = vld [vmem:[%s7979_s29 + $0x118] sm:$0xff] }
 0x36d   :  { %2000 = vmatprep.mubr.f32.mxu1 %v6082_v26  ;;  %v6131_v26 = vld [vmem:[%s7979_s29 + $0x110] sm:$0xff] }
 0x370   :  { %2001 = vmatmul.mubr.f32.gmra.mrb[114].mxu1 %v6083_v48  ;;  %v6132_v48 = vld [vmem:[%s7979_s29 + $0x128] sm:$0xff] }
 0x371   :  { %2005 = vmatprep.mubr.f32.mxu1 %v6084_v58  ;;  %v6133_v58 = vld [vmem:[%s7979_s29 + $0x120] sm:$0xff] }
 0x374   :  { %2006 = vmatmul.mubr.f32.gmra.mrb[116].mxu1 %v6085_v54  ;;  %v6134_v54 = vld [vmem:[%s7979_s29 + $0x138] sm:$0xff] }
 0x375   :  { %2010 = vmatprep.mubr.f32.mxu1 %v6086_v52  ;;  %v6135_v52 = vld [vmem:[%s7979_s29 + $0x130] sm:$0xff] }
 0x378   :  { %2011 = vmatmul.mubr.f32.gmra.mrb[118].mxu1 %v6087_v60  ;;  %v6136_v60 = vld [vmem:[%s7979_s29 + $0x148] sm:$0xff] }
 0x379   :  { %2015 = vmatprep.mubr.f32.mxu1 %v6088_v28  ;;  %v4622_v28 = vld [vmem:[%s7952_s5 + $0x40] sm:$0xff] }
 0x37c   :  { %2016 = vmatmul.mubr.f32.gmra.mrb[120].mxu1 %v6089_v63  ;;  %v4623_v63 = vld [vmem:[%s7952_s5 + $0x48] sm:$0xff] }
 0x37d   :  { %2020 = vmatprep.mubr.f32.mxu1 %v6090_v53  ;;  %v5724_v53 = vpack.c.bf16 %v4623_v63, %v4622_v28  ;;  %v6159_v63 = vld [vmem:[%s7979_s29 + $0x1f0] sm:$0xff] }
 0x37f   :  { %5725 = vmatprep.subr.bf16.mxu0 %v5724_v53 }
 0x380   :  { %2021 = vmatmul.mubr.f32.gmra.mrb[122].mxu1 %v6091_v27  ;;  %v6137_v27 = vld [vmem:[%s7979_s29 + $0x140] sm:$0xff] }
 0x381   :  { %2025 = vmatprep.mubr.f32.mxu1 %v6092_v49  ;;  %v6138_v49 = vld [vmem:[%s7979_s29 + $0x158] sm:$0xff] }
 0x384   :  { %2026 = vmatmul.mubr.f32.gmra.mrb[124].mxu1 %v6093_v36 }
 0x385   :  { %2030 = vmatprep.mubr.f32.mxu1 %v6094_v62  ;;  %v4624_v62 = vld [vmem:[%s7952_s5 + $0x50] sm:$0xff] }
 0x388   :  { %2031 = vmatmul.mubr.f32.gmra.mrb[126].mxu1 %v6095_v18  ;;  %v4625_v18 = vld [vmem:[%s7952_s5 + $0x58] sm:$0xff] }
 0x389   :  { %2100 = vmatprep.mubr.f32.mxu1 %v6096_v42 }
 0x38c   :  { %2101 = vmatmul.mubr.f32.vlgmr.msra.gmra.mrb[128].mxu1 %v6097_v25  ;;  %v6139_v25 = vld [vmem:[%s7979_s29 + $0x150] sm:$0xff] }
 0x38d   :  { %2105 = vmatprep.mubr.f32.mxu1 %v6098_v35  ;;  %v6140_v35 = vld [vmem:[%s7979_s29 + $0x168] sm:$0xff] }
 0x390   :  { %2106 = vmatmul.mubr.f32.gmra.mrb[130].mxu1 %v6099_v31  ;;  %v5728_v31 = vpack.c.bf16 %v4625_v18, %v4624_v62 }
 0x391   :  { %2110 = vmatprep.mubr.f32.mxu1 %v6100_v16 }
 0x394   :  { %2111 = vmatmul.mubr.f32.gmra.mrb[132].mxu1 %v6101_v44 }
 0x395   :  { %2115 = vmatprep.mubr.f32.mxu1 %v6102_v45  ;;  %v6141_v45 = vld [vmem:[%s7979_s29 + $0x160] sm:$0xff] }
 0x398   :  { %2116 = vmatmul.mubr.f32.gmra.mrb[134].mxu1 %v6103_v50  ;;  %v6142_v50 = vld [vmem:[%s7979_s29 + $0x178] sm:$0xff] }
 0x399   :  { %2120 = vmatprep.mubr.f32.mxu1 %v6104_v43 }
 0x39c   :  { %2121 = vmatmul.mubr.f32.gmra.mrb[136].mxu1 %v6105_v56 }
 0x39d   :  { %2125 = vmatprep.mubr.f32.mxu1 %v6106_v30  ;;  %v6143_v30 = vld [vmem:[%s7979_s29 + $0x170] sm:$0xff] }
 0x3a0   :  { %2126 = vmatmul.mubr.f32.gmra.mrb[138].mxu1 %v6107_v40  ;;  %v6144_v40 = vld [vmem:[%s7979_s29 + $0x188] sm:$0xff] }
 0x3a1   :  { %2130 = vmatprep.mubr.f32.mxu1 %v6108_v55 }
 0x3a4   :  { %2131 = vmatmul.mubr.f32.gmra.mrb[140].mxu1 %v6109_v20 }
 0x3a5   :  { %2135 = vmatprep.mubr.f32.mxu1 %v6110_v17  ;;  %v6145_v17 = vld [vmem:[%s7979_s29 + $0x180] sm:$0xff] }
 0x3a8   :  { %2136 = vmatmul.mubr.f32.gmra.mrb[142].mxu1 %v6111_v34  ;;  %v6146_v34 = vld [vmem:[%s7979_s29 + $0x198] sm:$0xff] }
 0x3a9   :  { %2140 = vmatprep.mubr.f32.mxu1 %v6112_v51 }
 0x3ac   :  { %2141 = vmatmul.mubr.f32.gmra.mrb[144].mxu1 %v6113_v57 }
 0x3ad   :  { %2145 = vmatprep.mubr.f32.mxu1 %v6114_v46  ;;  %v6147_v46 = vld [vmem:[%s7979_s29 + $0x190] sm:$0xff] }
 0x3b0   :  { %2146 = vmatmul.mubr.f32.gmra.mrb[146].mxu1 %v6115_v37  ;;  %v6148_v37 = vld [vmem:[%s7979_s29 + $0x1a8] sm:$0xff] }
 0x3b1   :  { %2150 = vmatprep.mubr.f32.mxu1 %v6116_v15 }
 0x3b4   :  { %2151 = vmatmul.mubr.f32.gmra.mrb[148].mxu1 %v6117_v24 }
 0x3b5   :  { %2155 = vmatprep.mubr.f32.mxu1 %v6118_v47  ;;  %v6149_v47 = vld [vmem:[%s7979_s29 + $0x1a0] sm:$0xff] }
 0x3b8   :  { %2156 = vmatmul.mubr.f32.gmra.mrb[150].mxu1 %v6119_v59  ;;  %v6150_v59 = vld [vmem:[%s7979_s29 + $0x1b8] sm:$0xff] }
 0x3b9   :  { %2160 = vmatprep.mubr.f32.mxu1 %v6120_v33 }
 0x3bc   :  { %2161 = vmatmul.mubr.f32.gmra.mrb[152].mxu1 %v6121_v61 }
 0x3bd   :  { %2165 = vmatprep.mubr.f32.mxu1 %v6122_v19  ;;  %v6151_v19 = vld [vmem:[%s7979_s29 + $0x1b0] sm:$0xff] }
 0x3c0   :  { %2166 = vmatmul.mubr.f32.gmra.mrb[154].mxu1 %v6123_v23  ;;  %v6152_v23 = vld [vmem:[%s7979_s29 + $0x1c8] sm:$0xff] }
 0x3c1   :  { %2170 = vmatprep.mubr.f32.mxu1 %v6124_v21 }
 0x3c4   :  { %2171 = vmatmul.mubr.f32.gmra.mrb[156].mxu1 %v6125_v38 }
 0x3c5   :  { %2175 = vmatprep.mubr.f32.mxu1 %v6126_v22  ;;  %v6153_v22 = vld [vmem:[%s7979_s29 + $0x1c0] sm:$0xff] }
 0x3c8   :  { %2176 = vmatmul.mubr.f32.gmra.mrb[158].mxu1 %v6127_v29  ;;  %v6154_v29 = vld [vmem:[%s7979_s29 + $0x1d8] sm:$0xff] }
 0x3c9   :  { %2180 = vmatprep.mubr.f32.mxu1 %v6128_v32 }
 0x3cc   :  { %2181 = vmatmul.mubr.f32.gmra.mrb[160].mxu1 %v6129_v39 }
 0x3cd   :  { %2185 = vmatprep.mubr.f32.mxu1 %v6130_v41  ;;  %v6155_v41 = vld [vmem:[%s7979_s29 + $0x1d0] sm:$0xff] }
 0x3d0   :  { %2186 = vmatmul.mubr.f32.gmra.mrb[162].mxu1 %v6131_v26  ;;  %v6156_v26 = vld [vmem:[%s7979_s29 + $0x1e8] sm:$0xff] }
 0x3d1   :  { %2190 = vmatprep.mubr.f32.mxu1 %v6132_v48 }
 0x3d4   :  { %2191 = vmatmul.mubr.f32.gmra.mrb[164].mxu1 %v6133_v58 }
 0x3d5   :  { %2195 = vmatprep.mubr.f32.mxu1 %v6134_v54  ;;  %v6157_v54 = vld [vmem:[%s7979_s29 + $0x1e0] sm:$0xff] }
 0x3d8   :  { %2196 = vmatmul.mubr.f32.gmra.mrb[166].mxu1 %v6135_v52  ;;  %v6158_v52 = vld [vmem:[%s7979_s29 + $0x1f8] sm:$0xff] }
 0x3d9   :  { %2200 = vmatprep.mubr.f32.mxu1 %v6136_v60 }
 0x3dc   :  { %2201 = vmatmul.mubr.f32.gmra.mrb[168].mxu1 %v6137_v27 }
 0x3dd   :  { %2205 = vmatprep.mubr.f32.mxu1 %v6138_v49 }
 0x3df   :  { %v1877_v36 = vpop.f32.mrb[64].mxu1 }
 0x3e0   :  { %v1879_v42 = vpop.f32.mrb[65].mxu1  ;;  %2206 = vmatmul.mubr.f32.gmra.mrb[170].mxu1 %v6139_v25  ;;  %5317 = vmatprep.mubr.msk.f32.mxu0 %vm2270_vm2, %v1877_v36 }
 0x3e1   :  { %2210 = vmatprep.mubr.f32.mxu1 %v6140_v35 }
 0x3e3   :  { %v1882_v16 = vpop.f32.mrb[66].mxu1 }
 0x3e4   :  { %v1884_v44 = vpop.f32.mrb[67].mxu1  ;;  %2211 = vmatmul.mubr.f32.gmra.mrb[172].mxu1 %v6141_v45  ;;  %5318 = vmatmul.mubr.msk.f32.vlgmr.msra.gmra.mrb[96].mxu0 %vm2270_vm2, %v1882_v16 }
 0x3e5   :  { %2215 = vmatprep.mubr.f32.mxu1 %v6142_v50  ;;  %5727 = vmatpush3.bf16.msra.mxu0 %v5724_v53 }
 0x3e6   :  { %5729 = vmatprep.subr.bf16.mxu0 %v5728_v31 }
 0x3e7   :  { %v1887_v43 = vpop.f32.mrb[68].mxu1 }
 0x3e8   :  { %v1889_v56 = vpop.f32.mrb[69].mxu1  ;;  %2216 = vmatmul.mubr.f32.gmra.mrb[174].mxu1 %v6143_v30  ;;  %5320 = vmatprep.mubr.msk.f32.mxu0 %vm2270_vm2, %v1887_v43 }
 0x3e9   :  { %2220 = vmatprep.mubr.f32.mxu1 %v6144_v40  ;;  %5731 = vmatpush3.bf16.msra.mxu0 %v5728_v31 }
 0x3eb   :  { %v1892_v55 = vpop.f32.mrb[70].mxu1 }
 0x3ec   :  { %v1894_v20 = vpop.f32.mrb[71].mxu1  ;;  %2221 = vmatmul.mubr.f32.gmra.mrb[176].mxu1 %v6145_v17  ;;  %5321 = vmatmul.mubr.msk.f32.gmra.mrb[98].mxu0 %vm2270_vm2, %v1892_v55 }
 0x3ed   :  { %2225 = vmatprep.mubr.f32.mxu1 %v6146_v34 }
 0x3ef   :  { %v1897_v51 = vpop.f32.mrb[72].mxu1 }
 0x3f0   :  { %v1899_v57 = vpop.f32.mrb[73].mxu1  ;;  %2226 = vmatmul.mubr.f32.gmra.mrb[178].mxu1 %v6147_v46  ;;  %5323 = vmatprep.mubr.msk.f32.mxu0 %vm2270_vm2, %v1897_v51 }
 0x3f1   :  { %2230 = vmatprep.mubr.f32.mxu1 %v6148_v37 }
 0x3f3   :  { %v1902_v15 = vpop.f32.mrb[74].mxu1 }
 0x3f4   :  { %v1904_v24 = vpop.f32.mrb[75].mxu1  ;;  %2231 = vmatmul.mubr.f32.gmra.mrb[180].mxu1 %v6149_v47  ;;  %5324 = vmatmul.mubr.msk.f32.gmra.mrb[100].mxu0 %vm2270_vm2, %v1902_v15 }
 0x3f5   :  { %2235 = vmatprep.mubr.f32.mxu1 %v6150_v59 }
 0x3f7   :  { %v1907_v33 = vpop.f32.mrb[76].mxu1 }
 0x3f8   :  { %v1909_v61 = vpop.f32.mrb[77].mxu1  ;;  %2236 = vmatmul.mubr.f32.gmra.mrb[182].mxu1 %v6151_v19  ;;  %5326 = vmatprep.mubr.msk.f32.mxu0 %vm2270_vm2, %v1907_v33 }
 0x3f9   :  { %2240 = vmatprep.mubr.f32.mxu1 %v6152_v23 }
 0x3fb   :  { %v1912_v21 = vpop.f32.mrb[78].mxu1 }
 0x3fc   :  { %v1914_v38 = vpop.f32.mrb[79].mxu1  ;;  %2241 = vmatmul.mubr.f32.gmra.mrb[184].mxu1 %v6153_v22  ;;  %5327 = vmatmul.mubr.msk.f32.gmra.mrb[102].mxu0 %vm2270_vm2, %v1912_v21 }
 0x3fd   :  { %2245 = vmatprep.mubr.f32.mxu1 %v6154_v29 }
 0x3ff   :  { %v1917_v32 = vpop.f32.mrb[80].mxu1 }
 0x400   :  { %v1919_v39 = vpop.f32.mrb[81].mxu1  ;;  %2246 = vmatmul.mubr.f32.gmra.mrb[186].mxu1 %v6155_v41  ;;  %5329 = vmatprep.mubr.msk.f32.mxu0 %vm2270_vm2, %v1917_v32 }
 0x401   :  { %2250 = vmatprep.mubr.f32.mxu1 %v6156_v26 }
 0x403   :  { %v1922_v48 = vpop.f32.mrb[82].mxu1 }
 0x404   :  { %v1924_v58 = vpop.f32.mrb[83].mxu1  ;;  %2251 = vmatmul.mubr.f32.gmra.mrb[188].mxu1 %v6157_v54  ;;  %5330 = vmatmul.mubr.msk.f32.gmra.mrb[104].mxu0 %vm2270_vm2, %v1922_v48 }
 0x405   :  { %2255 = vmatprep.mubr.f32.mxu1 %v6158_v52 }
 0x407   :  { %v1927_v60 = vpop.f32.mrb[84].mxu1 }
 0x408   :  { %v1929_v28 = vpop.f32.mrb[85].mxu1  ;;  %2256 = vmatmul.mubr.f32.gmra.mrb[190].mxu1 %v6159_v63  ;;  %5332 = vmatprep.mubr.msk.f32.mxu0 %vm2270_vm2, %v1927_v60 }
 0x40b   :  { %v1932_v53 = vpop.f32.mrb[86].mxu1 }
 0x40c   :  { %v1934_v27 = vpop.f32.mrb[87].mxu1  ;;  %5333 = vmatmul.mubr.msk.f32.gmra.mrb[106].mxu0 %vm2270_vm2, %v1932_v53 }
 0x40f   :  { %v1937_v49 = vpop.f32.mrb[88].mxu1 }
 0x410   :  { %v1939_v36 = vpop.f32.mrb[89].mxu1  ;;  %5335 = vmatprep.mubr.msk.f32.mxu0 %vm2270_vm2, %v1937_v49 }
 0x413   :  { %v1942_v62 = vpop.f32.mrb[90].mxu1 }
 0x414   :  { %v1944_v18 = vpop.f32.mrb[91].mxu1  ;;  %5336 = vmatmul.mubr.msk.f32.gmra.mrb[108].mxu0 %vm2270_vm2, %v1942_v62 }
 0x417   :  { %v1947_v42 = vpop.f32.mrb[92].mxu1 }
 0x418   :  { %v1949_v25 = vpop.f32.mrb[93].mxu1  ;;  %5338 = vmatprep.mubr.msk.f32.mxu0 %vm2270_vm2, %v1947_v42 }
 0x41b   :  { %v1952_v35 = vpop.f32.mrb[94].mxu1 }
 0x41c   :  { %v1954_v31 = vpop.f32.mrb[95].mxu1  ;;  %5339 = vmatmul.mubr.msk.f32.gmra.mrb[110].mxu0 %vm2270_vm2, %v1952_v35 }
 0x41f   :  { %v1957_v16 = vpop.f32.mrb[96].mxu1 }
 0x420   :  { %v1959_v44 = vpop.f32.mrb[97].mxu1  ;;  %5341 = vmatprep.mubr.msk.f32.mxu0 %vm2270_vm2, %v1957_v16 }
 0x423   :  { %v1962_v45 = vpop.f32.mrb[98].mxu1 }
 0x424   :  { %v1964_v50 = vpop.f32.mrb[99].mxu1  ;;  %5342 = vmatmul.mubr.msk.f32.gmra.mrb[112].mxu0 %vm2270_vm2, %v1962_v45 }
 0x427   :  { %v1967_v43 = vpop.f32.mrb[100].mxu1 }
 0x428   :  { %v1969_v56 = vpop.f32.mrb[101].mxu1  ;;  %5344 = vmatprep.mubr.msk.f32.mxu0 %vm2270_vm2, %v1967_v43 }
 0x42b   :  { %v1972_v30 = vpop.f32.mrb[102].mxu1 }
 0x42c   :  { %v1974_v40 = vpop.f32.mrb[103].mxu1  ;;  %5345 = vmatmul.mubr.msk.f32.gmra.mrb[114].mxu0 %vm2270_vm2, %v1972_v30 }
 0x42f   :  { %v1977_v55 = vpop.f32.mrb[104].mxu1 }
 0x430   :  { %v1979_v20 = vpop.f32.mrb[105].mxu1  ;;  %5347 = vmatprep.mubr.msk.f32.mxu0 %vm2270_vm2, %v1977_v55 }
 0x433   :  { %v1982_v17 = vpop.f32.mrb[106].mxu1 }
 0x434   :  { %v1984_v34 = vpop.f32.mrb[107].mxu1  ;;  %5348 = vmatmul.mubr.msk.f32.gmra.mrb[116].mxu0 %vm2270_vm2, %v1982_v17 }
 0x437   :  { %v1987_v51 = vpop.f32.mrb[108].mxu1 }
 0x438   :  { %v1989_v57 = vpop.f32.mrb[109].mxu1  ;;  %5350 = vmatprep.mubr.msk.f32.mxu0 %vm2270_vm2, %v1987_v51 }
 0x43b   :  { %v1992_v46 = vpop.f32.mrb[110].mxu1 }
 0x43c   :  { %v1994_v37 = vpop.f32.mrb[111].mxu1  ;;  %5351 = vmatmul.mubr.msk.f32.gmra.mrb[118].mxu0 %vm2270_vm2, %v1992_v46 }
 0x43f   :  { %v1997_v15 = vpop.f32.mrb[112].mxu1 }
 0x440   :  { %v1999_v24 = vpop.f32.mrb[113].mxu1  ;;  %5353 = vmatprep.mubr.msk.f32.mxu0 %vm2270_vm2, %v1997_v15 }
 0x443   :  { %v2002_v47 = vpop.f32.mrb[114].mxu1 }
 0x444   :  { %v2004_v59 = vpop.f32.mrb[115].mxu1  ;;  %5354 = vmatmul.mubr.msk.f32.gmra.mrb[120].mxu0 %vm2270_vm2, %v2002_v47 }
 0x447   :  { %v2007_v33 = vpop.f32.mrb[116].mxu1 }
 0x448   :  { %v2009_v61 = vpop.f32.mrb[117].mxu1  ;;  %5356 = vmatprep.mubr.msk.f32.mxu0 %vm2270_vm2, %v2007_v33 }
 0x44b   :  { %v2012_v19 = vpop.f32.mrb[118].mxu1 }
 0x44c   :  { %v2014_v23 = vpop.f32.mrb[119].mxu1  ;;  %5357 = vmatmul.mubr.msk.f32.gmra.mrb[122].mxu0 %vm2270_vm2, %v2012_v19 }
 0x44f   :  { %v2017_v21 = vpop.f32.mrb[120].mxu1 }
 0x450   :  { %v2019_v38 = vpop.f32.mrb[121].mxu1  ;;  %5359 = vmatprep.mubr.msk.f32.mxu0 %vm2270_vm2, %v2017_v21 }
 0x453   :  { %v2022_v22 = vpop.f32.mrb[122].mxu1 }
 0x454   :  { %v2024_v29 = vpop.f32.mrb[123].mxu1  ;;  %5360 = vmatmul.mubr.msk.f32.gmra.mrb[124].mxu0 %vm2270_vm2, %v2022_v22 }
 0x457   :  { %v2027_v32 = vpop.f32.mrb[124].mxu1 }
 0x458   :  { %v2029_v39 = vpop.f32.mrb[125].mxu1  ;;  %5362 = vmatprep.mubr.msk.f32.mxu0 %vm2270_vm2, %v2027_v32 }
 0x45b   :  { %v2032_v41 = vpop.f32.mrb[126].mxu1 }
 0x45c   :  { %v2034_v26 = vpop.f32.mrb[127].mxu1  ;;  %5363 = vmatmul.mubr.msk.f32.gmra.mrb[126].mxu0 %vm2270_vm2, %v2032_v41 }
 0x45f   :  { %v2102_v48 = vpop.f32.mrb[128].mxu1 }
 0x460   :  { %v2104_v58 = vpop.f32.mrb[129].mxu1  ;;  %5373 = vmatprep.mubr.msk.f32.mxu0 %vm2270_vm2, %v2102_v48 }
 0x463   :  { %v2107_v54 = vpop.f32.mrb[130].mxu1 }
 0x464   :  { %v2109_v52 = vpop.f32.mrb[131].mxu1  ;;  %5374 = vmatmul.mubr.msk.f32.vlgmr.msra.gmra.mrb[96].mxu0 %vm2270_vm2, %v2107_v54 }
 0x467   :  { %v2112_v60 = vpop.f32.mrb[132].mxu1 }
 0x468   :  { %v2114_v28 = vpop.f32.mrb[133].mxu1  ;;  %5376 = vmatprep.mubr.msk.f32.mxu0 %vm2270_vm2, %v2112_v60 }
 0x46b   :  { %v2117_v63 = vpop.f32.mrb[134].mxu1 }
 0x46c   :  { %v2119_v53 = vpop.f32.mrb[135].mxu1  ;;  %5377 = vmatmul.mubr.msk.f32.gmra.mrb[98].mxu0 %vm2270_vm2, %v2117_v63 }
 0x46f   :  { %v2122_v27 = vpop.f32.mrb[136].mxu1 }
 0x470   :  { %v2124_v49 = vpop.f32.mrb[137].mxu1  ;;  %5379 = vmatprep.mubr.msk.f32.mxu0 %vm2270_vm2, %v2122_v27 }
 0x473   :  { %v2127_v36 = vpop.f32.mrb[138].mxu1 }
 0x474   :  { %v2129_v62 = vpop.f32.mrb[139].mxu1  ;;  %5380 = vmatmul.mubr.msk.f32.gmra.mrb[100].mxu0 %vm2270_vm2, %v2127_v36 }
 0x477   :  { %v2132_v18 = vpop.f32.mrb[140].mxu1 }
 0x478   :  { %v2134_v42 = vpop.f32.mrb[141].mxu1  ;;  %5382 = vmatprep.mubr.msk.f32.mxu0 %vm2270_vm2, %v2132_v18 }
 0x47b   :  { %v2137_v25 = vpop.f32.mrb[142].mxu1 }
 0x47c   :  { %v2139_v35 = vpop.f32.mrb[143].mxu1  ;;  %5383 = vmatmul.mubr.msk.f32.gmra.mrb[102].mxu0 %vm2270_vm2, %v2137_v25 }
 0x47d   :  { %v7684_v35 = vld [vmem:[%s7953_s6] ss:$0 sm:$0xff] }
 0x47f   :  { %v2142_v31 = vpop.f32.mrb[144].mxu1 }
 0x480   :  { %v2144_v16 = vpop.f32.mrb[145].mxu1  ;;  %5385 = vmatprep.mubr.msk.f32.mxu0 %vm2270_vm2, %v2142_v31 }
 0x483   :  { %v2147_v44 = vpop.f32.mrb[146].mxu1 }
 0x484   :  { %v2149_v45 = vpop.f32.mrb[147].mxu1  ;;  %5386 = vmatmul.mubr.msk.f32.gmra.mrb[104].mxu0 %vm2270_vm2, %v2147_v44 }
 0x487   :  { %v2152_v50 = vpop.f32.mrb[148].mxu1 }
 0x488   :  { %v2154_v43 = vpop.f32.mrb[149].mxu1  ;;  %5388 = vmatprep.mubr.msk.f32.mxu0 %vm2270_vm2, %v2152_v50  ;;  %v3342_v50 = vld [vmem:[#allocation6 + $0x8] sm:$0xff] }
 0x489   :  { %3437 = vmatprep.mubr.f32.mxu1 %v3342_v50 }
 0x48b   :  { %v2157_v56 = vpop.f32.mrb[150].mxu1 }
 0x48c   :  { %v2159_v30 = vpop.f32.mrb[151].mxu1  ;;  %5389 = vmatmul.mubr.msk.f32.gmra.mrb[106].mxu0 %vm2270_vm2, %v2157_v56 }
 0x48f   :  { %v2162_v40 = vpop.f32.mrb[152].mxu1 }
 0x490   :  { %v2164_v55 = vpop.f32.mrb[153].mxu1  ;;  %5391 = vmatprep.mubr.msk.f32.mxu0 %vm2270_vm2, %v2162_v40 }
 0x493   :  { %v2167_v20 = vpop.f32.mrb[154].mxu1 }
 0x494   :  { %v2169_v17 = vpop.f32.mrb[155].mxu1  ;;  %5392 = vmatmul.mubr.msk.f32.gmra.mrb[108].mxu0 %vm2270_vm2, %v2167_v20 }
 0x497   :  { %v2172_v34 = vpop.f32.mrb[156].mxu1 }
 0x498   :  { %v2174_v51 = vpop.f32.mrb[157].mxu1  ;;  %5394 = vmatprep.mubr.msk.f32.mxu0 %vm2270_vm2, %v2172_v34 }
 0x49b   :  { %v2177_v57 = vpop.f32.mrb[158].mxu1 }
 0x49c   :  { %v2179_v46 = vpop.f32.mrb[159].mxu1  ;;  %5395 = vmatmul.mubr.msk.f32.gmra.mrb[110].mxu0 %vm2270_vm2, %v2177_v57 }
 0x49f   :  { %v2182_v37 = vpop.f32.mrb[160].mxu1 }
 0x4a0   :  { %v2184_v15 = vpop.f32.mrb[161].mxu1  ;;  %5397 = vmatprep.mubr.msk.f32.mxu0 %vm2270_vm2, %v2182_v37 }
 0x4a3   :  { %v2187_v24 = vpop.f32.mrb[162].mxu1 }
 0x4a4   :  { %v2189_v47 = vpop.f32.mrb[163].mxu1  ;;  %5398 = vmatmul.mubr.msk.f32.gmra.mrb[112].mxu0 %vm2270_vm2, %v2187_v24 }
 0x4a7   :  { %v2192_v59 = vpop.f32.mrb[164].mxu1 }
 0x4a8   :  { %v2194_v33 = vpop.f32.mrb[165].mxu1  ;;  %5400 = vmatprep.mubr.msk.f32.mxu0 %vm2270_vm2, %v2192_v59 }
 0x4ab   :  { %v2197_v61 = vpop.f32.mrb[166].mxu1 }
 0x4ac   :  { %5401 = vmatmul.mubr.msk.f32.gmra.mrb[114].mxu0 %vm2270_vm2, %v2197_v61  ;;  %v2199_v19 = vpop.f32.mrb[167].mxu1 }
 0x4af   :  { %v2202_v23 = vpop.f32.mrb[168].mxu1 }
 0x4b0   :  { %v2204_v21 = vpop.f32.mrb[169].mxu1  ;;  %5403 = vmatprep.mubr.msk.f32.mxu0 %vm2270_vm2, %v2202_v23 }
 0x4b3   :  { %v2207_v38 = vpop.f32.mrb[170].mxu1 }
 0x4b4   :  { %5404 = vmatmul.mubr.msk.f32.gmra.mrb[116].mxu0 %vm2270_vm2, %v2207_v38  ;;  %v2209_v22 = vpop.f32.mrb[171].mxu1 }
 0x4b7   :  { %v2212_v29 = vpop.f32.mrb[172].mxu1 }
 0x4b8   :  { %v2214_v32 = vpop.f32.mrb[173].mxu1  ;;  %5406 = vmatprep.mubr.msk.f32.mxu0 %vm2270_vm2, %v2212_v29 }
 0x4bb   :  { %v2217_v39 = vpop.f32.mrb[174].mxu1 }
 0x4bc   :  { %5407 = vmatmul.mubr.msk.f32.gmra.mrb[118].mxu0 %vm2270_vm2, %v2217_v39  ;;  %v2219_v41 = vpop.f32.mrb[175].mxu1 }
 0x4bf   :  { %v2222_v26 = vpop.f32.mrb[176].mxu1 }
 0x4c0   :  { %v2224_v48 = vpop.f32.mrb[177].mxu1  ;;  %5409 = vmatprep.mubr.msk.f32.mxu0 %vm2270_vm2, %v2222_v26 }
 0x4c3   :  { %v2227_v58 = vpop.f32.mrb[178].mxu1 }
 0x4c4   :  { %5410 = vmatmul.mubr.msk.f32.gmra.mrb[120].mxu0 %vm2270_vm2, %v2227_v58  ;;  %v2229_v54 = vpop.f32.mrb[179].mxu1 }
 0x4c7   :  { %v2232_v52 = vpop.f32.mrb[180].mxu1 }
 0x4c8   :  { %v2234_v60 = vpop.f32.mrb[181].mxu1  ;;  %5412 = vmatprep.mubr.msk.f32.mxu0 %vm2270_vm2, %v2232_v52 }
 0x4cb   :  { %v2237_v28 = vpop.f32.mrb[182].mxu1 }
 0x4cc   :  { %5413 = vmatmul.mubr.msk.f32.gmra.mrb[122].mxu0 %vm2270_vm2, %v2237_v28  ;;  %v2239_v63 = vpop.f32.mrb[183].mxu1 }
 0x4cf   :  { %v2242_v53 = vpop.f32.mrb[184].mxu1 }
 0x4d0   :  { %v2244_v27 = vpop.f32.mrb[185].mxu1  ;;  %5415 = vmatprep.mubr.msk.f32.mxu0 %vm2270_vm2, %v2242_v53 }
 0x4d3   :  { %v2247_v49 = vpop.f32.mrb[186].mxu1 }
 0x4d4   :  { %5416 = vmatmul.mubr.msk.f32.gmra.mrb[124].mxu0 %vm2270_vm2, %v2247_v49  ;;  %v2249_v36 = vpop.f32.mrb[187].mxu1 }
 0x4d7   :  { %v2252_v62 = vpop.f32.mrb[188].mxu1 }
 0x4d8   :  { %v2254_v18 = vpop.f32.mrb[189].mxu1  ;;  %5418 = vmatprep.mubr.msk.f32.mxu0 %vm2270_vm2, %v2252_v62 }
 0x4db   :  { %v2257_v42 = vpop.f32.mrb[190].mxu1 }
 0x4dc   :  { %5419 = vmatmul.mubr.msk.f32.gmra.mrb[126].mxu0 %vm2270_vm2, %v2257_v42  ;;  %v2259_v25 = vpop.f32.mrb[191].mxu1 }
 0x537   :  { %v5375_v31 = vpop.f32.mrb[96].mxu0 }
 0x538   :  { %v3278_v16 = vadd.f32 %v5375_v31, %v7684_v35  ;;  %v3080_v44 = vpop.f32.mrb[97].mxu0 }
 0x539   :  { %v3277_v45 = vadd.f32 %v7684_v35, %v3080_v44 }
 0x53a   :  { %v3310_v43 = vmax.f32 %v3278_v16, 0.0 }
 0x53b   :  { %v3309_v56 = vmax.f32 %v3277_v45, 0.0 }
 0x53d   :  { %v7688_v30 = vpack.c.bf16 %v3310_v43, %v3309_v56 }
 0x53f   :  { %v5378_v40 = vpop.f32.mrb[98].mxu0 }
 0x540   :  { %v3280_v55 = vadd.f32 %v5378_v40, %v7684_v35  ;;  %v3090_v20 = vpop.f32.mrb[99].mxu0 }
 0x541   :  { %v3279_v17 = vadd.f32 %v7684_v35, %v3090_v20 }
 0x542   :  { %v3312_v34 = vmax.f32 %v3280_v55, 0.0 }
 0x543   :  { %v3311_v51 = vmax.f32 %v3279_v17, 0.0 }
 0x545   :  { %v7692_v57 = vpack.c.bf16 %v3312_v34, %v3311_v51 }
 0x547   :  { %v5381_v46 = vpop.f32.mrb[100].mxu0 }
 0x548   :  { %v3282_v37 = vadd.f32 %v5381_v46, %v7684_v35  ;;  %v3100_v15 = vpop.f32.mrb[101].mxu0 }
 0x549   :  { %v3281_v24 = vadd.f32 %v7684_v35, %v3100_v15 }
 0x54a   :  { %v3314_v47 = vmax.f32 %v3282_v37, 0.0 }
 0x54b   :  { %v3313_v59 = vmax.f32 %v3281_v24, 0.0 }
 0x54d   :  { %v7696_v33 = vpack.c.bf16 %v3314_v47, %v3313_v59 }
 0x54f   :  { %v5384_v61 = vpop.f32.mrb[102].mxu0 }
 0x550   :  { %v3284_v19 = vadd.f32 %v5384_v61, %v7684_v35  ;;  %v3110_v23 = vpop.f32.mrb[103].mxu0 }
 0x551   :  { %v3283_v21 = vadd.f32 %v7684_v35, %v3110_v23 }
 0x552   :  { %v3316_v38 = vmax.f32 %v3284_v19, 0.0 }
 0x553   :  { %v3315_v22 = vmax.f32 %v3283_v21, 0.0 }
 0x555   :  { %v7700_v29 = vpack.c.bf16 %v3316_v38, %v3315_v22 }
 0x557   :  { %v5387_v32 = vpop.f32.mrb[104].mxu0 }
 0x558   :  { %v3286_v39 = vadd.f32 %v5387_v32, %v7684_v35  ;;  %v3120_v41 = vpop.f32.mrb[105].mxu0 }
 0x559   :  { %v3285_v26 = vadd.f32 %v7684_v35, %v3120_v41 }
 0x55a   :  { %v3318_v48 = vmax.f32 %v3286_v39, 0.0 }
 0x55b   :  { %v3317_v58 = vmax.f32 %v3285_v26, 0.0 }
 0x55d   :  { %v7704_v54 = vpack.c.bf16 %v3318_v48, %v3317_v58 }
 0x55f   :  { %v5390_v52 = vpop.f32.mrb[106].mxu0 }
 0x560   :  { %v3288_v60 = vadd.f32 %v5390_v52, %v7684_v35  ;;  %v3130_v28 = vpop.f32.mrb[107].mxu0 }
 0x561   :  { %v3287_v63 = vadd.f32 %v7684_v35, %v3130_v28 }
 0x562   :  { %v3320_v53 = vmax.f32 %v3288_v60, 0.0 }
 0x563   :  { %v3319_v27 = vmax.f32 %v3287_v63, 0.0 }
 0x565   :  { %v7708_v49 = vpack.c.bf16 %v3320_v53, %v3319_v27 }
 0x567   :  { %v5393_v36 = vpop.f32.mrb[108].mxu0 }
 0x568   :  { %v3290_v62 = vadd.f32 %v5393_v36, %v7684_v35  ;;  %v3140_v18 = vpop.f32.mrb[109].mxu0 }
 0x569   :  { %v3289_v42 = vadd.f32 %v7684_v35, %v3140_v18 }
 0x56a   :  { %v3322_v25 = vmax.f32 %v3290_v62, 0.0 }
 0x56b   :  { %v3321_v31 = vmax.f32 %v3289_v42, 0.0 }
 0x56d   :  { %v7712_v16 = vpack.c.bf16 %v3322_v25, %v3321_v31 }
 0x56f   :  { %v5396_v44 = vpop.f32.mrb[110].mxu0 }
 0x570   :  { %v3292_v45 = vadd.f32 %v5396_v44, %v7684_v35  ;;  %v3150_v50 = vpop.f32.mrb[111].mxu0 }
 0x571   :  { %v3291_v43 = vadd.f32 %v7684_v35, %v3150_v50 }
 0x572   :  { %v3324_v56 = vmax.f32 %v3292_v45, 0.0 }
 0x573   :  { %v3323_v40 = vmax.f32 %v3291_v43, 0.0 }
 0x575   :  { %v7716_v55 = vpack.c.bf16 %v3324_v56, %v3323_v40 }
 0x577   :  { %v5399_v20 = vpop.f32.mrb[112].mxu0 }
 0x578   :  { %v3294_v17 = vadd.f32 %v5399_v20, %v7684_v35  ;;  %v3160_v34 = vpop.f32.mrb[113].mxu0 }
 0x579   :  { %v3293_v51 = vadd.f32 %v7684_v35, %v3160_v34 }
 0x57a   :  { %v3326_v46 = vmax.f32 %v3294_v17, 0.0 }
 0x57b   :  { %v3325_v37 = vmax.f32 %v3293_v51, 0.0 }
 0x57d   :  { %v7720_v15 = vpack.c.bf16 %v3326_v46, %v3325_v37 }
 0x57f   :  { %v5402_v24 = vpop.f32.mrb[114].mxu0  ;;  %5733 = vmatprep.subr.bf16.mxu1 %v7720_v15 }
 0x580   :  { %v3296_v47 = vadd.f32 %v5402_v24, %v7684_v35  ;;  %v3170_v59 = vpop.f32.mrb[115].mxu0  ;;  %5735 = vmatpush3.bf16.msra.mxu1 %v7688_v30 }
 0x581   :  { %v3295_v61 = vadd.f32 %v7684_v35, %v3170_v59 }
 0x582   :  { %v3328_v19 = vmax.f32 %v3296_v47, 0.0 }
 0x583   :  { %v3327_v23 = vmax.f32 %v3295_v61, 0.0 }
 0x585   :  { %v7726_v21 = vpack.c.bf16 %v3328_v19, %v3327_v23 }
 0x587   :  { %v5405_v38 = vpop.f32.mrb[116].mxu0  ;;  %5737 = vmatprep.subr.bf16.mxu1 %v7726_v21 }
 0x588   :  { %v3298_v22 = vadd.f32 %v5405_v38, %v7684_v35  ;;  %v3180_v32 = vpop.f32.mrb[117].mxu0  ;;  %5739 = vmatpush3.bf16.msra.mxu1 %v7692_v57 }
 0x589   :  { %v3297_v39 = vadd.f32 %v7684_v35, %v3180_v32 }
 0x58a   :  { %v3330_v41 = vmax.f32 %v3298_v22, 0.0 }
 0x58b   :  { %v3329_v26 = vmax.f32 %v3297_v39, 0.0 }
 0x58d   :  { %v5740_v48 = vpack.c.bf16 %v3330_v41, %v3329_v26  ;;  %v3341_v41 = vld [vmem:[#allocation6] sm:$0xff]  ;;  %v3344_v26 = vld [vmem:[#allocation6 + $0x18] sm:$0xff] }
 0x58f   :  { %v5408_v58 = vpop.f32.mrb[118].mxu0  ;;  %5741 = vmatprep.subr.bf16.mxu1 %v5740_v48 }
 0x590   :  { %v3300_v52 = vadd.f32 %v5408_v58, %v7684_v35  ;;  %v3190_v60 = vpop.f32.mrb[119].mxu0  ;;  %5743 = vmatpush3.bf16.msra.mxu1 %v7696_v33  ;;  %v3343_v58 = vld [vmem:[#allocation6 + $0x10] sm:$0xff] }
 0x591   :  { %v3299_v28 = vadd.f32 %v7684_v35, %v3190_v60  ;;  %v3348_v60 = vld [vmem:[#allocation6 + $0x38] sm:$0xff] }
 0x592   :  { %v3332_v63 = vmax.f32 %v3300_v52, 0.0  ;;  %v3346_v52 = vld [vmem:[#allocation6 + $0x28] sm:$0xff] }
 0x593   :  { %v3331_v53 = vmax.f32 %v3299_v28, 0.0  ;;  %v3350_v28 = vld [vmem:[#allocation6 + $0x48] sm:$0xff] }
 0x595   :  { %v5744_v27 = vpack.c.bf16 %v3332_v63, %v3331_v53  ;;  %v3356_v63 = vld [vmem:[#allocation6 + $0x78] sm:$0xff]  ;;  %v3358_v53 = vld [vmem:[#allocation6 + $0x88] sm:$0xff] }
 0x597   :  { %v5411_v36 = vpop.f32.mrb[120].mxu0  ;;  %5745 = vmatprep.subr.bf16.mxu1 %v5744_v27 }
 0x598   :  { %v3302_v62 = vadd.f32 %v5411_v36, %v7684_v35  ;;  %v3200_v18 = vpop.f32.mrb[121].mxu0  ;;  %5747 = vmatpush3.bf16.msra.mxu1 %v7700_v29  ;;  %v3362_v36 = vld [vmem:[#allocation6 + $0xa8] sm:$0xff] }
 0x599   :  { %v3301_v42 = vadd.f32 %v7684_v35, %v3200_v18  ;;  %v3364_v18 = vld [vmem:[#allocation6 + $0xb8] sm:$0xff] }
 0x59a   :  { %v3334_v25 = vmax.f32 %v3302_v62, 0.0  ;;  %v3361_v62 = vld [vmem:[#allocation6 + $0xa0] sm:$0xff] }
 0x59b   :  { %v3333_v31 = vmax.f32 %v3301_v42, 0.0  ;;  %v3366_v42 = vld [vmem:[#allocation6 + $0xc8] sm:$0xff] }
 0x59d   :  { %v5748_v44 = vpack.c.bf16 %v3334_v25, %v3333_v31  ;;  %v3365_v25 = vld [vmem:[#allocation6 + $0xc0] sm:$0xff]  ;;  %v3368_v31 = vld [vmem:[#allocation6 + $0xd8] sm:$0xff] }
 0x59f   :  { %v5414_v45 = vpop.f32.mrb[122].mxu0  ;;  %5749 = vmatprep.subr.bf16.mxu1 %v5748_v44 }
 0x5a0   :  { %v3304_v50 = vadd.f32 %v5414_v45, %v7684_v35  ;;  %v3210_v43 = vpop.f32.mrb[123].mxu0  ;;  %5751 = vmatpush3.bf16.msra.mxu1 %v7704_v54  ;;  %v3369_v45 = vld [vmem:[#allocation6 + $0xe0] sm:$0xff] }
 0x5a1   :  { %v3303_v56 = vadd.f32 %v7684_v35, %v3210_v43  ;;  %v3371_v43 = vld [vmem:[#allocation6 + $0xf0] sm:$0xff] }
 0x5a2   :  { %v3336_v40 = vmax.f32 %v3304_v50, 0.0  ;;  %v3372_v50 = vld [vmem:[#allocation6 + $0xf8] sm:$0xff] }
 0x5a3   :  { %v3335_v20 = vmax.f32 %v3303_v56, 0.0  ;;  %v3519_v56 = vld [vmem:[#allocation8 + $0x8] sm:$0xff] }
 0x5a5   :  { %v5752_v17 = vpack.c.bf16 %v3336_v40, %v3335_v20  ;;  %v3518_v40 = vld [vmem:[#allocation8] sm:$0xff]  ;;  %v3521_v20 = vld [vmem:[#allocation8 + $0x18] sm:$0xff] }
 0x5a7   :  { %v5417_v34 = vpop.f32.mrb[124].mxu0  ;;  %5753 = vmatprep.subr.bf16.mxu1 %v5752_v17 }
 0x5a8   :  { %v3306_v51 = vadd.f32 %v5417_v34, %v7684_v35  ;;  %v3220_v46 = vpop.f32.mrb[125].mxu0  ;;  %5755 = vmatpush3.bf16.msra.mxu1 %v7708_v49  ;;  %v3523_v34 = vld [vmem:[#allocation8 + $0x28] sm:$0xff] }
 0x5a9   :  { %v3305_v37 = vadd.f32 %v7684_v35, %v3220_v46  ;;  %v3525_v46 = vld [vmem:[#allocation8 + $0x38] sm:$0xff] }
 0x5aa   :  { %v3338_v24 = vmax.f32 %v3306_v51, 0.0  ;;  %v3522_v51 = vld [vmem:[#allocation8 + $0x20] sm:$0xff] }
 0x5ab   :  { %v3337_v47 = vmax.f32 %v3305_v37, 0.0  ;;  %v3524_v37 = vld [vmem:[#allocation8 + $0x30] sm:$0xff] }
 0x5ad   :  { %v5756_v59 = vpack.c.bf16 %v3338_v24, %v3337_v47  ;;  %v3527_v24 = vld [vmem:[#allocation8 + $0x48] sm:$0xff]  ;;  %v3526_v47 = vld [vmem:[#allocation8 + $0x40] sm:$0xff] }
 0x5af   :  { %v5420_v61 = vpop.f32.mrb[126].mxu0  ;;  %5757 = vmatprep.subr.bf16.mxu1 %v5756_v59 }
 0x5b0   :  { %v3308_v19 = vadd.f32 %v5420_v61, %v7684_v35  ;;  %v3230_v23 = vpop.f32.mrb[127].mxu0  ;;  %5759 = vmatpush3.bf16.msra.mxu1 %v7712_v16  ;;  %v3528_v61 = vld [vmem:[#allocation8 + $0x50] sm:$0xff] }
 0x5b1   :  { %v3307_v38 = vadd.f32 %v7684_v35, %v3230_v23  ;;  %v3345_v35 = vld [vmem:[#allocation6 + $0x20] sm:$0xff] }
 0x5b2   :  { %v3340_v22 = vmax.f32 %v3308_v19, 0.0  ;;  %v3531_v19 = vld [vmem:[#allocation8 + $0x68] sm:$0xff]  ;;  %v3530_v23 = vld [vmem:[#allocation8 + $0x60] sm:$0xff] }
 0x5b3   :  { %v3339_v32 = vmax.f32 %v3307_v38, 0.0  ;;  %v3533_v38 = vld [vmem:[#allocation8 + $0x78] sm:$0xff] }
 0x5b5   :  { %v5760_v39 = vpack.c.bf16 %v3340_v22, %v3339_v32  ;;  %v3532_v22 = vld [vmem:[#allocation8 + $0x70] sm:$0xff]  ;;  %v3535_v32 = vld [vmem:[#allocation8 + $0x88] sm:$0xff] }
 0x5b7   :  { %5761 = vmatprep.subr.bf16.mxu1 %v5760_v39 }
 0x5b8   :  { %5763 = vmatpush3.bf16.msra.mxu1 %v7716_v55 }
 0x5b9   :  { %5765 = vmatprep.subr.bf16.mxu1 %v7720_v15  ;;  %v3347_v15 = vld [vmem:[#allocation6 + $0x30] sm:$0xff] }
 0x5bb   :  { %3438 = vmatmul.mubr.f32.vlgmr.msra.gmra.mrb[192].mxu1 %v3341_v41  ;;  %v3537_v41 = vld [vmem:[#allocation8 + $0x98] sm:$0xff] }
 0x5bc   :  { %5767 = vmatpush3.bf16.msra.mxu1 %v7688_v30  ;;  %3442 = vmatprep.mubr.f32.mxu1 %v3344_v26  ;;  %v3349_v30 = vld [vmem:[#allocation6 + $0x40] sm:$0xff]  ;;  %v3536_v26 = vld [vmem:[#allocation8 + $0x90] sm:$0xff] }
 0x5bd   :  { %5769 = vmatprep.subr.bf16.mxu1 %v7726_v21  ;;  %v3352_v21 = vld [vmem:[#allocation6 + $0x58] sm:$0xff] }
 0x5bf   :  { %3443 = vmatmul.mubr.f32.gmra.mrb[194].mxu1 %v3343_v58  ;;  %v3539_v58 = vld [vmem:[#allocation8 + $0xa8] sm:$0xff] }
 0x5c0   :  { %5771 = vmatpush3.bf16.msra.mxu1 %v7692_v57  ;;  %3447 = vmatprep.mubr.f32.mxu1 %v3346_v52  ;;  %v3351_v57 = vld [vmem:[#allocation6 + $0x50] sm:$0xff]  ;;  %v3538_v52 = vld [vmem:[#allocation8 + $0xa0] sm:$0xff] }
 0x5c1   :  { %5773 = vmatprep.subr.bf16.mxu1 %v5740_v48  ;;  %v3354_v48 = vld [vmem:[#allocation6 + $0x68] sm:$0xff] }
 0x5c3   :  { %3448 = vmatmul.mubr.f32.gmra.mrb[196].mxu1 %v3345_v35  ;;  %v3541_v35 = vld [vmem:[#allocation8 + $0xb8] sm:$0xff] }
 0x5c4   :  { %5775 = vmatpush3.bf16.msra.mxu1 %v7696_v33  ;;  %3452 = vmatprep.mubr.f32.mxu1 %v3348_v60  ;;  %v3353_v33 = vld [vmem:[#allocation6 + $0x60] sm:$0xff]  ;;  %v3540_v60 = vld [vmem:[#allocation8 + $0xb0] sm:$0xff] }
 0x5c5   :  { %5777 = vmatprep.subr.bf16.mxu1 %v5744_v27  ;;  %v3360_v27 = vld [vmem:[#allocation6 + $0x98] sm:$0xff] }
 0x5c7   :  { %3453 = vmatmul.mubr.f32.gmra.mrb[198].mxu1 %v3347_v15  ;;  %v3543_v15 = vld [vmem:[#allocation8 + $0xc8] sm:$0xff] }
 0x5c8   :  { %5779 = vmatpush3.bf16.msra.mxu1 %v7700_v29  ;;  %3457 = vmatprep.mubr.f32.mxu1 %v3350_v28  ;;  %v3355_v29 = vld [vmem:[#allocation6 + $0x70] sm:$0xff]  ;;  %v3542_v28 = vld [vmem:[#allocation8 + $0xc0] sm:$0xff] }
 0x5c9   :  { %5781 = vmatprep.subr.bf16.mxu1 %v5748_v44  ;;  %v3370_v44 = vld [vmem:[#allocation6 + $0xe8] sm:$0xff] }
 0x5cb   :  { %3458 = vmatmul.mubr.f32.gmra.mrb[200].mxu1 %v3349_v30  ;;  %v3545_v30 = vld [vmem:[#allocation8 + $0xd8] sm:$0xff] }
 0x5cc   :  { %5783 = vmatpush3.bf16.msra.mxu1 %v7704_v54  ;;  %3462 = vmatprep.mubr.f32.mxu1 %v3352_v21  ;;  %v3357_v54 = vld [vmem:[#allocation6 + $0x80] sm:$0xff]  ;;  %v3544_v21 = vld [vmem:[#allocation8 + $0xd0] sm:$0xff] }
 0x5cd   :  { %5785 = vmatprep.subr.bf16.mxu1 %v5752_v17  ;;  %v3520_v17 = vld [vmem:[#allocation8 + $0x10] sm:$0xff] }
 0x5cf   :  { %3463 = vmatmul.mubr.f32.gmra.mrb[202].mxu1 %v3351_v57  ;;  %v3547_v57 = vld [vmem:[#allocation8 + $0xe8] sm:$0xff] }
 0x5d0   :  { %5787 = vmatpush3.bf16.msra.mxu1 %v7708_v49  ;;  %3467 = vmatprep.mubr.f32.mxu1 %v3354_v48  ;;  %v3359_v49 = vld [vmem:[#allocation6 + $0x90] sm:$0xff]  ;;  %v3546_v48 = vld [vmem:[#allocation8 + $0xe0] sm:$0xff] }
 0x5d1   :  { %5789 = vmatprep.subr.bf16.mxu1 %v5756_v59  ;;  %v3529_v59 = vld [vmem:[#allocation8 + $0x58] sm:$0xff] }
 0x5d3   :  { %3468 = vmatmul.mubr.f32.gmra.mrb[204].mxu1 %v3353_v33  ;;  %v3549_v33 = vld [vmem:[#allocation8 + $0xf8] sm:$0xff] }
 0x5d4   :  { %5791 = vmatpush3.bf16.msra.mxu1 %v7712_v16  ;;  %3472 = vmatprep.mubr.f32.mxu1 %v3356_v63  ;;  %v3363_v16 = vld [vmem:[#allocation6 + $0xb0] sm:$0xff] }
 0x5d5   :  { %5793 = vmatprep.subr.bf16.mxu1 %v5760_v39  ;;  %v3534_v39 = vld [vmem:[#allocation8 + $0x80] sm:$0xff]  ;;  %v3548_v63 = vld [vmem:[#allocation8 + $0xf0] sm:$0xff] }
 0x5d7   :  { %3473 = vmatmul.mubr.f32.gmra.mrb[206].mxu1 %v3355_v29  ;;  %v3725_v29 = vld [vmem:[%s7956_s9] sm:$0xff] }
 0x5d8   :  { %5795 = vmatpush3.bf16.msra.mxu1 %v7716_v55  ;;  %3477 = vmatprep.mubr.f32.mxu1 %v3358_v53  ;;  %v3367_v55 = vld [vmem:[#allocation6 + $0xd0] sm:$0xff]  ;;  %v3726_v53 = vld [vmem:[%s7956_s9 + $0x8] sm:$0xff] }
 0x5db   :  { %3478 = vmatmul.mubr.f32.gmra.mrb[208].mxu1 %v3357_v54  ;;  %v5796_v54 = vpack.c.bf16 %v3726_v53, %v3725_v29 }
 0x5dc   :  { %3482 = vmatprep.mubr.f32.mxu1 %v3360_v27  ;;  %v3727_v27 = vld [vmem:[%s7956_s9 + $0x10] sm:$0xff] }
 0x5dd   :  { %5797 = vmatprep.subr.bf16.mxu0 %v5796_v54  ;;  %5840 = vmatprep.subr.bf16.mxu1 %v5796_v54 }
 0x5de   :  { %5799 = vmatpush3.bf16.msra.mxu0 %v5796_v54 }
 0x5df   :  { %3483 = vmatmul.mubr.f32.gmra.mrb[210].mxu1 %v3359_v49  ;;  %v3728_v49 = vld [vmem:[%s7956_s9 + $0x18] sm:$0xff] }
 0x5e0   :  { %3487 = vmatprep.mubr.f32.mxu1 %v3362_v36  ;;  %v5800_v36 = vpack.c.bf16 %v3728_v49, %v3727_v27 }
 0x5e2   :  { %5801 = vmatprep.subr.bf16.mxu0 %v5800_v36 }
 0x5e3   :  { %3488 = vmatmul.mubr.f32.gmra.mrb[212].mxu1 %v3361_v62  ;;  %5803 = vmatpush3.bf16.msra.mxu0 %v5800_v36 }
 0x5e4   :  { %3492 = vmatprep.mubr.f32.mxu1 %v3364_v18 }
 0x5e7   :  { %3493 = vmatmul.mubr.f32.gmra.mrb[214].mxu1 %v3363_v16 }
 0x5e8   :  { %3497 = vmatprep.mubr.f32.mxu1 %v3366_v42 }
 0x5eb   :  { %3498 = vmatmul.mubr.f32.gmra.mrb[216].mxu1 %v3365_v25 }
 0x5ec   :  { %3502 = vmatprep.mubr.f32.mxu1 %v3368_v31 }
 0x5ef   :  { %3503 = vmatmul.mubr.f32.gmra.mrb[218].mxu1 %v3367_v55 }
 0x5f0   :  { %3507 = vmatprep.mubr.f32.mxu1 %v3370_v44 }
 0x5f3   :  { %3508 = vmatmul.mubr.f32.gmra.mrb[220].mxu1 %v3369_v45 }
 0x5f4   :  { %3512 = vmatprep.mubr.f32.mxu1 %v3372_v50 }
 0x5f7   :  { %3513 = vmatmul.mubr.f32.gmra.mrb[222].mxu1 %v3371_v43 }
 0x5f8   :  { %3614 = vmatprep.mubr.f32.mxu1 %v3519_v56 }
 0x5fb   :  { %3615 = vmatmul.mubr.f32.vlgmr.msra.gmra.mrb[224].mxu1 %v3518_v40 }
 0x5fc   :  { %3619 = vmatprep.mubr.f32.mxu1 %v3521_v20  ;;  %5842 = vmatpush3.bf16.msra.mxu1 %v5796_v54 }
 0x5fd   :  { %5841 = vmatprep.subr.bf16.mxu1 %v5800_v36 }
 0x5ff   :  { %3620 = vmatmul.mubr.f32.gmra.mrb[226].mxu1 %v3520_v17 }
 0x600   :  { %3624 = vmatprep.mubr.f32.mxu1 %v3523_v34  ;;  %5843 = vmatpush3.bf16.msra.mxu1 %v5800_v36 }
 0x603   :  { %3625 = vmatmul.mubr.f32.gmra.mrb[228].mxu1 %v3522_v51 }
 0x604   :  { %3629 = vmatprep.mubr.f32.mxu1 %v3525_v46 }
 0x607   :  { %3630 = vmatmul.mubr.f32.gmra.mrb[230].mxu1 %v3524_v37 }
 0x608   :  { %3634 = vmatprep.mubr.f32.mxu1 %v3527_v24 }
 0x60b   :  { %3635 = vmatmul.mubr.f32.gmra.mrb[232].mxu1 %v3526_v47 }
 0x60c   :  { %3639 = vmatprep.mubr.f32.mxu1 %v3529_v59 }
 0x60f   :  { %3640 = vmatmul.mubr.f32.gmra.mrb[234].mxu1 %v3528_v61 }
 0x610   :  { %3644 = vmatprep.mubr.f32.mxu1 %v3531_v19 }
 0x613   :  { %3645 = vmatmul.mubr.f32.gmra.mrb[236].mxu1 %v3530_v23 }
 0x614   :  { %3649 = vmatprep.mubr.f32.mxu1 %v3533_v38 }
 0x617   :  { %3650 = vmatmul.mubr.f32.gmra.mrb[238].mxu1 %v3532_v22 }
 0x618   :  { %3654 = vmatprep.mubr.f32.mxu1 %v3535_v32 }
 0x61b   :  { %3655 = vmatmul.mubr.f32.gmra.mrb[240].mxu1 %v3534_v39 }
 0x61c   :  { %3659 = vmatprep.mubr.f32.mxu1 %v3537_v41 }
 0x61f   :  { %3660 = vmatmul.mubr.f32.gmra.mrb[242].mxu1 %v3536_v26 }
 0x620   :  { %3664 = vmatprep.mubr.f32.mxu1 %v3539_v58 }
 0x623   :  { %3665 = vmatmul.mubr.f32.gmra.mrb[244].mxu1 %v3538_v52 }
 0x624   :  { %3669 = vmatprep.mubr.f32.mxu1 %v3541_v35 }
 0x627   :  { %3670 = vmatmul.mubr.f32.gmra.mrb[246].mxu1 %v3540_v60 }
 0x628   :  { %3674 = vmatprep.mubr.f32.mxu1 %v3543_v15 }
 0x62b   :  { %3675 = vmatmul.mubr.f32.gmra.mrb[248].mxu1 %v3542_v28 }
 0x62c   :  { %3679 = vmatprep.mubr.f32.mxu1 %v3545_v30 }
 0x62f   :  { %3680 = vmatmul.mubr.f32.gmra.mrb[250].mxu1 %v3544_v21 }
 0x630   :  { %3684 = vmatprep.mubr.f32.mxu1 %v3547_v57 }
 0x633   :  { %3685 = vmatmul.mubr.f32.gmra.mrb[252].mxu1 %v3546_v48 }
 0x634   :  { %3689 = vmatprep.mubr.f32.mxu1 %v3549_v33 }
 0x637   :  { %3690 = vmatmul.mubr.f32.gmra.mrb[254].mxu1 %v3548_v63 }
 0x68e   :  { %v4926_v62 = vpop.f32.mrb[192].mxu1 }
 0x68f   :  { %v4927_v18 = vpop.f32.mrb[193].mxu1 }
 0x690   :  { %v4928_v16 = vadd.f32 %v4927_v18, %v4926_v62 }
 0x692   :  { %v4929_v42 = vpop.f32.mrb[194].mxu1 }
 0x693   :  { %v4930_v25 = vpop.f32.mrb[195].mxu1 }
 0x694   :  { %v4931_v31 = vadd.f32 %v4930_v25, %v4929_v42 }
 0x696   :  { %v4932_v55 = vpop.f32.mrb[196].mxu1 }
 0x697   :  { %v4933_v44 = vpop.f32.mrb[197].mxu1 }
 0x698   :  { %v4934_v45 = vadd.f32 %v4933_v44, %v4932_v55 }
 0x69a   :  { %v4935_v50 = vpop.f32.mrb[198].mxu1 }
 0x69b   :  { %v4936_v43 = vpop.f32.mrb[199].mxu1 }
 0x69c   :  { %v4937_v56 = vadd.f32 %v4936_v43, %v4935_v50 }
 0x69e   :  { %v4938_v40 = vpop.f32.mrb[200].mxu1 }
 0x69f   :  { %v4939_v20 = vpop.f32.mrb[201].mxu1 }
 0x6a0   :  { %v4940_v17 = vadd.f32 %v4939_v20, %v4938_v40 }
 0x6a2   :  { %v4941_v34 = vpop.f32.mrb[202].mxu1 }
 0x6a3   :  { %v4942_v51 = vpop.f32.mrb[203].mxu1 }
 0x6a4   :  { %v7770_v46 = vadd.f32 %v4942_v51, %v4941_v34 }
 0x6a6   :  { %v4944_v37 = vpop.f32.mrb[204].mxu1 }
 0x6a7   :  { %v4945_v24 = vpop.f32.mrb[205].mxu1 }
 0x6a8   :  { %v7772_v47 = vadd.f32 %v4945_v24, %v4944_v37 }
 0x6aa   :  { %v4947_v59 = vpop.f32.mrb[206].mxu1 }
 0x6ab   :  { %v4948_v61 = vpop.f32.mrb[207].mxu1 }
 0x6ac   :  { %v7774_v19 = vadd.f32 %v4948_v61, %v4947_v59 }
 0x6ae   :  { %v4950_v23 = vpop.f32.mrb[208].mxu1 }
 0x6af   :  { %v4951_v38 = vpop.f32.mrb[209].mxu1 }
 0x6b0   :  { %v7776_v22 = vadd.f32 %v4951_v38, %v4950_v23 }
 0x6b2   :  { %v4953_v32 = vpop.f32.mrb[210].mxu1 }
 0x6b3   :  { %v4954_v39 = vpop.f32.mrb[211].mxu1 }
 0x6b4   :  { %v7778_v41 = vadd.f32 %v4954_v39, %v4953_v32 }
 0x6b6   :  { %v4956_v26 = vpop.f32.mrb[212].mxu1 }
 0x6b7   :  { %v4957_v58 = vpop.f32.mrb[213].mxu1 }
 0x6b8   :  { %v7780_v52 = vadd.f32 %v4957_v58, %v4956_v26 }
 0x6ba   :  { %v4959_v35 = vpop.f32.mrb[214].mxu1 }
 0x6bb   :  { %v4960_v60 = vpop.f32.mrb[215].mxu1 }
 0x6bc   :  { %v7782_v15 = vadd.f32 %v4960_v60, %v4959_v35 }
 0x6be   :  { %v4962_v28 = vpop.f32.mrb[216].mxu1 }
 0x6bf   :  { %v4963_v30 = vpop.f32.mrb[217].mxu1 }
 0x6c0   :  { %v7784_v21 = vadd.f32 %v4963_v30, %v4962_v28 }
 0x6c2   :  { %v4965_v57 = vpop.f32.mrb[218].mxu1 }
 0x6c3   :  { %v4966_v48 = vpop.f32.mrb[219].mxu1 }
 0x6c4   :  { %v7786_v33 = vadd.f32 %v4966_v48, %v4965_v57 }
 0x6c6   :  { %v4968_v63 = vpop.f32.mrb[220].mxu1 }
 0x6c7   :  { %v4969_v29 = vpop.f32.mrb[221].mxu1 }
 0x6c8   :  { %v7788_v53 = vadd.f32 %v4969_v29, %v4968_v63 }
 0x6ca   :  { %v4971_v54 = vpop.f32.mrb[222].mxu1 }
 0x6cb   :  { %v4972_v27 = vpop.f32.mrb[223].mxu1 }
 0x6cc   :  { %v7790_v49 = vadd.f32 %v4972_v27, %v4971_v54 }
 0x6ce   :  { %v5006_v36 = vpop.f32.mrb[224].mxu1 }
 0x6cf   :  { %v5007_v62 = vpop.f32.mrb[225].mxu1 }
 0x6d0   :  { %v5008_v18 = vadd.f32 %v5007_v62, %v5006_v36 }
 0x6d2   :  { %v3695_v42 = vmax.f32 %v4928_v16, %v5008_v18  ;;  %v5009_v25 = vpop.f32.mrb[226].mxu1 }
 0x6d3   :  { %v5010_v55 = vpop.f32.mrb[227].mxu1 }
 0x6d4   :  { %v5011_v44 = vadd.f32 %v5010_v55, %v5009_v25  ;;  %5429 = vmatprep.mubr.msk.f32.mxu0 %vm2270_vm2, %v3695_v42 }
 0x6d6   :  { %v3696_v50 = vmax.f32 %v4931_v31, %v5011_v44  ;;  %v5012_v43 = vpop.f32.mrb[228].mxu1 }
 0x6d7   :  { %v5013_v40 = vpop.f32.mrb[229].mxu1 }
 0x6d8   :  { %v5014_v20 = vadd.f32 %v5013_v40, %v5012_v43  ;;  %5430 = vmatmul.mubr.msk.f32.vlgmr.msra.gmra.mrb[128].mxu0 %vm2270_vm2, %v3696_v50 }
 0x6da   :  { %v3697_v34 = vmax.f32 %v4934_v45, %v5014_v20  ;;  %v5015_v51 = vpop.f32.mrb[230].mxu1 }
 0x6db   :  { %v5016_v37 = vpop.f32.mrb[231].mxu1 }
 0x6dc   :  { %v5017_v24 = vadd.f32 %v5016_v37, %v5015_v51  ;;  %5432 = vmatprep.mubr.msk.f32.mxu0 %vm2270_vm2, %v3697_v34 }
 0x6de   :  { %v3698_v59 = vmax.f32 %v4937_v56, %v5017_v24  ;;  %v5018_v61 = vpop.f32.mrb[232].mxu1 }
 0x6df   :  { %v5019_v16 = vpop.f32.mrb[233].mxu1 }
 0x6e0   :  { %v5020_v23 = vadd.f32 %v5019_v16, %v5018_v61  ;;  %5433 = vmatmul.mubr.msk.f32.gmra.mrb[130].mxu0 %vm2270_vm2, %v3698_v59 }
 0x6e2   :  { %v3699_v38 = vmax.f32 %v4940_v17, %v5020_v23  ;;  %v5021_v32 = vpop.f32.mrb[234].mxu1 }
 0x6e3   :  { %v5022_v31 = vpop.f32.mrb[235].mxu1 }
 0x6e4   :  { %v5023_v39 = vadd.f32 %v5022_v31, %v5021_v32  ;;  %5435 = vmatprep.mubr.msk.f32.mxu0 %vm2270_vm2, %v3699_v38 }
 0x6e6   :  { %v3700_v26 = vmax.f32 %v7770_v46, %v5023_v39  ;;  %v5024_v45 = vpop.f32.mrb[236].mxu1 }
 0x6e7   :  { %v5025_v58 = vpop.f32.mrb[237].mxu1 }
 0x6e8   :  { %v5026_v35 = vadd.f32 %v5025_v58, %v5024_v45  ;;  %5436 = vmatmul.mubr.msk.f32.gmra.mrb[132].mxu0 %vm2270_vm2, %v3700_v26 }
 0x6ea   :  { %v3701_v56 = vmax.f32 %v7772_v47, %v5026_v35  ;;  %v5027_v60 = vpop.f32.mrb[238].mxu1 }
 0x6eb   :  { %v5028_v28 = vpop.f32.mrb[239].mxu1 }
 0x6ec   :  { %v5029_v30 = vadd.f32 %v5028_v28, %v5027_v60  ;;  %5438 = vmatprep.mubr.msk.f32.mxu0 %vm2270_vm2, %v3701_v56 }
 0x6ee   :  { %v3702_v17 = vmax.f32 %v7774_v19, %v5029_v30  ;;  %v5030_v57 = vpop.f32.mrb[240].mxu1 }
 0x6ef   :  { %v5031_v48 = vpop.f32.mrb[241].mxu1 }
 0x6f0   :  { %v5032_v63 = vadd.f32 %v5031_v48, %v5030_v57  ;;  %5439 = vmatmul.mubr.msk.f32.gmra.mrb[134].mxu0 %vm2270_vm2, %v3702_v17 }
 0x6f2   :  { %v3703_v46 = vmax.f32 %v7776_v22, %v5032_v63  ;;  %v5033_v29 = vpop.f32.mrb[242].mxu1 }
 0x6f3   :  { %v5034_v54 = vpop.f32.mrb[243].mxu1 }
 0x6f4   :  { %v5035_v27 = vadd.f32 %v5034_v54, %v5033_v29  ;;  %5441 = vmatprep.mubr.msk.f32.mxu1 %vm2270_vm2, %v3703_v46 }
 0x6f6   :  { %v3704_v47 = vmax.f32 %v7778_v41, %v5035_v27  ;;  %v5036_v36 = vpop.f32.mrb[244].mxu1 }
 0x6f7   :  { %v5037_v62 = vpop.f32.mrb[245].mxu1 }
 0x6f8   :  { %v5038_v18 = vadd.f32 %v5037_v62, %v5036_v36  ;;  %5442 = vmatmul.mubr.msk.f32.vlgmr.msra.gmra.mrb[0].mxu1 %vm2270_vm2, %v3704_v47 }
 0x6fa   :  { %v3705_v19 = vmax.f32 %v7780_v52, %v5038_v18  ;;  %v5039_v42 = vpop.f32.mrb[246].mxu1 }
 0x6fb   :  { %v5040_v25 = vpop.f32.mrb[247].mxu1 }
 0x6fc   :  { %v5041_v55 = vadd.f32 %v5040_v25, %v5039_v42  ;;  %5444 = vmatprep.mubr.msk.f32.mxu1 %vm2270_vm2, %v3705_v19 }
 0x6fe   :  { %v3706_v22 = vmax.f32 %v7782_v15, %v5041_v55  ;;  %v5042_v44 = vpop.f32.mrb[248].mxu1 }
 0x6ff   :  { %v5043_v50 = vpop.f32.mrb[249].mxu1 }
 0x700   :  { %v5044_v43 = vadd.f32 %v5043_v50, %v5042_v44  ;;  %5445 = vmatmul.mubr.msk.f32.gmra.mrb[2].mxu1 %vm2270_vm2, %v3706_v22  ;;  %v7822_v44 = vmov 0.0   ;;  %v7824_v50 = vmov 0.0  }
 0x702   :  { %v3707_v41 = vmax.f32 %v7784_v21, %v5044_v43  ;;  %v5045_v40 = vpop.f32.mrb[250].mxu1  ;;  %v7826_v43 = vmov 0.0  }
 0x703   :  { %v5046_v20 = vpop.f32.mrb[251].mxu1 }
 0x704   :  { %v5047_v34 = vadd.f32 %v5046_v20, %v5045_v40  ;;  %5447 = vmatprep.mubr.msk.f32.mxu1 %vm2270_vm2, %v3707_v41  ;;  %v7828_v41 = vmov 0.0  }
 0x706   :  { %v3708_v52 = vmax.f32 %v7786_v33, %v5047_v34  ;;  %v5048_v51 = vpop.f32.mrb[252].mxu1  ;;  %v4659_v33 = vld [vmem:[%s7958_s11] ss:$0 sm:$0xff]  ;;  %s7830_s11 = smov 0  }
 0x707   :  { %v5049_v37 = vpop.f32.mrb[253].mxu1 }
 0x708   :  { %v5050_v24 = vadd.f32 %v5049_v37, %v5048_v51  ;;  %5448 = vmatmul.mubr.msk.f32.gmra.mrb[4].mxu1 %vm2270_vm2, %v3708_v52 }
 0x70a   :  { %v3709_v15 = vmax.f32 %v7788_v53, %v5050_v24  ;;  %v5051_v59 = vpop.f32.mrb[254].mxu1 }
 0x70b   :  { %v5052_v61 = vpop.f32.mrb[255].mxu1 }
 0x70c   :  { %v5053_v16 = vadd.f32 %v5052_v61, %v5051_v59  ;;  %5450 = vmatprep.mubr.msk.f32.mxu1 %vm2270_vm2, %v3709_v15 }
 0x70e   :  { %v3710_v21 = vmax.f32 %v7790_v49, %v5053_v16 }
 0x710   :  { %5451 = vmatmul.mubr.msk.f32.gmra.mrb[6].mxu1 %vm2270_vm2, %v3710_v21 }
 0x7ab   :  { %v5431_v23 = vpop.f32.mrb[128].mxu0 }
 0x7ac   :  { %v3856_v38 = vadd.f32 %v5431_v23, %v4659_v33  ;;  %v3850_v32 = vpop.f32.mrb[129].mxu0 }
 0x7ad   :  { %v3851_v31 = vadd.f32 %v4659_v33, %v3850_v32 }
 0x7ae   :  { %3930 = vst [vmem:[#allocation2 + $0x8] sm:$0xff] %v3856_v38 }
 0x7af   :  { %3929 = vst [vmem:[#allocation2] sm:$0xff] %v3851_v31 }
 0x7b3   :  { %v5434_v53 = vpop.f32.mrb[130].mxu0 }
 0x7b4   :  { %v3866_v39 = vadd.f32 %v5434_v53, %v4659_v33  ;;  %v3860_v26 = vpop.f32.mrb[131].mxu0 }
 0x7b5   :  { %v3861_v45 = vadd.f32 %v4659_v33, %v3860_v26 }
 0x7b6   :  { %3932 = vst [vmem:[#allocation2 + $0x18] sm:$0xff] %v3866_v39 }
 0x7b7   :  { %3931 = vst [vmem:[#allocation2 + $0x10] sm:$0xff] %v3861_v45 }
 0x7bb   :  { %v5437_v58 = vpop.f32.mrb[132].mxu0 }
 0x7bc   :  { %v3876_v49 = vadd.f32 %v5437_v58, %v4659_v33  ;;  %v3870_v35 = vpop.f32.mrb[133].mxu0 }
 0x7bd   :  { %v3871_v56 = vadd.f32 %v4659_v33, %v3870_v35 }
 0x7be   :  { %3934 = vst [vmem:[#allocation2 + $0x28] sm:$0xff] %v3876_v49 }
 0x7bf   :  { %3933 = vst [vmem:[#allocation2 + $0x20] sm:$0xff] %v3871_v56 }
 0x7c3   :  { %v5440_v60 = vpop.f32.mrb[134].mxu0 }
 0x7c4   :  { %v3886_v28 = vadd.f32 %v5440_v60, %v4659_v33  ;;  %v3880_v30 = vpop.f32.mrb[135].mxu0 }
 0x7c5   :  { %v3881_v17 = vadd.f32 %v4659_v33, %v3880_v30 }
 0x7c6   :  { %3936 = vst [vmem:[#allocation2 + $0x38] sm:$0xff] %v3886_v28 }
 0x7c7   :  { %3935 = vst [vmem:[#allocation2 + $0x30] sm:$0xff] %v3881_v17 }
 0x7cb   :  { %v5443_v57 = vpop.f32.mrb[0].mxu1 }
 0x7cc   :  { %v3896_v48 = vadd.f32 %v5443_v57, %v4659_v33  ;;  %v3890_v63 = vpop.f32.mrb[1].mxu1 }
 0x7cd   :  { %v3891_v46 = vadd.f32 %v4659_v33, %v3890_v63 }
 0x7ce   :  { %3938 = vst [vmem:[#allocation2 + $0x48] sm:$0xff] %v3896_v48 }
 0x7cf   :  { %3937 = vst [vmem:[#allocation2 + $0x40] sm:$0xff] %v3891_v46 }
 0x7d3   :  { %v5446_v29 = vpop.f32.mrb[2].mxu1 }
 0x7d4   :  { %v3906_v54 = vadd.f32 %v5446_v29, %v4659_v33  ;;  %v3900_v27 = vpop.f32.mrb[3].mxu1 }
 0x7d5   :  { %v3901_v47 = vadd.f32 %v4659_v33, %v3900_v27 }
 0x7d6   :  { %3940 = vst [vmem:[#allocation2 + $0x58] sm:$0xff] %v3906_v54 }
 0x7d7   :  { %3939 = vst [vmem:[#allocation2 + $0x50] sm:$0xff] %v3901_v47 }
 0x7db   :  { %v5449_v36 = vpop.f32.mrb[4].mxu1 }
 0x7dc   :  { %v3916_v62 = vadd.f32 %v5449_v36, %v4659_v33  ;;  %v3910_v18 = vpop.f32.mrb[5].mxu1 }
 0x7dd   :  { %v3911_v19 = vadd.f32 %v4659_v33, %v3910_v18 }
 0x7de   :  { %3942 = vst [vmem:[#allocation2 + $0x68] sm:$0xff] %v3916_v62 }
 0x7df   :  { %3941 = vst [vmem:[#allocation2 + $0x60] sm:$0xff] %v3911_v19 }
 0x7e3   :  { %v5452_v42 = vpop.f32.mrb[6].mxu1 }
 0x7e4   :  { %v3926_v25 = vadd.f32 %v5452_v42, %v4659_v33  ;;  %v3920_v55 = vpop.f32.mrb[7].mxu1 }
 0x7e5   :  { %v3921_v22 = vadd.f32 %v4659_v33, %v3920_v55 }
 0x7e6   :  { %3944 = vst [vmem:[#allocation2 + $0x78] sm:$0xff] %v3926_v25 }
 0x7e7   :  { %3943 = vst [vmem:[#allocation2 + $0x70] sm:$0xff] %v3921_v22 }
 0x7e8 LB: > { %v3958_v40 = vld [vmem:[%s7957_s10] sm:$0xff]  ;;  %v3959_v20 = vld [vmem:[%s7957_s10 + $0x8] sm:$0xff]  ;;  %v3960_v34 = vld [vmem:[%s7957_s10 + $0x10] sm:$0xff]  ;;  %v6343_v52 = vmov 0.0|0.0   ;;  %s6344_s18 = smov 32   ;;  %vm6345_vm3 = vmmov 0   ;;  %s6332_s11 = sphi %s7830_s11, %s3950_s11   ;;  %v6328_v41 = vphi %v7828_v41, %v4061_v41   ;;  %v6324_v43 = vphi %v7826_v43, %v4055_v43   ;;  %v6320_v50 = vphi %v7824_v50, %v7981_v50   ;;  %v6316_v44 = vphi %v7822_v44, %v4245_v44  }
 0x7e9   : > { %5804 = vmatprep.subr.bf16.mxu0 %v6343_v52  ;;  %v5805_v51 = vpack.c.bf16 %v3959_v20, %v3958_v40  ;;  %v3961_v37 = vld [vmem:[%s7957_s10 + $0x18] sm:$0xff]  ;;  %5810 = vmatprep.subr.bf16.mxu1 %v6343_v52  ;;  %v6346_v24 = vmov 0.0   ;;  %s4676_s19 = sshll.u32 %s6332_s11, 1  ;;  %s6347_s2 = smov 64   ;;  %v4062_v49 = vld [vmem:[%s7959_s12] sm:$0xff]  ;;  %v4063_v35 = vld [vmem:[%s7959_s12 + $0x8] sm:$0xff] }
 0x7ea   : > { %3963 = vrot.lane.b32.xlu0 %v6328_v41, %s6344_s18  ;;  %5461 = vmatprep.mubr.msk.f32.mxu0 %vm6345_vm3, %v6346_v24  ;;  %v5808_v15 = vpack.c.bf16 %v3961_v37, %v3960_v34  ;;  %s3956_s20 = scalar_lea.vmem [#allocation2], %s4676_s19  ;;  %v4064_v56 = vld [vmem:[%s7959_s12 + $0x10] sm:$0xff]  ;;  %v5811_v60 = vpack.c.bf16 %v4063_v35, %v4062_v49  ;;  %v4065_v28 = vld [vmem:[%s7959_s12 + $0x18] sm:$0xff]  ;;  %v4148_v48 = vld [vmem:[%s7960_s13] sm:$0xff]  ;;  %s3950_s11 = sadd.s32 1, %s6332_s11  }
 0x7eb   : > { %5806 = vmatpush3.bf16.msra.mxu0 %v5805_v51  ;;  %5472 = vmatprep.mubr.msk.f32.mxu1 %vm6345_vm3, %v6346_v24  ;;  %v5814_v30 = vpack.c.bf16 %v4065_v28, %v4064_v56  ;;  %v4149_v63 = vld [vmem:[%s7960_s13 + $0x8] sm:$0xff]  ;;  %v4150_v29 = vld [vmem:[%s7960_s13 + $0x10] sm:$0xff]  ;;  %v4151_v54 = vld [vmem:[%s7960_s13 + $0x18] sm:$0xff]  ;;  %p3947_p4 = scmp.ge.s32.totalorder %s3950_s11, 64  }
 0x7ec   : > { %5807 = vmatprep.subr.bf16.mxu0 %v6343_v52  ;;  %5812 = vmatpush3.bf16.msra.mxu1 %v5811_v60  ;;  %v5817_v46 = vpack.c.bf16 %v4149_v63, %v4148_v48  ;;  %v5820_v47 = vpack.c.bf16 %v4151_v54, %v4150_v29  ;;  %v4679_v62 = vld [vmem:[%s7961_s14] ss:$0 sm:$0xff]  ;;  %s6348_s4 = smov (%p3947_p4), 32   ;;  %vm6349_vm4 = vmmov (%p3947_p4), 0   ;;  %vm4340_vm5 = vcmask (%p3947_p4), 523264   ;;  %s6351_s10 = smov (%p3947_p4), [#allocation11]  }
 0x7ed   : > { %5813 = vmatprep.subr.bf16.mxu1 %v6343_v52  ;;  %s4422_s12 = sshll.u32 (%p3947_p4), %s6351_s10, 4  ;;  %vm4414_vm6 = vcmask (%p3947_p4), 33792   ;;  %s4423_s12 = int_to_ptr.vmem [resolvable:$true] %s4422_s12 }
 0x7ee   : > { %v3957_v61 = vld [vmem:[%s3956_s20] sm:$0x3]  ;;  %s6264_s13 = scalar_lea.vmem (%p3947_p4), %s4423_s12, 32  ;;  %p6269_p6 = scmp.lt.s32.totalorder (%p3947_p4), %s4423_s12, %s4423_s12 }
 0x7ef   : > { %5809 = vmatpush3.bf16.msra.mxu0 %v5808_v15  ;;  %p6265_p5 = scmp.ne.s32.totalorder (%p3947_p4), %s4423_s12, %s6264_s13  ;;  %p6270_p7 = scmp.lt.s32.totalorder (%p3947_p4), %s6264_s13, %s6264_s13 }
 0x7f0   : > { %5815 = vmatpush3.bf16.msra.mxu1 %v5814_v30  ;;  %5822 = vmatprep.subr.bf16.mxu0 (%p3947_p4), %v6342_v0 }
 0x7f1   : > { %5816 = vmatprep.subr.bf16.mxu1 %v6343_v52  ;;  %p6271_p8 = por (%p3947_p4), %p6270_p7, %p6269_p6 }
 0x7f3   :  { %p6272_p9 = pnand (%p3947_p4), %p6271_p8, %p6265_p5 }
 0x85c   : > { %v3964_v59 = vpop.permute.xlu0 %3963 }
 0x85d   : > { %5462 = vmatmul.mubr.msk.f32.vlgmr.msra.gmra.mrb[0].mxu0 %vm2270_vm2, %v3964_v59  ;;  %v5823_v59 = vpack.c.bf16 (%p3947_p4), %v6527_v2, %v6525_v1  ;;  %v5832_v1 = vpack.c.bf16 (%p3947_p4), %v6556_v9, %v6551_v8  ;;  %v5835_v2 = vpack.c.bf16 (%p3947_p4), %v6566_v11, %v6561_v10 }
 0x85f   :  { %5824 = vmatpush3.bf16.msra.mxu0 (%p3947_p4), %v5823_v59 }
 0x860   :  { %5825 = vmatprep.subr.bf16.mxu0 (%p3947_p4), %v6342_v0 }
 0x930   : > { %v4033_v16 = vpop.f32.mrb[0].mxu0 }
 0x931   : > { %v4037_v21 = vadd.f32 %v4033_v16, %v3957_v61  ;;  %v5463_v33 = vpop.f32.mrb[1].mxu0  ;;  %v6350_v61 = vmov (%p3947_p4), 0.0   ;;  %v5829_v16 = vpack.c.bf16 (%p3947_p4), %v6546_v7, %v6541_v6 }
 0x932   :  { %5494 = vmatprep.mubr.msk.f32.mxu0 (%p3947_p4), %vm6349_vm4, %v6350_v61 }
 0x933   : > { %6160 = vtanh.f32 %v4037_v21  ;;  %v4678_v38 = vmul.f32 -1.442695, %v4037_v21 }
 0x935   : > { %6162 = vpow2.f32 %v4678_v38 }
 0x93d   : > { %v6161_v23 = vpop.eup %6160 }
 0x93e   : > { %4047 = vrot.lane.b32.xlu0 %v6161_v23, %s6347_s2 }
 0x93f   : > { %v6163_v32 = vpop.eup %6162 }
 0x940   : > { %v4041_v31 = vadd.f32 1.0, %v6163_v32 }
 0x942   : > { %6164 = vrcp.f32 %v4041_v31 }
 0x94c   : > { %v6165_v53 = vpop.eup %6164 }
 0x94d   : > { %v4045_v45 = vmul.f32 %v6324_v43, %v6165_v53 }
 0x9b0   : > { %v4048_v39 = vpop.permute.xlu0 %4047 }
 0x9b1   : > { %v4050_v26 = vmul.f32 %v6165_v53, %v4048_v39 }
 0x9b3   : > { %4052 = vrot.lane.b32.xlu1 %v4050_v26, %s6344_s18 }
 0xa25   : > { %v4053_v58 = vpop.permute.xlu1 %4052 }
 0xa26   : > { %v4055_v43 = vadd.f32 %v4053_v58, %v4045_v45  }
 0xa28   : > { %6166 = vtanh.f32 %v4055_v43 }
 0xa32   : > { %v6167_v17 = vpop.eup %6166 }
 0xa33   : > { %4058 = vrot.lane.b32.xlu1 %v6167_v17, %s6347_s2 }
 0xa37   : > { %4153 = vrot.lane.b32.xlu1 %v6320_v50, %s6344_s18 }
 0xaa5   : > { %v4059_v57 = vpop.permute.xlu1 %4058 }
 0xaa6   : > { %v4061_v41 = vmul.f32 %v6165_v53, %v4059_v57  }
 0xaa8   : > { %4074 = vrot.lane.b32.xlu0 %v4061_v41, %s6344_s18  ;;  %v5826_v41 = vpack.c.bf16 (%p3947_p4), %v6531_v4, %v6529_v3  ;;  %v5838_v4 = vpack.c.bf16 (%p3947_p4), %v6576_v13, %v6571_v12 }
 0xaa9   : > { %v4154_v36 = vpop.permute.xlu1 %4153 }
 0xaaa   :  { %5827 = vmatpush3.bf16.msra.mxu0 (%p3947_p4), %v5826_v41 }
 0xb1a   : > { %v4075_v27 = vpop.permute.xlu0 %4074 }
 0xb1b   : > { %5473 = vmatmul.mubr.msk.f32.vlgmr.msra.gmra.mrb[0].mxu1 %vm2270_vm2, %v4075_v27 }
 0xb1c   : > { %5818 = vmatpush3.bf16.msra.mxu1 %v5817_v46  ;;  %5483 = vmatprep.mubr.msk.f32.mxu1 %vm6345_vm3, %v6346_v24 }
 0xb1d   : > { %5819 = vmatprep.subr.bf16.mxu1 %v6343_v52 }
 0xb20   : > { %5821 = vmatpush3.bf16.msra.mxu1 %v5820_v47 }
 0xb21   :  { %5828 = vmatprep.subr.bf16.mxu1 (%p3947_p4), %v6342_v0 }
 0xb23   : > { %5484 = vmatmul.mubr.msk.f32.vlgmr.msra.gmra.mrb[0].mxu1 %vm2270_vm2, %v4154_v36 }
 0xb24   :  { %5513 = vmatprep.mubr.msk.f32.mxu1 (%p3947_p4), %vm6349_vm4, %v6350_v61  ;;  %5830 = vmatpush3.bf16.msra.mxu1 (%p3947_p4), %v5829_v16 }
 0xb25   :  { %5831 = vmatprep.subr.bf16.mxu1 (%p3947_p4), %v6342_v0 }
 0xb28   :  { %5833 = vmatpush3.bf16.msra.mxu1 (%p3947_p4), %v5832_v1 }
 0xb29   :  { %5834 = vmatprep.subr.bf16.mxu1 (%p3947_p4), %v6342_v0 }
 0xb2c   :  { %5836 = vmatpush3.bf16.msra.mxu1 (%p3947_p4), %v5835_v2 }
 0xb2d   :  { %5837 = vmatprep.subr.bf16.mxu1 (%p3947_p4), %v6342_v0 }
 0xb30   :  { %5839 = vmatpush3.bf16.msra.mxu1 (%p3947_p4), %v5838_v4 }
 0xbf6   : > { %v4223_v18 = vpop.f32.mrb[0].mxu1 }
 0xbf7   : > { %v5972_v19 = vadd.f32 %v4679_v62, %v4223_v18  ;;  %v5485_v42 = vpop.f32.mrb[1].mxu1 }
 0xbf9   : > { %6168 = vtanh.f32 %v5972_v19  ;;  %v4682_v55 = vmul.f32 -1.442695, %v5972_v19 }
 0xbfb   : > { %6170 = vpow2.f32 %v4682_v55 }
 0xc03   : > { %v6169_v25 = vpop.eup %6168 }
 0xc04   : > { %4237 = vrot.lane.b32.xlu0 %v6169_v25, %s6347_s2 }
 0xc05   : > { %v6171_v22 = vpop.eup %6170 }
 0xc06   : > { %v4231_v50 = vadd.f32 1.0, %v6171_v22 }
 0xc08   : > { %6172 = vrcp.f32 %v4231_v50 }
 0xc12   : > { %v6173_v40 = vpop.eup %6172 }
 0xc13   : > { %v4235_v52 = vmul.f32 %v6316_v44, %v6173_v40 }
 0xc76   : > { %v4238_v20 = vpop.permute.xlu0 %4237 }
 0xc77   : > { %v4240_v34 = vmul.f32 %v6173_v40, %v4238_v20 }
 0xc79   : > { %4242 = vrot.lane.b32.xlu1 %v4240_v34, %s6344_s18 }
 0xceb   : > { %v4243_v51 = vpop.permute.xlu1 %4242 }
 0xcec   : > { %v4245_v44 = vadd.f32 %v4243_v51, %v4235_v52  }
 0xcee   : > { %6174 = vtanh.f32 %v4245_v44 }
 0xcf8   : > { %v6175_v37 = vpop.eup %6174 }
 0xcf9   : > { %4248 = vrot.lane.b32.xlu0 %v6175_v37, %s6347_s2 }
 0xd68   :  { %3949 = sbr.rel (!%p3947_p4) target bundleno = 2024 (0x7e8), region = 124 }
 0xd6b   : > { %v4249_v24 = vpop.permute.xlu0 %4248 }
 0xd6c   : > { %v4251_v15 = vmul.f32 %v6173_v40, %v4249_v24  }
 0xd6e   : > { %v7981_v50 = vmov %v4251_v15  ;;  %4259 = vrot.lane.b32.xlu0 (%p3947_p4), %v4251_v15, %s6348_s4 }
 0xde0   :  { %v4260_v3 = vpop.permute.xlu0 %4259 }
 0xde1   :  { %5495 = vmatmul.mubr.msk.f32.vlgmr.msra.gmra.mrb[0].mxu0 %vm2270_vm2, %v4260_v3 }
 0xeb4   :  { %v4329_v6 = vpop.f32.mrb[0].mxu0 }
 0xeb5   :  { %v4330_v7 = vadd.f32 %v6536_v5, %v4329_v6  ;;  %v5496_v8 = vpop.f32.mrb[1].mxu0 }
 0xeb7   :  { %v4333_v9 = vmax.f32 %v4330_v7, 0.0 }
 0xeb9   :  { %5514 = vmatmul.mubr.msk.f32.vlgmr.msra.gmra.mrb[0].mxu1 %vm4340_vm5, %v4333_v9 }
 0xf8c   :  { %v4410_v10 = vpop.f32.mrb[0].mxu1 }
 0xf8d   :  { %v4411_v0 = vadd.f32 %v6581_v14, %v4410_v10  ;;  %v5515_v11 = vpop.f32.mrb[1].mxu1 }
 0xf8f   :  { %4415 = vst.msk [vmem:[#allocation11] sm:$0x3] %vm4414_vm6, %v4411_v0 }
 0xf90   :  { %6275 = shalt.err (!%p6272_p9)
}
 0xf91   :  { %s7982_s17 = sld [smem:[#allocation20_spill]] }
 0xf97   :  { %s6276_s3 = scalar_lea.hbm %s7982_s17, 32 }
 0xf98   :  { %p6277_p10 = scmp.ne.s32.totalorder %s7982_s17, %s6276_s3  ;;  %p6280_p11 = scmp.lt.u32.totalorder %s6276_s3, %s7982_s17 }
 0xf9a   :  { %p6282_p12 = pnand %p6280_p11, %p6277_p10 }
 0xf9c   :  { %6285 = shalt.err (!%p6282_p12)
}
 0xf9d   :  { %4425 = dma.vmem_to_hbm [thread:$0]  %s4423_s12, 32, %s7982_s17, [#allocation5]  }
 0xf9e   :  { %6312 = dma.done.wait [#allocation5], 32  }
 0xf9f   :  { %6313 = vsyncadd [#allocation5], 4294967264 }
 0xfa0   :  { %4429 = vsyncpa [#allocation4], 1 }
 0xfa1   :  { %4430 = vsyncpa [#allocation7], 1 }
 0xfa2   :  { %4431 = vsyncpa [#allocation10], 1 }
 0xfa3   :  { %4432 = vsyncpa [#allocation5], 1 }

</bundles_post_ra>
